<compile_context>
chip_gen: v7x
topology: tpu7x:2x2x1
jax: 0.10.0
libtpu: 0.0.40
codegen_flags: <defaults>
</compile_context>

<pallas_src>
import functools

import numpy as np
import jax
import jax.numpy as jnp
from jax import lax
from jax.experimental import pallas as pl
from jax.experimental.pallas import tpu as pltpu

# ---- hyperparameters (stand-ins for the module's undefined constants) -------
Q_INPUT_DIM = 16
SEQUENCE_LENGTH = 8
Q_EMBEDDING_DIM = 32
NHEAD = 4
Q_NUM_LAYERS = 2
Q_OUTPUT_DIM = 4
Q_DROPOUT = 0.1            # identity at inference
DIM_FEEDFORWARD = 2048     # nn.TransformerEncoderLayer default
LN_EPS = 1e-5              # nn.LayerNorm default
BATCH = 2


# ------------------------------ kernel helpers --------------------------------
def _layer_norm(x, w, b, eps=LN_EPS):
    mu = jnp.mean(x, axis=-1, keepdims=True)
    var = jnp.mean(jnp.square(x - mu), axis=-1, keepdims=True)
    return (x - mu) * lax.rsqrt(var + eps) * w + b


# --------------------------------- kernel -------------------------------------
def transformer_qnet_kernel(
    x_ref, w_in_ref, bpos_ref,
    wqkv_ref, bqkv_ref, wo_ref, bo_ref, ln1w_ref, ln1b_ref,
    wf1_ref, bf1_ref, wf2_ref, bf2_ref, ln2w_ref, ln2b_ref,
    wfold_ref, sel_ref, rowsel_ref, fold_ref, bout_ref,
    o_ref, *, num_layers, nhead, batch, seq, ff_chunk):
    D = w_in_ref.shape[1]
    dh = D // nhead
    FF = wf1_ref.shape[-1]
    rows = batch * seq
    scale = 1.0 / float(np.sqrt(dh))

    # ---- input Linear + positional encoding (bias + pos pre-merged) ----------
    h = jnp.dot(x_ref[...], w_in_ref[...],
                preferred_element_type=jnp.float32) + bpos_ref[...]   # (B*S, D)

    for l in range(num_layers):                     # static loop, L is tiny
        # ---- fused QKV projection -------------------------------------------
        qkv = jnp.dot(h, wqkv_ref[l],
                      preferred_element_type=jnp.float32) + bqkv_ref[l]  # (B*S, 3D)

        # ---- attention: static loop over heads, per-batch S x S blocks -------
        # head-concat is folded into Wo: attn = bo + sum_h ctx_h @ Wo[h*dh:(h+1)*dh]
        attn = jnp.zeros((rows, D), jnp.float32) + bo_ref[l]
        for hd in range(nhead):
            c0 = hd * dh
            ctx_parts = []
            for b in range(batch):                  # sublane-aligned row blocks
                r0 = b * seq
                qb = qkv[r0:r0 + seq, c0:c0 + dh]                     # (S, dh)
                kb = qkv[r0:r0 + seq, D + c0:D + c0 + dh]             # (S, dh)
                vb = qkv[r0:r0 + seq, 2 * D + c0:2 * D + c0 + dh]     # (S, dh)
                s = lax.dot_general(qb, kb, (((1,), (1,)), ((), ())),
                                    preferred_element_type=jnp.float32) * scale
                m = jnp.max(s, axis=-1, keepdims=True)
                e = jnp.exp(s - m)
                p = e * pl.reciprocal(jnp.sum(e, axis=-1, keepdims=True),
                                      approx=True)
                ctx_parts.append(jnp.dot(p, vb,
                                         preferred_element_type=jnp.float32))
            ctx_h = jnp.concatenate(ctx_parts, axis=0)                # (B*S, dh)
            attn = attn + jnp.dot(ctx_h, wo_ref[l, c0:c0 + dh, :],
                                  preferred_element_type=jnp.float32)
        h = _layer_norm(h + attn, ln1w_ref[l], ln1b_ref[l])

        # ---- feed-forward (ReLU); weights stored bf16, upcast, f32 accumulate -
        ff = jnp.zeros_like(h) + bf2_ref[l]          # second bias folded into init
        for c in range(FF // ff_chunk):
            lo = c * ff_chunk
            w1c = wf1_ref[l, :, lo:lo + ff_chunk].astype(jnp.float32)
            f = jnp.dot(h, w1c, preferred_element_type=jnp.float32)
            f = jnp.maximum(f + bf1_ref[l, :, lo:lo + ff_chunk], 0.0)
            w2c = wf2_ref[l, lo:lo + ff_chunk, :].astype(jnp.float32)
            ff = ff + jnp.dot(f, w2c, preferred_element_type=jnp.float32)
        h = _layer_norm(h + ff, ln2w_ref[l], ln2b_ref[l])

    # ---- flatten + output Linear as 3 dense matmuls ---------------------------
    # out[b,o] = sum_{s,d} h[b*S+s, d] * Wout[o, s*D+d]
    t = jnp.dot(h, wfold_ref[...], preferred_element_type=jnp.float32) * sel_ref[...]
    pooled = jnp.dot(rowsel_ref[...], t, preferred_element_type=jnp.float32)
    o_ref[...] = jnp.dot(pooled, fold_ref[...],
                         preferred_element_type=jnp.float32) + bout_ref[...]


# --------------------- one-time parameter prepacking ---------------------------
def prepack_params(params, batch):
    """All transposes / stacks / constants built ONCE (not in the per-call path)."""
    D, S = Q_EMBEDDING_DIM, SEQUENCE_LENGTH
    OUT = Q_OUTPUT_DIM
    BS = batch * S

    def stack(fn, dtype=jnp.float32):
        return jnp.stack([fn(p) for p in params['layers']], axis=0).astype(dtype)

    # output layer (OUT, S*D): restructure as rowsel @ ((h @ wfold) * sel) @ fold
    wout3 = params['out_w'].T.reshape(S, D, OUT)                     # flatten order (s, d)
    wfold = jnp.transpose(wout3, (1, 0, 2)).reshape(D, S * OUT)

    rows = np.arange(BS)
    sel = jnp.asarray(
        ((np.arange(S * OUT)[None, :] // OUT) == (rows[:, None] % S)).astype(np.float32))
    rowsel = jnp.asarray(
        ((rows[None, :] // S) == np.arange(batch)[:, None]).astype(np.float32))  # (B, B*S)
    fold = jnp.asarray(np.tile(np.eye(OUT, dtype=np.float32), (S, 1)))           # (S*OUT, OUT)

    return {
        'w_in': params['in_w'].T,                                               # (IN, D)
        'bpos': jnp.tile(params['pos'].reshape(S, D), (batch, 1))
                + params['in_b'][None, :],                                      # (B*S, D)
        'wqkv': stack(lambda p: p['in_w'].T),                                   # (L, D, 3D)
        'bqkv': stack(lambda p: p['in_b'].reshape(1, 3 * D)),
        'wo': stack(lambda p: p['out_w'].T),                                    # (L, D, D)
        'bo': stack(lambda p: p['out_b'].reshape(1, D)),
        'ln1w': stack(lambda p: p['ln1_w'].reshape(1, D)),
        'ln1b': stack(lambda p: p['ln1_b'].reshape(1, D)),
        'wf1': stack(lambda p: p['ff1_w'].T, jnp.bfloat16),                     # (L, D, FF) bf16
        'bf1': stack(lambda p: p['ff1_b'].reshape(1, -1)),
        'wf2': stack(lambda p: p['ff2_w'].T, jnp.bfloat16),                     # (L, FF, D) bf16
        'bf2': stack(lambda p: p['ff2_b'].reshape(1, D)),
        'ln2w': stack(lambda p: p['ln2_w'].reshape(1, D)),
        'ln2b': stack(lambda p: p['ln2_b'].reshape(1, D)),
        'wfold': wfold, 'sel': sel, 'rowsel': rowsel, 'fold': fold,
        'b_out': params['out_b'].reshape(1, OUT),
    }


# ------------------------------ wrapper (glue) ---------------------------------
@jax.jit
def transformer_qnet_forward(x, packed):
    B, S, IN = x.shape
    D = packed['w_in'].shape[1]
    L = packed['wqkv'].shape[0]
    FF = packed['wf1'].shape[-1]
    OUT = packed['b_out'].shape[-1]

    x2d = x.reshape(B * S, IN)                       # only per-call array op
    inputs = (x2d, packed['w_in'], packed['bpos'],
              packed['wqkv'], packed['bqkv'], packed['wo'], packed['bo'],
              packed['ln1w'], packed['ln1b'],
              packed['wf1'], packed['bf1'], packed['wf2'], packed['bf2'],
              packed['ln2w'], packed['ln2b'],
              packed['wfold'], packed['sel'], packed['rowsel'], packed['fold'],
              packed['b_out'])

    ff_chunk = FF                                    # single FF pass (per review)
    kernel = functools.partial(transformer_qnet_kernel,
                               num_layers=L, nhead=NHEAD,
                               batch=B, seq=S, ff_chunk=ff_chunk)
    vmem = pl.BlockSpec(memory_space=pltpu.MemorySpace.VMEM)   # whole arrays in VMEM
    return pl.pallas_call(
        kernel,
        out_shape=jax.ShapeDtypeStruct((B, OUT), jnp.float32),
        in_specs=[vmem] * len(inputs),
        out_specs=vmem,
    )(*inputs)


# --------------------------- pure-JAX reference --------------------------------
def reference_forward(x, params):
    B, S, _ = x.shape
    D, H, L = Q_EMBEDDING_DIM, NHEAD, Q_NUM_LAYERS
    dh = D // H

    def ln(z, w, b):
        mu = jnp.mean(z, -1, keepdims=True)
        var = jnp.mean(jnp.square(z - mu), -1, keepdims=True)
        return (z - mu) / jnp.sqrt(var + LN_EPS) * w + b

    h = x @ params['in_w'].T + params['in_b'] + params['pos'][0]
    for l in range(L):
        p = params['layers'][l]
        qkv = h @ p['in_w'].T + p['in_b']
        q, k, v = jnp.split(qkv, 3, axis=-1)
        sh = lambda t: t.reshape(B, S, H, dh).transpose(0, 2, 1, 3)
        q, k, v = sh(q), sh(k), sh(v)
        scores = jnp.einsum('bhqd,bhkd->bhqk', q, k) / jnp.sqrt(float(dh))
        attn = jax.nn.softmax(scores, axis=-1)
        o = jnp.einsum('bhqk,bhkd->bhqd', attn, v).transpose(0, 2, 1, 3).reshape(B, S, D)
        o = o @ p['out_w'].T + p['out_b']
        h = ln(h + o, p['ln1_w'], p['ln1_b'])
        f = jax.nn.relu(h @ p['ff1_w'].T + p['ff1_b']) @ p['ff2_w'].T + p['ff2_b']
        h = ln(h + f, p['ln2_w'], p['ln2_b'])
    flat = h.reshape(B, S * D)
    return flat @ params['out_w'].T + params['out_b']


# ------------------------------ param init -------------------------------------
def init_params(key):
    D, IN, S = Q_EMBEDDING_DIM, Q_INPUT_DIM, SEQUENCE_LENGTH
    L, FF, OUT = Q_NUM_LAYERS, DIM_FEEDFORWARD, Q_OUTPUT_DIM
    keys = iter(jax.random.split(key, 64))

    def nrm(shape, scale=0.05):
        return scale * jax.random.normal(next(keys), shape, jnp.float32)

    params = {
        'in_w': nrm((D, IN)), 'in_b': nrm((D,)),
        'pos': jax.random.normal(next(keys), (1, S, D), jnp.float32),
        'out_w': nrm((OUT, S * D)), 'out_b': nrm((OUT,)),
        'layers': [],
    }
    for _ in range(L):
        params['layers'].append({
            'in_w': nrm((3 * D, D)), 'in_b': nrm((3 * D,)),
            'out_w': nrm((D, D)), 'out_b': nrm((D,)),
            'ln1_w': jnp.ones((D,), jnp.float32), 'ln1_b': jnp.zeros((D,), jnp.float32),
            'ff1_w': nrm((FF, D)), 'ff1_b': nrm((FF,)),
            'ff2_w': nrm((D, FF)), 'ff2_b': nrm((D,)),
            'ln2_w': jnp.ones((D,), jnp.float32), 'ln2_b': jnp.zeros((D,), jnp.float32),
        })
    return params


# ----------------------------------- main ---------------------------------------
if __name__ == "__main__":
    key = jax.random.PRNGKey(0)
    k_x, k_p = jax.random.split(key)
    x = jax.random.normal(k_x, (BATCH, SEQUENCE_LENGTH, Q_INPUT_DIM), jnp.float32)
    params = init_params(k_p)

    packed = prepack_params(params, BATCH)           # one-time repacking (hoisted)

    out = transformer_qnet_forward(x, packed)
    out = jax.block_until_ready(out)

    ref = jax.block_until_ready(reference_forward(x, params))

    assert out.shape == (BATCH, Q_OUTPUT_DIM), out.shape
    assert np.all(np.isfinite(np.asarray(out)))
    # tolerance covers (a) bf16 storage of the feed-forward weights (f32 accumulate,
    # estimated ~1-3e-3 output deviation vs the f32 reference) and (b) the
    # approximate (EUP) softmax reciprocal.
    assert np.allclose(np.asarray(out), np.asarray(ref), atol=1e-2, rtol=1e-2), (
        np.max(np.abs(np.asarray(out) - np.asarray(ref))))

    print("KERNEL_OK")
</pallas_src>

<mosaic_0001>
module attributes {stable_mosaic.version = 11 : i64} {
  func.func @transformer_qnet_kernel(%arg0: memref<16x16xf32, #tpu.memory_space<vmem>>, %arg1: memref<16x32xf32, #tpu.memory_space<vmem>>, %arg2: memref<16x32xf32, #tpu.memory_space<vmem>>, %arg3: memref<2x32x96xf32, #tpu.memory_space<vmem>>, %arg4: memref<2x1x96xf32, #tpu.memory_space<vmem>>, %arg5: memref<2x32x32xf32, #tpu.memory_space<vmem>>, %arg6: memref<2x1x32xf32, #tpu.memory_space<vmem>>, %arg7: memref<2x1x32xf32, #tpu.memory_space<vmem>>, %arg8: memref<2x1x32xf32, #tpu.memory_space<vmem>>, %arg9: memref<2x32x2048xbf16, #tpu.memory_space<vmem>>, %arg10: memref<2x1x2048xf32, #tpu.memory_space<vmem>>, %arg11: memref<2x2048x32xbf16, #tpu.memory_space<vmem>>, %arg12: memref<2x1x32xf32, #tpu.memory_space<vmem>>, %arg13: memref<2x1x32xf32, #tpu.memory_space<vmem>>, %arg14: memref<2x1x32xf32, #tpu.memory_space<vmem>>, %arg15: memref<32x32xf32, #tpu.memory_space<vmem>>, %arg16: memref<16x32xf32, #tpu.memory_space<vmem>>, %arg17: memref<2x16xf32, #tpu.memory_space<vmem>>, %arg18: memref<32x4xf32, #tpu.memory_space<vmem>>, %arg19: memref<1x4xf32, #tpu.memory_space<vmem>>, %arg20: memref<2x4xf32, #tpu.memory_space<vmem>>) attributes {dimension_semantics = [], scalar_prefetch = 0 : i64, scratch_operands = 0 : i64, tpu.core_type = #tpu.core_type<tc>} {
    %c0 = arith.constant 0 : index
    %c0_0 = arith.constant 0 : index
    %0 = vector.load %arg0[%c0, %c0_0] : memref<16x16xf32, #tpu.memory_space<vmem>>, vector<16x16xf32>
    %c0_1 = arith.constant 0 : index
    %c0_2 = arith.constant 0 : index
    %1 = vector.load %arg1[%c0_1, %c0_2] : memref<16x32xf32, #tpu.memory_space<vmem>>, vector<16x32xf32>
    %cst = arith.constant dense<0.000000e+00> : vector<16x32xf32>
    %2 = tpu.matmul %0, %1, %cst {dimension_numbers = #tpu.dot_dimension_numbers<[1], [0], [0], [1], [0, 0, 1, 1], [], []>} : vector<16x16xf32>, vector<16x32xf32>, vector<16x32xf32> -> vector<16x32xf32>
    %c0_3 = arith.constant 0 : index
    %c0_4 = arith.constant 0 : index
    %3 = vector.load %arg2[%c0_3, %c0_4] : memref<16x32xf32, #tpu.memory_space<vmem>>, vector<16x32xf32>
    %4 = arith.addf %2, %3 : vector<16x32xf32>
    %c0_5 = arith.constant 0 : index
    %c0_6 = arith.constant 0 : index
    %c0_7 = arith.constant 0 : index
    %5 = vector.load %arg3[%c0_5, %c0_6, %c0_7] : memref<2x32x96xf32, #tpu.memory_space<vmem>>, vector<1x32x96xf32>
    %6 = vector.shape_cast %5 : vector<1x32x96xf32> to vector<32x96xf32>
    %cst_8 = arith.constant dense<0.000000e+00> : vector<16x96xf32>
    %7 = tpu.matmul %4, %6, %cst_8 {dimension_numbers = #tpu.dot_dimension_numbers<[1], [0], [0], [1], [0, 0, 1, 1], [], []>} : vector<16x32xf32>, vector<32x96xf32>, vector<16x96xf32> -> vector<16x96xf32>
    %c0_9 = arith.constant 0 : index
    %c0_10 = arith.constant 0 : index
    %c0_11 = arith.constant 0 : index
    %8 = vector.load %arg4[%c0_9, %c0_10, %c0_11] : memref<2x1x96xf32, #tpu.memory_space<vmem>>, vector<1x1x96xf32>
    %9 = vector.shape_cast %8 : vector<1x1x96xf32> to vector<1x96xf32>
    %10 = vector.broadcast %9 : vector<1x96xf32> to vector<16x96xf32>
    %11 = arith.addf %7, %10 : vector<16x96xf32>
    %cst_12 = arith.constant 0.000000e+00 : f32
    %12 = vector.broadcast %cst_12 : f32 to vector<16x32xf32>
    %c0_13 = arith.constant 0 : index
    %c0_14 = arith.constant 0 : index
    %c0_15 = arith.constant 0 : index
    %13 = vector.load %arg6[%c0_13, %c0_14, %c0_15] : memref<2x1x32xf32, #tpu.memory_space<vmem>>, vector<1x1x32xf32>
    %14 = vector.shape_cast %13 : vector<1x1x32xf32> to vector<1x32xf32>
    %15 = vector.broadcast %14 : vector<1x32xf32> to vector<16x32xf32>
    %16 = arith.addf %12, %15 : vector<16x32xf32>
    %17 = vector.extract_strided_slice %11 {offsets = [0, 0], sizes = [8, 8], strides = [1, 1]} : vector<16x96xf32> to vector<8x8xf32>
    %18 = vector.extract_strided_slice %11 {offsets = [0, 32], sizes = [8, 8], strides = [1, 1]} : vector<16x96xf32> to vector<8x8xf32>
    %19 = vector.extract_strided_slice %11 {offsets = [0, 64], sizes = [8, 8], strides = [1, 1]} : vector<16x96xf32> to vector<8x8xf32>
    %cst_16 = arith.constant dense<0.000000e+00> : vector<8x8xf32>
    %20 = tpu.matmul %17, %18, %cst_16 {dimension_numbers = #tpu.dot_dimension_numbers<[1], [1], [0], [0], [0, 0, 1, 0], [], []>} : vector<8x8xf32>, vector<8x8xf32>, vector<8x8xf32> -> vector<8x8xf32>
    %cst_17 = arith.constant 0.353553385 : f32
    %21 = vector.broadcast %cst_17 : f32 to vector<8x8xf32>
    %22 = arith.mulf %20, %21 : vector<8x8xf32>
    %cst_18 = arith.constant dense<0xFF800000> : vector<8xf32>
    %23 = vector.multi_reduction <maximumf>, %22, %cst_18 [1] : vector<8x8xf32> to vector<8xf32>
    %24 = vector.shape_cast %23 : vector<8xf32> to vector<8x1xf32>
    %25 = vector.broadcast %24 : vector<8x1xf32> to vector<8x8xf32>
    %26 = arith.subf %22, %25 : vector<8x8xf32>
    %27 = math.exp %26 : vector<8x8xf32>
    %cst_19 = arith.constant dense<0.000000e+00> : vector<8xf32>
    %28 = vector.multi_reduction <add>, %27, %cst_19 [1] : vector<8x8xf32> to vector<8xf32>
    %29 = vector.shape_cast %28 : vector<8xf32> to vector<8x1xf32>
    %30 = tpu.reciprocal %29 {approx = true} : vector<8x1xf32> -> vector<8x1xf32>
    %31 = vector.broadcast %30 : vector<8x1xf32> to vector<8x8xf32>
    %32 = arith.mulf %27, %31 : vector<8x8xf32>
    %cst_20 = arith.constant dense<0.000000e+00> : vector<8x8xf32>
    %33 = tpu.matmul %32, %19, %cst_20 {dimension_numbers = #tpu.dot_dimension_numbers<[1], [0], [0], [1], [0, 0, 1, 1], [], []>} : vector<8x8xf32>, vector<8x8xf32>, vector<8x8xf32> -> vector<8x8xf32>
    %34 = vector.extract_strided_slice %11 {offsets = [8, 0], sizes = [8, 8], strides = [1, 1]} : vector<16x96xf32> to vector<8x8xf32>
    %35 = vector.extract_strided_slice %11 {offsets = [8, 32], sizes = [8, 8], strides = [1, 1]} : vector<16x96xf32> to vector<8x8xf32>
    %36 = vector.extract_strided_slice %11 {offsets = [8, 64], sizes = [8, 8], strides = [1, 1]} : vector<16x96xf32> to vector<8x8xf32>
    %cst_21 = arith.constant dense<0.000000e+00> : vector<8x8xf32>
    %37 = tpu.matmul %34, %35, %cst_21 {dimension_numbers = #tpu.dot_dimension_numbers<[1], [1], [0], [0], [0, 0, 1, 0], [], []>} : vector<8x8xf32>, vector<8x8xf32>, vector<8x8xf32> -> vector<8x8xf32>
    %cst_22 = arith.constant 0.353553385 : f32
    %38 = vector.broadcast %cst_22 : f32 to vector<8x8xf32>
    %39 = arith.mulf %37, %38 : vector<8x8xf32>
    %cst_23 = arith.constant dense<0xFF800000> : vector<8xf32>
    %40 = vector.multi_reduction <maximumf>, %39, %cst_23 [1] : vector<8x8xf32> to vector<8xf32>
    %41 = vector.shape_cast %40 : vector<8xf32> to vector<8x1xf32>
    %42 = vector.broadcast %41 : vector<8x1xf32> to vector<8x8xf32>
    %43 = arith.subf %39, %42 : vector<8x8xf32>
    %44 = math.exp %43 : vector<8x8xf32>
    %cst_24 = arith.constant dense<0.000000e+00> : vector<8xf32>
    %45 = vector.multi_reduction <add>, %44, %cst_24 [1] : vector<8x8xf32> to vector<8xf32>
    %46 = vector.shape_cast %45 : vector<8xf32> to vector<8x1xf32>
    %47 = tpu.reciprocal %46 {approx = true} : vector<8x1xf32> -> vector<8x1xf32>
    %48 = vector.broadcast %47 : vector<8x1xf32> to vector<8x8xf32>
    %49 = arith.mulf %44, %48 : vector<8x8xf32>
    %cst_25 = arith.constant dense<0.000000e+00> : vector<8x8xf32>
    %50 = tpu.matmul %49, %36, %cst_25 {dimension_numbers = #tpu.dot_dimension_numbers<[1], [0], [0], [1], [0, 0, 1, 1], [], []>} : vector<8x8xf32>, vector<8x8xf32>, vector<8x8xf32> -> vector<8x8xf32>
    %51 = tpu.concatenate %33, %50 in 0 : vector<8x8xf32>, vector<8x8xf32> -> vector<16x8xf32>
    %c0_26 = arith.constant 0 : index
    %c0_27 = arith.constant 0 : index
    %c0_28 = arith.constant 0 : index
    %52 = vector.load %arg5[%c0_26, %c0_27, %c0_28] : memref<2x32x32xf32, #tpu.memory_space<vmem>>, vector<1x8x32xf32>
    %53 = vector.shape_cast %52 : vector<1x8x32xf32> to vector<8x32xf32>
    %cst_29 = arith.constant dense<0.000000e+00> : vector<16x32xf32>
    %54 = tpu.matmul %51, %53, %cst_29 {dimension_numbers = #tpu.dot_dimension_numbers<[1], [0], [0], [1], [0, 0, 1, 1], [], []>} : vector<16x8xf32>, vector<8x32xf32>, vector<16x32xf32> -> vector<16x32xf32>
    %55 = arith.addf %16, %54 : vector<16x32xf32>
    %56 = vector.extract_strided_slice %11 {offsets = [0, 8], sizes = [8, 8], strides = [1, 1]} : vector<16x96xf32> to vector<8x8xf32>
    %57 = vector.extract_strided_slice %11 {offsets = [0, 40], sizes = [8, 8], strides = [1, 1]} : vector<16x96xf32> to vector<8x8xf32>
    %58 = vector.extract_strided_slice %11 {offsets = [0, 72], sizes = [8, 8], strides = [1, 1]} : vector<16x96xf32> to vector<8x8xf32>
    %cst_30 = arith.constant dense<0.000000e+00> : vector<8x8xf32>
    %59 = tpu.matmul %56, %57, %cst_30 {dimension_numbers = #tpu.dot_dimension_numbers<[1], [1], [0], [0], [0, 0, 1, 0], [], []>} : vector<8x8xf32>, vector<8x8xf32>, vector<8x8xf32> -> vector<8x8xf32>
    %cst_31 = arith.constant 0.353553385 : f32
    %60 = vector.broadcast %cst_31 : f32 to vector<8x8xf32>
    %61 = arith.mulf %59, %60 : vector<8x8xf32>
    %cst_32 = arith.constant dense<0xFF800000> : vector<8xf32>
    %62 = vector.multi_reduction <maximumf>, %61, %cst_32 [1] : vector<8x8xf32> to vector<8xf32>
    %63 = vector.shape_cast %62 : vector<8xf32> to vector<8x1xf32>
    %64 = vector.broadcast %63 : vector<8x1xf32> to vector<8x8xf32>
    %65 = arith.subf %61, %64 : vector<8x8xf32>
    %66 = math.exp %65 : vector<8x8xf32>
    %cst_33 = arith.constant dense<0.000000e+00> : vector<8xf32>
    %67 = vector.multi_reduction <add>, %66, %cst_33 [1] : vector<8x8xf32> to vector<8xf32>
    %68 = vector.shape_cast %67 : vector<8xf32> to vector<8x1xf32>
    %69 = tpu.reciprocal %68 {approx = true} : vector<8x1xf32> -> vector<8x1xf32>
    %70 = vector.broadcast %69 : vector<8x1xf32> to vector<8x8xf32>
    %71 = arith.mulf %66, %70 : vector<8x8xf32>
    %cst_34 = arith.constant dense<0.000000e+00> : vector<8x8xf32>
    %72 = tpu.matmul %71, %58, %cst_34 {dimension_numbers = #tpu.dot_dimension_numbers<[1], [0], [0], [1], [0, 0, 1, 1], [], []>} : vector<8x8xf32>, vector<8x8xf32>, vector<8x8xf32> -> vector<8x8xf32>
    %73 = vector.extract_strided_slice %11 {offsets = [8, 8], sizes = [8, 8], strides = [1, 1]} : vector<16x96xf32> to vector<8x8xf32>
    %74 = vector.extract_strided_slice %11 {offsets = [8, 40], sizes = [8, 8], strides = [1, 1]} : vector<16x96xf32> to vector<8x8xf32>
    %75 = vector.extract_strided_slice %11 {offsets = [8, 72], sizes = [8, 8], strides = [1, 1]} : vector<16x96xf32> to vector<8x8xf32>
    %cst_35 = arith.constant dense<0.000000e+00> : vector<8x8xf32>
    %76 = tpu.matmul %73, %74, %cst_35 {dimension_numbers = #tpu.dot_dimension_numbers<[1], [1], [0], [0], [0, 0, 1, 0], [], []>} : vector<8x8xf32>, vector<8x8xf32>, vector<8x8xf32> -> vector<8x8xf32>
    %cst_36 = arith.constant 0.353553385 : f32
    %77 = vector.broadcast %cst_36 : f32 to vector<8x8xf32>
    %78 = arith.mulf %76, %77 : vector<8x8xf32>
    %cst_37 = arith.constant dense<0xFF800000> : vector<8xf32>
    %79 = vector.multi_reduction <maximumf>, %78, %cst_37 [1] : vector<8x8xf32> to vector<8xf32>
    %80 = vector.shape_cast %79 : vector<8xf32> to vector<8x1xf32>
    %81 = vector.broadcast %80 : vector<8x1xf32> to vector<8x8xf32>
    %82 = arith.subf %78, %81 : vector<8x8xf32>
    %83 = math.exp %82 : vector<8x8xf32>
    %cst_38 = arith.constant dense<0.000000e+00> : vector<8xf32>
    %84 = vector.multi_reduction <add>, %83, %cst_38 [1] : vector<8x8xf32> to vector<8xf32>
    %85 = vector.shape_cast %84 : vector<8xf32> to vector<8x1xf32>
    %86 = tpu.reciprocal %85 {approx = true} : vector<8x1xf32> -> vector<8x1xf32>
    %87 = vector.broadcast %86 : vector<8x1xf32> to vector<8x8xf32>
    %88 = arith.mulf %83, %87 : vector<8x8xf32>
    %cst_39 = arith.constant dense<0.000000e+00> : vector<8x8xf32>
    %89 = tpu.matmul %88, %75, %cst_39 {dimension_numbers = #tpu.dot_dimension_numbers<[1], [0], [0], [1], [0, 0, 1, 1], [], []>} : vector<8x8xf32>, vector<8x8xf32>, vector<8x8xf32> -> vector<8x8xf32>
    %90 = tpu.concatenate %72, %89 in 0 : vector<8x8xf32>, vector<8x8xf32> -> vector<16x8xf32>
    %c0_40 = arith.constant 0 : index
    %c8 = arith.constant 8 : index
    %c0_41 = arith.constant 0 : index
    %91 = vector.load %arg5[%c0_40, %c8, %c0_41] : memref<2x32x32xf32, #tpu.memory_space<vmem>>, vector<1x8x32xf32>
    %92 = vector.shape_cast %91 : vector<1x8x32xf32> to vector<8x32xf32>
    %cst_42 = arith.constant dense<0.000000e+00> : vector<16x32xf32>
    %93 = tpu.matmul %90, %92, %cst_42 {dimension_numbers = #tpu.dot_dimension_numbers<[1], [0], [0], [1], [0, 0, 1, 1], [], []>} : vector<16x8xf32>, vector<8x32xf32>, vector<16x32xf32> -> vector<16x32xf32>
    %94 = arith.addf %55, %93 : vector<16x32xf32>
    %95 = vector.extract_strided_slice %11 {offsets = [0, 16], sizes = [8, 8], strides = [1, 1]} : vector<16x96xf32> to vector<8x8xf32>
    %96 = vector.extract_strided_slice %11 {offsets = [0, 48], sizes = [8, 8], strides = [1, 1]} : vector<16x96xf32> to vector<8x8xf32>
    %97 = vector.extract_strided_slice %11 {offsets = [0, 80], sizes = [8, 8], strides = [1, 1]} : vector<16x96xf32> to vector<8x8xf32>
    %cst_43 = arith.constant dense<0.000000e+00> : vector<8x8xf32>
    %98 = tpu.matmul %95, %96, %cst_43 {dimension_numbers = #tpu.dot_dimension_numbers<[1], [1], [0], [0], [0, 0, 1, 0], [], []>} : vector<8x8xf32>, vector<8x8xf32>, vector<8x8xf32> -> vector<8x8xf32>
    %cst_44 = arith.constant 0.353553385 : f32
    %99 = vector.broadcast %cst_44 : f32 to vector<8x8xf32>
    %100 = arith.mulf %98, %99 : vector<8x8xf32>
    %cst_45 = arith.constant dense<0xFF800000> : vector<8xf32>
    %101 = vector.multi_reduction <maximumf>, %100, %cst_45 [1] : vector<8x8xf32> to vector<8xf32>
    %102 = vector.shape_cast %101 : vector<8xf32> to vector<8x1xf32>
    %103 = vector.broadcast %102 : vector<8x1xf32> to vector<8x8xf32>
    %104 = arith.subf %100, %103 : vector<8x8xf32>
    %105 = math.exp %104 : vector<8x8xf32>
    %cst_46 = arith.constant dense<0.000000e+00> : vector<8xf32>
    %106 = vector.multi_reduction <add>, %105, %cst_46 [1] : vector<8x8xf32> to vector<8xf32>
    %107 = vector.shape_cast %106 : vector<8xf32> to vector<8x1xf32>
    %108 = tpu.reciprocal %107 {approx = true} : vector<8x1xf32> -> vector<8x1xf32>
    %109 = vector.broadcast %108 : vector<8x1xf32> to vector<8x8xf32>
    %110 = arith.mulf %105, %109 : vector<8x8xf32>
    %cst_47 = arith.constant dense<0.000000e+00> : vector<8x8xf32>
    %111 = tpu.matmul %110, %97, %cst_47 {dimension_numbers = #tpu.dot_dimension_numbers<[1], [0], [0], [1], [0, 0, 1, 1], [], []>} : vector<8x8xf32>, vector<8x8xf32>, vector<8x8xf32> -> vector<8x8xf32>
    %112 = vector.extract_strided_slice %11 {offsets = [8, 16], sizes = [8, 8], strides = [1, 1]} : vector<16x96xf32> to vector<8x8xf32>
    %113 = vector.extract_strided_slice %11 {offsets = [8, 48], sizes = [8, 8], strides = [1, 1]} : vector<16x96xf32> to vector<8x8xf32>
    %114 = vector.extract_strided_slice %11 {offsets = [8, 80], sizes = [8, 8], strides = [1, 1]} : vector<16x96xf32> to vector<8x8xf32>
    %cst_48 = arith.constant dense<0.000000e+00> : vector<8x8xf32>
    %115 = tpu.matmul %112, %113, %cst_48 {dimension_numbers = #tpu.dot_dimension_numbers<[1], [1], [0], [0], [0, 0, 1, 0], [], []>} : vector<8x8xf32>, vector<8x8xf32>, vector<8x8xf32> -> vector<8x8xf32>
    %cst_49 = arith.constant 0.353553385 : f32
    %116 = vector.broadcast %cst_49 : f32 to vector<8x8xf32>
    %117 = arith.mulf %115, %116 : vector<8x8xf32>
    %cst_50 = arith.constant dense<0xFF800000> : vector<8xf32>
    %118 = vector.multi_reduction <maximumf>, %117, %cst_50 [1] : vector<8x8xf32> to vector<8xf32>
    %119 = vector.shape_cast %118 : vector<8xf32> to vector<8x1xf32>
    %120 = vector.broadcast %119 : vector<8x1xf32> to vector<8x8xf32>
    %121 = arith.subf %117, %120 : vector<8x8xf32>
    %122 = math.exp %121 : vector<8x8xf32>
    %cst_51 = arith.constant dense<0.000000e+00> : vector<8xf32>
    %123 = vector.multi_reduction <add>, %122, %cst_51 [1] : vector<8x8xf32> to vector<8xf32>
    %124 = vector.shape_cast %123 : vector<8xf32> to vector<8x1xf32>
    %125 = tpu.reciprocal %124 {approx = true} : vector<8x1xf32> -> vector<8x1xf32>
    %126 = vector.broadcast %125 : vector<8x1xf32> to vector<8x8xf32>
    %127 = arith.mulf %122, %126 : vector<8x8xf32>
    %cst_52 = arith.constant dense<0.000000e+00> : vector<8x8xf32>
    %128 = tpu.matmul %127, %114, %cst_52 {dimension_numbers = #tpu.dot_dimension_numbers<[1], [0], [0], [1], [0, 0, 1, 1], [], []>} : vector<8x8xf32>, vector<8x8xf32>, vector<8x8xf32> -> vector<8x8xf32>
    %129 = tpu.concatenate %111, %128 in 0 : vector<8x8xf32>, vector<8x8xf32> -> vector<16x8xf32>
    %c0_53 = arith.constant 0 : index
    %c16 = arith.constant 16 : index
    %c0_54 = arith.constant 0 : index
    %130 = vector.load %arg5[%c0_53, %c16, %c0_54] : memref<2x32x32xf32, #tpu.memory_space<vmem>>, vector<1x8x32xf32>
    %131 = vector.shape_cast %130 : vector<1x8x32xf32> to vector<8x32xf32>
    %cst_55 = arith.constant dense<0.000000e+00> : vector<16x32xf32>
    %132 = tpu.matmul %129, %131, %cst_55 {dimension_numbers = #tpu.dot_dimension_numbers<[1], [0], [0], [1], [0, 0, 1, 1], [], []>} : vector<16x8xf32>, vector<8x32xf32>, vector<16x32xf32> -> vector<16x32xf32>
    %133 = arith.addf %94, %132 : vector<16x32xf32>
    %134 = vector.extract_strided_slice %11 {offsets = [0, 24], sizes = [8, 8], strides = [1, 1]} : vector<16x96xf32> to vector<8x8xf32>
    %135 = vector.extract_strided_slice %11 {offsets = [0, 56], sizes = [8, 8], strides = [1, 1]} : vector<16x96xf32> to vector<8x8xf32>
    %136 = vector.extract_strided_slice %11 {offsets = [0, 88], sizes = [8, 8], strides = [1, 1]} : vector<16x96xf32> to vector<8x8xf32>
    %cst_56 = arith.constant dense<0.000000e+00> : vector<8x8xf32>
    %137 = tpu.matmul %134, %135, %cst_56 {dimension_numbers = #tpu.dot_dimension_numbers<[1], [1], [0], [0], [0, 0, 1, 0], [], []>} : vector<8x8xf32>, vector<8x8xf32>, vector<8x8xf32> -> vector<8x8xf32>
    %cst_57 = arith.constant 0.353553385 : f32
    %138 = vector.broadcast %cst_57 : f32 to vector<8x8xf32>
    %139 = arith.mulf %137, %138 : vector<8x8xf32>
    %cst_58 = arith.constant dense<0xFF800000> : vector<8xf32>
    %140 = vector.multi_reduction <maximumf>, %139, %cst_58 [1] : vector<8x8xf32> to vector<8xf32>
    %141 = vector.shape_cast %140 : vector<8xf32> to vector<8x1xf32>
    %142 = vector.broadcast %141 : vector<8x1xf32> to vector<8x8xf32>
    %143 = arith.subf %139, %142 : vector<8x8xf32>
    %144 = math.exp %143 : vector<8x8xf32>
    %cst_59 = arith.constant dense<0.000000e+00> : vector<8xf32>
    %145 = vector.multi_reduction <add>, %144, %cst_59 [1] : vector<8x8xf32> to vector<8xf32>
    %146 = vector.shape_cast %145 : vector<8xf32> to vector<8x1xf32>
    %147 = tpu.reciprocal %146 {approx = true} : vector<8x1xf32> -> vector<8x1xf32>
    %148 = vector.broadcast %147 : vector<8x1xf32> to vector<8x8xf32>
    %149 = arith.mulf %144, %148 : vector<8x8xf32>
    %cst_60 = arith.constant dense<0.000000e+00> : vector<8x8xf32>
    %150 = tpu.matmul %149, %136, %cst_60 {dimension_numbers = #tpu.dot_dimension_numbers<[1], [0], [0], [1], [0, 0, 1, 1], [], []>} : vector<8x8xf32>, vector<8x8xf32>, vector<8x8xf32> -> vector<8x8xf32>
    %151 = vector.extract_strided_slice %11 {offsets = [8, 24], sizes = [8, 8], strides = [1, 1]} : vector<16x96xf32> to vector<8x8xf32>
    %152 = vector.extract_strided_slice %11 {offsets = [8, 56], sizes = [8, 8], strides = [1, 1]} : vector<16x96xf32> to vector<8x8xf32>
    %153 = vector.extract_strided_slice %11 {offsets = [8, 88], sizes = [8, 8], strides = [1, 1]} : vector<16x96xf32> to vector<8x8xf32>
    %cst_61 = arith.constant dense<0.000000e+00> : vector<8x8xf32>
    %154 = tpu.matmul %151, %152, %cst_61 {dimension_numbers = #tpu.dot_dimension_numbers<[1], [1], [0], [0], [0, 0, 1, 0], [], []>} : vector<8x8xf32>, vector<8x8xf32>, vector<8x8xf32> -> vector<8x8xf32>
    %cst_62 = arith.constant 0.353553385 : f32
    %155 = vector.broadcast %cst_62 : f32 to vector<8x8xf32>
    %156 = arith.mulf %154, %155 : vector<8x8xf32>
    %cst_63 = arith.constant dense<0xFF800000> : vector<8xf32>
    %157 = vector.multi_reduction <maximumf>, %156, %cst_63 [1] : vector<8x8xf32> to vector<8xf32>
    %158 = vector.shape_cast %157 : vector<8xf32> to vector<8x1xf32>
    %159 = vector.broadcast %158 : vector<8x1xf32> to vector<8x8xf32>
    %160 = arith.subf %156, %159 : vector<8x8xf32>
    %161 = math.exp %160 : vector<8x8xf32>
    %cst_64 = arith.constant dense<0.000000e+00> : vector<8xf32>
    %162 = vector.multi_reduction <add>, %161, %cst_64 [1] : vector<8x8xf32> to vector<8xf32>
    %163 = vector.shape_cast %162 : vector<8xf32> to vector<8x1xf32>
    %164 = tpu.reciprocal %163 {approx = true} : vector<8x1xf32> -> vector<8x1xf32>
    %165 = vector.broadcast %164 : vector<8x1xf32> to vector<8x8xf32>
    %166 = arith.mulf %161, %165 : vector<8x8xf32>
    %cst_65 = arith.constant dense<0.000000e+00> : vector<8x8xf32>
    %167 = tpu.matmul %166, %153, %cst_65 {dimension_numbers = #tpu.dot_dimension_numbers<[1], [0], [0], [1], [0, 0, 1, 1], [], []>} : vector<8x8xf32>, vector<8x8xf32>, vector<8x8xf32> -> vector<8x8xf32>
    %168 = tpu.concatenate %150, %167 in 0 : vector<8x8xf32>, vector<8x8xf32> -> vector<16x8xf32>
    %c0_66 = arith.constant 0 : index
    %c24 = arith.constant 24 : index
    %c0_67 = arith.constant 0 : index
    %169 = vector.load %arg5[%c0_66, %c24, %c0_67] : memref<2x32x32xf32, #tpu.memory_space<vmem>>, vector<1x8x32xf32>
    %170 = vector.shape_cast %169 : vector<1x8x32xf32> to vector<8x32xf32>
    %cst_68 = arith.constant dense<0.000000e+00> : vector<16x32xf32>
    %171 = tpu.matmul %168, %170, %cst_68 {dimension_numbers = #tpu.dot_dimension_numbers<[1], [0], [0], [1], [0, 0, 1, 1], [], []>} : vector<16x8xf32>, vector<8x32xf32>, vector<16x32xf32> -> vector<16x32xf32>
    %172 = arith.addf %133, %171 : vector<16x32xf32>
    %173 = arith.addf %4, %172 : vector<16x32xf32>
    %c0_69 = arith.constant 0 : index
    %c0_70 = arith.constant 0 : index
    %c0_71 = arith.constant 0 : index
    %174 = vector.load %arg7[%c0_69, %c0_70, %c0_71] : memref<2x1x32xf32, #tpu.memory_space<vmem>>, vector<1x1x32xf32>
    %175 = vector.shape_cast %174 : vector<1x1x32xf32> to vector<1x32xf32>
    %c0_72 = arith.constant 0 : index
    %c0_73 = arith.constant 0 : index
    %c0_74 = arith.constant 0 : index
    %176 = vector.load %arg8[%c0_72, %c0_73, %c0_74] : memref<2x1x32xf32, #tpu.memory_space<vmem>>, vector<1x1x32xf32>
    %177 = vector.shape_cast %176 : vector<1x1x32xf32> to vector<1x32xf32>
    %cst_75 = arith.constant dense<0.000000e+00> : vector<16xf32>
    %178 = vector.multi_reduction <add>, %173, %cst_75 [1] : vector<16x32xf32> to vector<16xf32>
    %179 = vector.shape_cast %178 : vector<16xf32> to vector<16x1xf32>
    %cst_76 = arith.constant 3.200000e+01 : f32
    %180 = vector.broadcast %cst_76 : f32 to vector<16x1xf32>
    %181 = arith.divf %179, %180 : vector<16x1xf32>
    %182 = vector.broadcast %181 : vector<16x1xf32> to vector<16x32xf32>
    %183 = arith.subf %173, %182 : vector<16x32xf32>
    %184 = arith.mulf %183, %183 : vector<16x32xf32>
    %cst_77 = arith.constant dense<0.000000e+00> : vector<16xf32>
    %185 = vector.multi_reduction <add>, %184, %cst_77 [1] : vector<16x32xf32> to vector<16xf32>
    %186 = vector.shape_cast %185 : vector<16xf32> to vector<16x1xf32>
    %cst_78 = arith.constant 3.200000e+01 : f32
    %187 = vector.broadcast %cst_78 : f32 to vector<16x1xf32>
    %188 = arith.divf %186, %187 : vector<16x1xf32>
    %189 = vector.broadcast %181 : vector<16x1xf32> to vector<16x32xf32>
    %190 = arith.subf %173, %189 : vector<16x32xf32>
    %cst_79 = arith.constant 9.99999974E-6 : f32
    %191 = vector.broadcast %cst_79 : f32 to vector<16x1xf32>
    %192 = arith.addf %188, %191 : vector<16x1xf32>
    %193 = math.rsqrt %192 : vector<16x1xf32>
    %194 = vector.broadcast %193 : vector<16x1xf32> to vector<16x32xf32>
    %195 = arith.mulf %190, %194 : vector<16x32xf32>
    %196 = vector.broadcast %175 : vector<1x32xf32> to vector<16x32xf32>
    %197 = arith.mulf %195, %196 : vector<16x32xf32>
    %198 = vector.broadcast %177 : vector<1x32xf32> to vector<16x32xf32>
    %199 = arith.addf %197, %198 : vector<16x32xf32>
    %cst_80 = arith.constant 0.000000e+00 : f32
    %200 = vector.broadcast %cst_80 : f32 to vector<16x32xf32>
    %c0_81 = arith.constant 0 : index
    %c0_82 = arith.constant 0 : index
    %c0_83 = arith.constant 0 : index
    %201 = vector.load %arg12[%c0_81, %c0_82, %c0_83] : memref<2x1x32xf32, #tpu.memory_space<vmem>>, vector<1x1x32xf32>
    %202 = vector.shape_cast %201 : vector<1x1x32xf32> to vector<1x32xf32>
    %203 = vector.broadcast %202 : vector<1x32xf32> to vector<16x32xf32>
    %204 = arith.addf %200, %203 : vector<16x32xf32>
    %c0_84 = arith.constant 0 : index
    %c0_85 = arith.constant 0 : index
    %c0_86 = arith.constant 0 : index
    %205 = vector.load %arg9[%c0_84, %c0_85, %c0_86] : memref<2x32x2048xbf16, #tpu.memory_space<vmem>>, vector<1x32x2048xbf16>
    %206 = vector.shape_cast %205 : vector<1x32x2048xbf16> to vector<32x2048xbf16>
    %207 = arith.extf %206 : vector<32x2048xbf16> to vector<32x2048xf32>
    %cst_87 = arith.constant dense<0.000000e+00> : vector<16x2048xf32>
    %208 = tpu.matmul %199, %207, %cst_87 {dimension_numbers = #tpu.dot_dimension_numbers<[1], [0], [0], [1], [0, 0, 1, 1], [], []>} : vector<16x32xf32>, vector<32x2048xf32>, vector<16x2048xf32> -> vector<16x2048xf32>
    %c0_88 = arith.constant 0 : index
    %c0_89 = arith.constant 0 : index
    %c0_90 = arith.constant 0 : index
    %209 = vector.load %arg10[%c0_88, %c0_89, %c0_90] : memref<2x1x2048xf32, #tpu.memory_space<vmem>>, vector<1x1x2048xf32>
    %210 = vector.shape_cast %209 : vector<1x1x2048xf32> to vector<1x2048xf32>
    %211 = vector.broadcast %210 : vector<1x2048xf32> to vector<16x2048xf32>
    %212 = arith.addf %208, %211 : vector<16x2048xf32>
    %cst_91 = arith.constant 0.000000e+00 : f32
    %213 = vector.broadcast %cst_91 : f32 to vector<16x2048xf32>
    %214 = arith.maximumf %212, %213 : vector<16x2048xf32>
    %c0_92 = arith.constant 0 : index
    %c0_93 = arith.constant 0 : index
    %c0_94 = arith.constant 0 : index
    %215 = vector.load %arg11[%c0_92, %c0_93, %c0_94] : memref<2x2048x32xbf16, #tpu.memory_space<vmem>>, vector<1x2048x32xbf16>
    %216 = vector.shape_cast %215 : vector<1x2048x32xbf16> to vector<2048x32xbf16>
    %217 = arith.extf %216 : vector<2048x32xbf16> to vector<2048x32xf32>
    %cst_95 = arith.constant dense<0.000000e+00> : vector<16x32xf32>
    %218 = tpu.matmul %214, %217, %cst_95 {dimension_numbers = #tpu.dot_dimension_numbers<[1], [0], [0], [1], [0, 0, 1, 1], [], []>} : vector<16x2048xf32>, vector<2048x32xf32>, vector<16x32xf32> -> vector<16x32xf32>
    %219 = arith.addf %204, %218 : vector<16x32xf32>
    %220 = arith.addf %199, %219 : vector<16x32xf32>
    %c0_96 = arith.constant 0 : index
    %c0_97 = arith.constant 0 : index
    %c0_98 = arith.constant 0 : index
    %221 = vector.load %arg13[%c0_96, %c0_97, %c0_98] : memref<2x1x32xf32, #tpu.memory_space<vmem>>, vector<1x1x32xf32>
    %222 = vector.shape_cast %221 : vector<1x1x32xf32> to vector<1x32xf32>
    %c0_99 = arith.constant 0 : index
    %c0_100 = arith.constant 0 : index
    %c0_101 = arith.constant 0 : index
    %223 = vector.load %arg14[%c0_99, %c0_100, %c0_101] : memref<2x1x32xf32, #tpu.memory_space<vmem>>, vector<1x1x32xf32>
    %224 = vector.shape_cast %223 : vector<1x1x32xf32> to vector<1x32xf32>
    %cst_102 = arith.constant dense<0.000000e+00> : vector<16xf32>
    %225 = vector.multi_reduction <add>, %220, %cst_102 [1] : vector<16x32xf32> to vector<16xf32>
    %226 = vector.shape_cast %225 : vector<16xf32> to vector<16x1xf32>
    %cst_103 = arith.constant 3.200000e+01 : f32
    %227 = vector.broadcast %cst_103 : f32 to vector<16x1xf32>
    %228 = arith.divf %226, %227 : vector<16x1xf32>
    %229 = vector.broadcast %228 : vector<16x1xf32> to vector<16x32xf32>
    %230 = arith.subf %220, %229 : vector<16x32xf32>
    %231 = arith.mulf %230, %230 : vector<16x32xf32>
    %cst_104 = arith.constant dense<0.000000e+00> : vector<16xf32>
    %232 = vector.multi_reduction <add>, %231, %cst_104 [1] : vector<16x32xf32> to vector<16xf32>
    %233 = vector.shape_cast %232 : vector<16xf32> to vector<16x1xf32>
    %cst_105 = arith.constant 3.200000e+01 : f32
    %234 = vector.broadcast %cst_105 : f32 to vector<16x1xf32>
    %235 = arith.divf %233, %234 : vector<16x1xf32>
    %236 = vector.broadcast %228 : vector<16x1xf32> to vector<16x32xf32>
    %237 = arith.subf %220, %236 : vector<16x32xf32>
    %cst_106 = arith.constant 9.99999974E-6 : f32
    %238 = vector.broadcast %cst_106 : f32 to vector<16x1xf32>
    %239 = arith.addf %235, %238 : vector<16x1xf32>
    %240 = math.rsqrt %239 : vector<16x1xf32>
    %241 = vector.broadcast %240 : vector<16x1xf32> to vector<16x32xf32>
    %242 = arith.mulf %237, %241 : vector<16x32xf32>
    %243 = vector.broadcast %222 : vector<1x32xf32> to vector<16x32xf32>
    %244 = arith.mulf %242, %243 : vector<16x32xf32>
    %245 = vector.broadcast %224 : vector<1x32xf32> to vector<16x32xf32>
    %246 = arith.addf %244, %245 : vector<16x32xf32>
    %c1 = arith.constant 1 : index
    %c0_107 = arith.constant 0 : index
    %c0_108 = arith.constant 0 : index
    %247 = vector.load %arg3[%c1, %c0_107, %c0_108] : memref<2x32x96xf32, #tpu.memory_space<vmem>>, vector<1x32x96xf32>
    %248 = vector.shape_cast %247 : vector<1x32x96xf32> to vector<32x96xf32>
    %cst_109 = arith.constant dense<0.000000e+00> : vector<16x96xf32>
    %249 = tpu.matmul %246, %248, %cst_109 {dimension_numbers = #tpu.dot_dimension_numbers<[1], [0], [0], [1], [0, 0, 1, 1], [], []>} : vector<16x32xf32>, vector<32x96xf32>, vector<16x96xf32> -> vector<16x96xf32>
    %c1_110 = arith.constant 1 : index
    %c0_111 = arith.constant 0 : index
    %c0_112 = arith.constant 0 : index
    %250 = vector.load %arg4[%c1_110, %c0_111, %c0_112] : memref<2x1x96xf32, #tpu.memory_space<vmem>>, vector<1x1x96xf32>
    %251 = vector.shape_cast %250 : vector<1x1x96xf32> to vector<1x96xf32>
    %252 = vector.broadcast %251 : vector<1x96xf32> to vector<16x96xf32>
    %253 = arith.addf %249, %252 : vector<16x96xf32>
    %cst_113 = arith.constant 0.000000e+00 : f32
    %254 = vector.broadcast %cst_113 : f32 to vector<16x32xf32>
    %c1_114 = arith.constant 1 : index
    %c0_115 = arith.constant 0 : index
    %c0_116 = arith.constant 0 : index
    %255 = vector.load %arg6[%c1_114, %c0_115, %c0_116] : memref<2x1x32xf32, #tpu.memory_space<vmem>>, vector<1x1x32xf32>
    %256 = vector.shape_cast %255 : vector<1x1x32xf32> to vector<1x32xf32>
    %257 = vector.broadcast %256 : vector<1x32xf32> to vector<16x32xf32>
    %258 = arith.addf %254, %257 : vector<16x32xf32>
    %259 = vector.extract_strided_slice %253 {offsets = [0, 0], sizes = [8, 8], strides = [1, 1]} : vector<16x96xf32> to vector<8x8xf32>
    %260 = vector.extract_strided_slice %253 {offsets = [0, 32], sizes = [8, 8], strides = [1, 1]} : vector<16x96xf32> to vector<8x8xf32>
    %261 = vector.extract_strided_slice %253 {offsets = [0, 64], sizes = [8, 8], strides = [1, 1]} : vector<16x96xf32> to vector<8x8xf32>
    %cst_117 = arith.constant dense<0.000000e+00> : vector<8x8xf32>
    %262 = tpu.matmul %259, %260, %cst_117 {dimension_numbers = #tpu.dot_dimension_numbers<[1], [1], [0], [0], [0, 0, 1, 0], [], []>} : vector<8x8xf32>, vector<8x8xf32>, vector<8x8xf32> -> vector<8x8xf32>
    %cst_118 = arith.constant 0.353553385 : f32
    %263 = vector.broadcast %cst_118 : f32 to vector<8x8xf32>
    %264 = arith.mulf %262, %263 : vector<8x8xf32>
    %cst_119 = arith.constant dense<0xFF800000> : vector<8xf32>
    %265 = vector.multi_reduction <maximumf>, %264, %cst_119 [1] : vector<8x8xf32> to vector<8xf32>
    %266 = vector.shape_cast %265 : vector<8xf32> to vector<8x1xf32>
    %267 = vector.broadcast %266 : vector<8x1xf32> to vector<8x8xf32>
    %268 = arith.subf %264, %267 : vector<8x8xf32>
    %269 = math.exp %268 : vector<8x8xf32>
    %cst_120 = arith.constant dense<0.000000e+00> : vector<8xf32>
    %270 = vector.multi_reduction <add>, %269, %cst_120 [1] : vector<8x8xf32> to vector<8xf32>
    %271 = vector.shape_cast %270 : vector<8xf32> to vector<8x1xf32>
    %272 = tpu.reciprocal %271 {approx = true} : vector<8x1xf32> -> vector<8x1xf32>
    %273 = vector.broadcast %272 : vector<8x1xf32> to vector<8x8xf32>
    %274 = arith.mulf %269, %273 : vector<8x8xf32>
    %cst_121 = arith.constant dense<0.000000e+00> : vector<8x8xf32>
    %275 = tpu.matmul %274, %261, %cst_121 {dimension_numbers = #tpu.dot_dimension_numbers<[1], [0], [0], [1], [0, 0, 1, 1], [], []>} : vector<8x8xf32>, vector<8x8xf32>, vector<8x8xf32> -> vector<8x8xf32>
    %276 = vector.extract_strided_slice %253 {offsets = [8, 0], sizes = [8, 8], strides = [1, 1]} : vector<16x96xf32> to vector<8x8xf32>
    %277 = vector.extract_strided_slice %253 {offsets = [8, 32], sizes = [8, 8], strides = [1, 1]} : vector<16x96xf32> to vector<8x8xf32>
    %278 = vector.extract_strided_slice %253 {offsets = [8, 64], sizes = [8, 8], strides = [1, 1]} : vector<16x96xf32> to vector<8x8xf32>
    %cst_122 = arith.constant dense<0.000000e+00> : vector<8x8xf32>
    %279 = tpu.matmul %276, %277, %cst_122 {dimension_numbers = #tpu.dot_dimension_numbers<[1], [1], [0], [0], [0, 0, 1, 0], [], []>} : vector<8x8xf32>, vector<8x8xf32>, vector<8x8xf32> -> vector<8x8xf32>
    %cst_123 = arith.constant 0.353553385 : f32
    %280 = vector.broadcast %cst_123 : f32 to vector<8x8xf32>
    %281 = arith.mulf %279, %280 : vector<8x8xf32>
    %cst_124 = arith.constant dense<0xFF800000> : vector<8xf32>
    %282 = vector.multi_reduction <maximumf>, %281, %cst_124 [1] : vector<8x8xf32> to vector<8xf32>
    %283 = vector.shape_cast %282 : vector<8xf32> to vector<8x1xf32>
    %284 = vector.broadcast %283 : vector<8x1xf32> to vector<8x8xf32>
    %285 = arith.subf %281, %284 : vector<8x8xf32>
    %286 = math.exp %285 : vector<8x8xf32>
    %cst_125 = arith.constant dense<0.000000e+00> : vector<8xf32>
    %287 = vector.multi_reduction <add>, %286, %cst_125 [1] : vector<8x8xf32> to vector<8xf32>
    %288 = vector.shape_cast %287 : vector<8xf32> to vector<8x1xf32>
    %289 = tpu.reciprocal %288 {approx = true} : vector<8x1xf32> -> vector<8x1xf32>
    %290 = vector.broadcast %289 : vector<8x1xf32> to vector<8x8xf32>
    %291 = arith.mulf %286, %290 : vector<8x8xf32>
    %cst_126 = arith.constant dense<0.000000e+00> : vector<8x8xf32>
    %292 = tpu.matmul %291, %278, %cst_126 {dimension_numbers = #tpu.dot_dimension_numbers<[1], [0], [0], [1], [0, 0, 1, 1], [], []>} : vector<8x8xf32>, vector<8x8xf32>, vector<8x8xf32> -> vector<8x8xf32>
    %293 = tpu.concatenate %275, %292 in 0 : vector<8x8xf32>, vector<8x8xf32> -> vector<16x8xf32>
    %c1_127 = arith.constant 1 : index
    %c0_128 = arith.constant 0 : index
    %c0_129 = arith.constant 0 : index
    %294 = vector.load %arg5[%c1_127, %c0_128, %c0_129] : memref<2x32x32xf32, #tpu.memory_space<vmem>>, vector<1x8x32xf32>
    %295 = vector.shape_cast %294 : vector<1x8x32xf32> to vector<8x32xf32>
    %cst_130 = arith.constant dense<0.000000e+00> : vector<16x32xf32>
    %296 = tpu.matmul %293, %295, %cst_130 {dimension_numbers = #tpu.dot_dimension_numbers<[1], [0], [0], [1], [0, 0, 1, 1], [], []>} : vector<16x8xf32>, vector<8x32xf32>, vector<16x32xf32> -> vector<16x32xf32>
    %297 = arith.addf %258, %296 : vector<16x32xf32>
    %298 = vector.extract_strided_slice %253 {offsets = [0, 8], sizes = [8, 8], strides = [1, 1]} : vector<16x96xf32> to vector<8x8xf32>
    %299 = vector.extract_strided_slice %253 {offsets = [0, 40], sizes = [8, 8], strides = [1, 1]} : vector<16x96xf32> to vector<8x8xf32>
    %300 = vector.extract_strided_slice %253 {offsets = [0, 72], sizes = [8, 8], strides = [1, 1]} : vector<16x96xf32> to vector<8x8xf32>
    %cst_131 = arith.constant dense<0.000000e+00> : vector<8x8xf32>
    %301 = tpu.matmul %298, %299, %cst_131 {dimension_numbers = #tpu.dot_dimension_numbers<[1], [1], [0], [0], [0, 0, 1, 0], [], []>} : vector<8x8xf32>, vector<8x8xf32>, vector<8x8xf32> -> vector<8x8xf32>
    %cst_132 = arith.constant 0.353553385 : f32
    %302 = vector.broadcast %cst_132 : f32 to vector<8x8xf32>
    %303 = arith.mulf %301, %302 : vector<8x8xf32>
    %cst_133 = arith.constant dense<0xFF800000> : vector<8xf32>
    %304 = vector.multi_reduction <maximumf>, %303, %cst_133 [1] : vector<8x8xf32> to vector<8xf32>
    %305 = vector.shape_cast %304 : vector<8xf32> to vector<8x1xf32>
    %306 = vector.broadcast %305 : vector<8x1xf32> to vector<8x8xf32>
    %307 = arith.subf %303, %306 : vector<8x8xf32>
    %308 = math.exp %307 : vector<8x8xf32>
    %cst_134 = arith.constant dense<0.000000e+00> : vector<8xf32>
    %309 = vector.multi_reduction <add>, %308, %cst_134 [1] : vector<8x8xf32> to vector<8xf32>
    %310 = vector.shape_cast %309 : vector<8xf32> to vector<8x1xf32>
    %311 = tpu.reciprocal %310 {approx = true} : vector<8x1xf32> -> vector<8x1xf32>
    %312 = vector.broadcast %311 : vector<8x1xf32> to vector<8x8xf32>
    %313 = arith.mulf %308, %312 : vector<8x8xf32>
    %cst_135 = arith.constant dense<0.000000e+00> : vector<8x8xf32>
    %314 = tpu.matmul %313, %300, %cst_135 {dimension_numbers = #tpu.dot_dimension_numbers<[1], [0], [0], [1], [0, 0, 1, 1], [], []>} : vector<8x8xf32>, vector<8x8xf32>, vector<8x8xf32> -> vector<8x8xf32>
    %315 = vector.extract_strided_slice %253 {offsets = [8, 8], sizes = [8, 8], strides = [1, 1]} : vector<16x96xf32> to vector<8x8xf32>
    %316 = vector.extract_strided_slice %253 {offsets = [8, 40], sizes = [8, 8], strides = [1, 1]} : vector<16x96xf32> to vector<8x8xf32>
    %317 = vector.extract_strided_slice %253 {offsets = [8, 72], sizes = [8, 8], strides = [1, 1]} : vector<16x96xf32> to vector<8x8xf32>
    %cst_136 = arith.constant dense<0.000000e+00> : vector<8x8xf32>
    %318 = tpu.matmul %315, %316, %cst_136 {dimension_numbers = #tpu.dot_dimension_numbers<[1], [1], [0], [0], [0, 0, 1, 0], [], []>} : vector<8x8xf32>, vector<8x8xf32>, vector<8x8xf32> -> vector<8x8xf32>
    %cst_137 = arith.constant 0.353553385 : f32
    %319 = vector.broadcast %cst_137 : f32 to vector<8x8xf32>
    %320 = arith.mulf %318, %319 : vector<8x8xf32>
    %cst_138 = arith.constant dense<0xFF800000> : vector<8xf32>
    %321 = vector.multi_reduction <maximumf>, %320, %cst_138 [1] : vector<8x8xf32> to vector<8xf32>
    %322 = vector.shape_cast %321 : vector<8xf32> to vector<8x1xf32>
    %323 = vector.broadcast %322 : vector<8x1xf32> to vector<8x8xf32>
    %324 = arith.subf %320, %323 : vector<8x8xf32>
    %325 = math.exp %324 : vector<8x8xf32>
    %cst_139 = arith.constant dense<0.000000e+00> : vector<8xf32>
    %326 = vector.multi_reduction <add>, %325, %cst_139 [1] : vector<8x8xf32> to vector<8xf32>
    %327 = vector.shape_cast %326 : vector<8xf32> to vector<8x1xf32>
    %328 = tpu.reciprocal %327 {approx = true} : vector<8x1xf32> -> vector<8x1xf32>
    %329 = vector.broadcast %328 : vector<8x1xf32> to vector<8x8xf32>
    %330 = arith.mulf %325, %329 : vector<8x8xf32>
    %cst_140 = arith.constant dense<0.000000e+00> : vector<8x8xf32>
    %331 = tpu.matmul %330, %317, %cst_140 {dimension_numbers = #tpu.dot_dimension_numbers<[1], [0], [0], [1], [0, 0, 1, 1], [], []>} : vector<8x8xf32>, vector<8x8xf32>, vector<8x8xf32> -> vector<8x8xf32>
    %332 = tpu.concatenate %314, %331 in 0 : vector<8x8xf32>, vector<8x8xf32> -> vector<16x8xf32>
    %c1_141 = arith.constant 1 : index
    %c8_142 = arith.constant 8 : index
    %c0_143 = arith.constant 0 : index
    %333 = vector.load %arg5[%c1_141, %c8_142, %c0_143] : memref<2x32x32xf32, #tpu.memory_space<vmem>>, vector<1x8x32xf32>
    %334 = vector.shape_cast %333 : vector<1x8x32xf32> to vector<8x32xf32>
    %cst_144 = arith.constant dense<0.000000e+00> : vector<16x32xf32>
    %335 = tpu.matmul %332, %334, %cst_144 {dimension_numbers = #tpu.dot_dimension_numbers<[1], [0], [0], [1], [0, 0, 1, 1], [], []>} : vector<16x8xf32>, vector<8x32xf32>, vector<16x32xf32> -> vector<16x32xf32>
    %336 = arith.addf %297, %335 : vector<16x32xf32>
    %337 = vector.extract_strided_slice %253 {offsets = [0, 16], sizes = [8, 8], strides = [1, 1]} : vector<16x96xf32> to vector<8x8xf32>
    %338 = vector.extract_strided_slice %253 {offsets = [0, 48], sizes = [8, 8], strides = [1, 1]} : vector<16x96xf32> to vector<8x8xf32>
    %339 = vector.extract_strided_slice %253 {offsets = [0, 80], sizes = [8, 8], strides = [1, 1]} : vector<16x96xf32> to vector<8x8xf32>
    %cst_145 = arith.constant dense<0.000000e+00> : vector<8x8xf32>
    %340 = tpu.matmul %337, %338, %cst_145 {dimension_numbers = #tpu.dot_dimension_numbers<[1], [1], [0], [0], [0, 0, 1, 0], [], []>} : vector<8x8xf32>, vector<8x8xf32>, vector<8x8xf32> -> vector<8x8xf32>
    %cst_146 = arith.constant 0.353553385 : f32
    %341 = vector.broadcast %cst_146 : f32 to vector<8x8xf32>
    %342 = arith.mulf %340, %341 : vector<8x8xf32>
    %cst_147 = arith.constant dense<0xFF800000> : vector<8xf32>
    %343 = vector.multi_reduction <maximumf>, %342, %cst_147 [1] : vector<8x8xf32> to vector<8xf32>
    %344 = vector.shape_cast %343 : vector<8xf32> to vector<8x1xf32>
    %345 = vector.broadcast %344 : vector<8x1xf32> to vector<8x8xf32>
    %346 = arith.subf %342, %345 : vector<8x8xf32>
    %347 = math.exp %346 : vector<8x8xf32>
    %cst_148 = arith.constant dense<0.000000e+00> : vector<8xf32>
    %348 = vector.multi_reduction <add>, %347, %cst_148 [1] : vector<8x8xf32> to vector<8xf32>
    %349 = vector.shape_cast %348 : vector<8xf32> to vector<8x1xf32>
    %350 = tpu.reciprocal %349 {approx = true} : vector<8x1xf32> -> vector<8x1xf32>
    %351 = vector.broadcast %350 : vector<8x1xf32> to vector<8x8xf32>
    %352 = arith.mulf %347, %351 : vector<8x8xf32>
    %cst_149 = arith.constant dense<0.000000e+00> : vector<8x8xf32>
    %353 = tpu.matmul %352, %339, %cst_149 {dimension_numbers = #tpu.dot_dimension_numbers<[1], [0], [0], [1], [0, 0, 1, 1], [], []>} : vector<8x8xf32>, vector<8x8xf32>, vector<8x8xf32> -> vector<8x8xf32>
    %354 = vector.extract_strided_slice %253 {offsets = [8, 16], sizes = [8, 8], strides = [1, 1]} : vector<16x96xf32> to vector<8x8xf32>
    %355 = vector.extract_strided_slice %253 {offsets = [8, 48], sizes = [8, 8], strides = [1, 1]} : vector<16x96xf32> to vector<8x8xf32>
    %356 = vector.extract_strided_slice %253 {offsets = [8, 80], sizes = [8, 8], strides = [1, 1]} : vector<16x96xf32> to vector<8x8xf32>
    %cst_150 = arith.constant dense<0.000000e+00> : vector<8x8xf32>
    %357 = tpu.matmul %354, %355, %cst_150 {dimension_numbers = #tpu.dot_dimension_numbers<[1], [1], [0], [0], [0, 0, 1, 0], [], []>} : vector<8x8xf32>, vector<8x8xf32>, vector<8x8xf32> -> vector<8x8xf32>
    %cst_151 = arith.constant 0.353553385 : f32
    %358 = vector.broadcast %cst_151 : f32 to vector<8x8xf32>
    %359 = arith.mulf %357, %358 : vector<8x8xf32>
    %cst_152 = arith.constant dense<0xFF800000> : vector<8xf32>
    %360 = vector.multi_reduction <maximumf>, %359, %cst_152 [1] : vector<8x8xf32> to vector<8xf32>
    %361 = vector.shape_cast %360 : vector<8xf32> to vector<8x1xf32>
    %362 = vector.broadcast %361 : vector<8x1xf32> to vector<8x8xf32>
    %363 = arith.subf %359, %362 : vector<8x8xf32>
    %364 = math.exp %363 : vector<8x8xf32>
    %cst_153 = arith.constant dense<0.000000e+00> : vector<8xf32>
    %365 = vector.multi_reduction <add>, %364, %cst_153 [1] : vector<8x8xf32> to vector<8xf32>
    %366 = vector.shape_cast %365 : vector<8xf32> to vector<8x1xf32>
    %367 = tpu.reciprocal %366 {approx = true} : vector<8x1xf32> -> vector<8x1xf32>
    %368 = vector.broadcast %367 : vector<8x1xf32> to vector<8x8xf32>
    %369 = arith.mulf %364, %368 : vector<8x8xf32>
    %cst_154 = arith.constant dense<0.000000e+00> : vector<8x8xf32>
    %370 = tpu.matmul %369, %356, %cst_154 {dimension_numbers = #tpu.dot_dimension_numbers<[1], [0], [0], [1], [0, 0, 1, 1], [], []>} : vector<8x8xf32>, vector<8x8xf32>, vector<8x8xf32> -> vector<8x8xf32>
    %371 = tpu.concatenate %353, %370 in 0 : vector<8x8xf32>, vector<8x8xf32> -> vector<16x8xf32>
    %c1_155 = arith.constant 1 : index
    %c16_156 = arith.constant 16 : index
    %c0_157 = arith.constant 0 : index
    %372 = vector.load %arg5[%c1_155, %c16_156, %c0_157] : memref<2x32x32xf32, #tpu.memory_space<vmem>>, vector<1x8x32xf32>
    %373 = vector.shape_cast %372 : vector<1x8x32xf32> to vector<8x32xf32>
    %cst_158 = arith.constant dense<0.000000e+00> : vector<16x32xf32>
    %374 = tpu.matmul %371, %373, %cst_158 {dimension_numbers = #tpu.dot_dimension_numbers<[1], [0], [0], [1], [0, 0, 1, 1], [], []>} : vector<16x8xf32>, vector<8x32xf32>, vector<16x32xf32> -> vector<16x32xf32>
    %375 = arith.addf %336, %374 : vector<16x32xf32>
    %376 = vector.extract_strided_slice %253 {offsets = [0, 24], sizes = [8, 8], strides = [1, 1]} : vector<16x96xf32> to vector<8x8xf32>
    %377 = vector.extract_strided_slice %253 {offsets = [0, 56], sizes = [8, 8], strides = [1, 1]} : vector<16x96xf32> to vector<8x8xf32>
    %378 = vector.extract_strided_slice %253 {offsets = [0, 88], sizes = [8, 8], strides = [1, 1]} : vector<16x96xf32> to vector<8x8xf32>
    %cst_159 = arith.constant dense<0.000000e+00> : vector<8x8xf32>
    %379 = tpu.matmul %376, %377, %cst_159 {dimension_numbers = #tpu.dot_dimension_numbers<[1], [1], [0], [0], [0, 0, 1, 0], [], []>} : vector<8x8xf32>, vector<8x8xf32>, vector<8x8xf32> -> vector<8x8xf32>
    %cst_160 = arith.constant 0.353553385 : f32
    %380 = vector.broadcast %cst_160 : f32 to vector<8x8xf32>
    %381 = arith.mulf %379, %380 : vector<8x8xf32>
    %cst_161 = arith.constant dense<0xFF800000> : vector<8xf32>
    %382 = vector.multi_reduction <maximumf>, %381, %cst_161 [1] : vector<8x8xf32> to vector<8xf32>
    %383 = vector.shape_cast %382 : vector<8xf32> to vector<8x1xf32>
    %384 = vector.broadcast %383 : vector<8x1xf32> to vector<8x8xf32>
    %385 = arith.subf %381, %384 : vector<8x8xf32>
    %386 = math.exp %385 : vector<8x8xf32>
    %cst_162 = arith.constant dense<0.000000e+00> : vector<8xf32>
    %387 = vector.multi_reduction <add>, %386, %cst_162 [1] : vector<8x8xf32> to vector<8xf32>
    %388 = vector.shape_cast %387 : vector<8xf32> to vector<8x1xf32>
    %389 = tpu.reciprocal %388 {approx = true} : vector<8x1xf32> -> vector<8x1xf32>
    %390 = vector.broadcast %389 : vector<8x1xf32> to vector<8x8xf32>
    %391 = arith.mulf %386, %390 : vector<8x8xf32>
    %cst_163 = arith.constant dense<0.000000e+00> : vector<8x8xf32>
    %392 = tpu.matmul %391, %378, %cst_163 {dimension_numbers = #tpu.dot_dimension_numbers<[1], [0], [0], [1], [0, 0, 1, 1], [], []>} : vector<8x8xf32>, vector<8x8xf32>, vector<8x8xf32> -> vector<8x8xf32>
    %393 = vector.extract_strided_slice %253 {offsets = [8, 24], sizes = [8, 8], strides = [1, 1]} : vector<16x96xf32> to vector<8x8xf32>
    %394 = vector.extract_strided_slice %253 {offsets = [8, 56], sizes = [8, 8], strides = [1, 1]} : vector<16x96xf32> to vector<8x8xf32>
    %395 = vector.extract_strided_slice %253 {offsets = [8, 88], sizes = [8, 8], strides = [1, 1]} : vector<16x96xf32> to vector<8x8xf32>
    %cst_164 = arith.constant dense<0.000000e+00> : vector<8x8xf32>
    %396 = tpu.matmul %393, %394, %cst_164 {dimension_numbers = #tpu.dot_dimension_numbers<[1], [1], [0], [0], [0, 0, 1, 0], [], []>} : vector<8x8xf32>, vector<8x8xf32>, vector<8x8xf32> -> vector<8x8xf32>
    %cst_165 = arith.constant 0.353553385 : f32
    %397 = vector.broadcast %cst_165 : f32 to vector<8x8xf32>
    %398 = arith.mulf %396, %397 : vector<8x8xf32>
    %cst_166 = arith.constant dense<0xFF800000> : vector<8xf32>
    %399 = vector.multi_reduction <maximumf>, %398, %cst_166 [1] : vector<8x8xf32> to vector<8xf32>
    %400 = vector.shape_cast %399 : vector<8xf32> to vector<8x1xf32>
    %401 = vector.broadcast %400 : vector<8x1xf32> to vector<8x8xf32>
    %402 = arith.subf %398, %401 : vector<8x8xf32>
    %403 = math.exp %402 : vector<8x8xf32>
    %cst_167 = arith.constant dense<0.000000e+00> : vector<8xf32>
    %404 = vector.multi_reduction <add>, %403, %cst_167 [1] : vector<8x8xf32> to vector<8xf32>
    %405 = vector.shape_cast %404 : vector<8xf32> to vector<8x1xf32>
    %406 = tpu.reciprocal %405 {approx = true} : vector<8x1xf32> -> vector<8x1xf32>
    %407 = vector.broadcast %406 : vector<8x1xf32> to vector<8x8xf32>
    %408 = arith.mulf %403, %407 : vector<8x8xf32>
    %cst_168 = arith.constant dense<0.000000e+00> : vector<8x8xf32>
    %409 = tpu.matmul %408, %395, %cst_168 {dimension_numbers = #tpu.dot_dimension_numbers<[1], [0], [0], [1], [0, 0, 1, 1], [], []>} : vector<8x8xf32>, vector<8x8xf32>, vector<8x8xf32> -> vector<8x8xf32>
    %410 = tpu.concatenate %392, %409 in 0 : vector<8x8xf32>, vector<8x8xf32> -> vector<16x8xf32>
    %c1_169 = arith.constant 1 : index
    %c24_170 = arith.constant 24 : index
    %c0_171 = arith.constant 0 : index
    %411 = vector.load %arg5[%c1_169, %c24_170, %c0_171] : memref<2x32x32xf32, #tpu.memory_space<vmem>>, vector<1x8x32xf32>
    %412 = vector.shape_cast %411 : vector<1x8x32xf32> to vector<8x32xf32>
    %cst_172 = arith.constant dense<0.000000e+00> : vector<16x32xf32>
    %413 = tpu.matmul %410, %412, %cst_172 {dimension_numbers = #tpu.dot_dimension_numbers<[1], [0], [0], [1], [0, 0, 1, 1], [], []>} : vector<16x8xf32>, vector<8x32xf32>, vector<16x32xf32> -> vector<16x32xf32>
    %414 = arith.addf %375, %413 : vector<16x32xf32>
    %415 = arith.addf %246, %414 : vector<16x32xf32>
    %c1_173 = arith.constant 1 : index
    %c0_174 = arith.constant 0 : index
    %c0_175 = arith.constant 0 : index
    %416 = vector.load %arg7[%c1_173, %c0_174, %c0_175] : memref<2x1x32xf32, #tpu.memory_space<vmem>>, vector<1x1x32xf32>
    %417 = vector.shape_cast %416 : vector<1x1x32xf32> to vector<1x32xf32>
    %c1_176 = arith.constant 1 : index
    %c0_177 = arith.constant 0 : index
    %c0_178 = arith.constant 0 : index
    %418 = vector.load %arg8[%c1_176, %c0_177, %c0_178] : memref<2x1x32xf32, #tpu.memory_space<vmem>>, vector<1x1x32xf32>
    %419 = vector.shape_cast %418 : vector<1x1x32xf32> to vector<1x32xf32>
    %cst_179 = arith.constant dense<0.000000e+00> : vector<16xf32>
    %420 = vector.multi_reduction <add>, %415, %cst_179 [1] : vector<16x32xf32> to vector<16xf32>
    %421 = vector.shape_cast %420 : vector<16xf32> to vector<16x1xf32>
    %cst_180 = arith.constant 3.200000e+01 : f32
    %422 = vector.broadcast %cst_180 : f32 to vector<16x1xf32>
    %423 = arith.divf %421, %422 : vector<16x1xf32>
    %424 = vector.broadcast %423 : vector<16x1xf32> to vector<16x32xf32>
    %425 = arith.subf %415, %424 : vector<16x32xf32>
    %426 = arith.mulf %425, %425 : vector<16x32xf32>
    %cst_181 = arith.constant dense<0.000000e+00> : vector<16xf32>
    %427 = vector.multi_reduction <add>, %426, %cst_181 [1] : vector<16x32xf32> to vector<16xf32>
    %428 = vector.shape_cast %427 : vector<16xf32> to vector<16x1xf32>
    %cst_182 = arith.constant 3.200000e+01 : f32
    %429 = vector.broadcast %cst_182 : f32 to vector<16x1xf32>
    %430 = arith.divf %428, %429 : vector<16x1xf32>
    %431 = vector.broadcast %423 : vector<16x1xf32> to vector<16x32xf32>
    %432 = arith.subf %415, %431 : vector<16x32xf32>
    %cst_183 = arith.constant 9.99999974E-6 : f32
    %433 = vector.broadcast %cst_183 : f32 to vector<16x1xf32>
    %434 = arith.addf %430, %433 : vector<16x1xf32>
    %435 = math.rsqrt %434 : vector<16x1xf32>
    %436 = vector.broadcast %435 : vector<16x1xf32> to vector<16x32xf32>
    %437 = arith.mulf %432, %436 : vector<16x32xf32>
    %438 = vector.broadcast %417 : vector<1x32xf32> to vector<16x32xf32>
    %439 = arith.mulf %437, %438 : vector<16x32xf32>
    %440 = vector.broadcast %419 : vector<1x32xf32> to vector<16x32xf32>
    %441 = arith.addf %439, %440 : vector<16x32xf32>
    %cst_184 = arith.constant 0.000000e+00 : f32
    %442 = vector.broadcast %cst_184 : f32 to vector<16x32xf32>
    %c1_185 = arith.constant 1 : index
    %c0_186 = arith.constant 0 : index
    %c0_187 = arith.constant 0 : index
    %443 = vector.load %arg12[%c1_185, %c0_186, %c0_187] : memref<2x1x32xf32, #tpu.memory_space<vmem>>, vector<1x1x32xf32>
    %444 = vector.shape_cast %443 : vector<1x1x32xf32> to vector<1x32xf32>
    %445 = vector.broadcast %444 : vector<1x32xf32> to vector<16x32xf32>
    %446 = arith.addf %442, %445 : vector<16x32xf32>
    %c1_188 = arith.constant 1 : index
    %c0_189 = arith.constant 0 : index
    %c0_190 = arith.constant 0 : index
    %447 = vector.load %arg9[%c1_188, %c0_189, %c0_190] : memref<2x32x2048xbf16, #tpu.memory_space<vmem>>, vector<1x32x2048xbf16>
    %448 = vector.shape_cast %447 : vector<1x32x2048xbf16> to vector<32x2048xbf16>
    %449 = arith.extf %448 : vector<32x2048xbf16> to vector<32x2048xf32>
    %cst_191 = arith.constant dense<0.000000e+00> : vector<16x2048xf32>
    %450 = tpu.matmul %441, %449, %cst_191 {dimension_numbers = #tpu.dot_dimension_numbers<[1], [0], [0], [1], [0, 0, 1, 1], [], []>} : vector<16x32xf32>, vector<32x2048xf32>, vector<16x2048xf32> -> vector<16x2048xf32>
    %c1_192 = arith.constant 1 : index
    %c0_193 = arith.constant 0 : index
    %c0_194 = arith.constant 0 : index
    %451 = vector.load %arg10[%c1_192, %c0_193, %c0_194] : memref<2x1x2048xf32, #tpu.memory_space<vmem>>, vector<1x1x2048xf32>
    %452 = vector.shape_cast %451 : vector<1x1x2048xf32> to vector<1x2048xf32>
    %453 = vector.broadcast %452 : vector<1x2048xf32> to vector<16x2048xf32>
    %454 = arith.addf %450, %453 : vector<16x2048xf32>
    %cst_195 = arith.constant 0.000000e+00 : f32
    %455 = vector.broadcast %cst_195 : f32 to vector<16x2048xf32>
    %456 = arith.maximumf %454, %455 : vector<16x2048xf32>
    %c1_196 = arith.constant 1 : index
    %c0_197 = arith.constant 0 : index
    %c0_198 = arith.constant 0 : index
    %457 = vector.load %arg11[%c1_196, %c0_197, %c0_198] : memref<2x2048x32xbf16, #tpu.memory_space<vmem>>, vector<1x2048x32xbf16>
    %458 = vector.shape_cast %457 : vector<1x2048x32xbf16> to vector<2048x32xbf16>
    %459 = arith.extf %458 : vector<2048x32xbf16> to vector<2048x32xf32>
    %cst_199 = arith.constant dense<0.000000e+00> : vector<16x32xf32>
    %460 = tpu.matmul %456, %459, %cst_199 {dimension_numbers = #tpu.dot_dimension_numbers<[1], [0], [0], [1], [0, 0, 1, 1], [], []>} : vector<16x2048xf32>, vector<2048x32xf32>, vector<16x32xf32> -> vector<16x32xf32>
    %461 = arith.addf %446, %460 : vector<16x32xf32>
    %462 = arith.addf %441, %461 : vector<16x32xf32>
    %c1_200 = arith.constant 1 : index
    %c0_201 = arith.constant 0 : index
    %c0_202 = arith.constant 0 : index
    %463 = vector.load %arg13[%c1_200, %c0_201, %c0_202] : memref<2x1x32xf32, #tpu.memory_space<vmem>>, vector<1x1x32xf32>
    %464 = vector.shape_cast %463 : vector<1x1x32xf32> to vector<1x32xf32>
    %c1_203 = arith.constant 1 : index
    %c0_204 = arith.constant 0 : index
    %c0_205 = arith.constant 0 : index
    %465 = vector.load %arg14[%c1_203, %c0_204, %c0_205] : memref<2x1x32xf32, #tpu.memory_space<vmem>>, vector<1x1x32xf32>
    %466 = vector.shape_cast %465 : vector<1x1x32xf32> to vector<1x32xf32>
    %cst_206 = arith.constant dense<0.000000e+00> : vector<16xf32>
    %467 = vector.multi_reduction <add>, %462, %cst_206 [1] : vector<16x32xf32> to vector<16xf32>
    %468 = vector.shape_cast %467 : vector<16xf32> to vector<16x1xf32>
    %cst_207 = arith.constant 3.200000e+01 : f32
    %469 = vector.broadcast %cst_207 : f32 to vector<16x1xf32>
    %470 = arith.divf %468, %469 : vector<16x1xf32>
    %471 = vector.broadcast %470 : vector<16x1xf32> to vector<16x32xf32>
    %472 = arith.subf %462, %471 : vector<16x32xf32>
    %473 = arith.mulf %472, %472 : vector<16x32xf32>
    %cst_208 = arith.constant dense<0.000000e+00> : vector<16xf32>
    %474 = vector.multi_reduction <add>, %473, %cst_208 [1] : vector<16x32xf32> to vector<16xf32>
    %475 = vector.shape_cast %474 : vector<16xf32> to vector<16x1xf32>
    %cst_209 = arith.constant 3.200000e+01 : f32
    %476 = vector.broadcast %cst_209 : f32 to vector<16x1xf32>
    %477 = arith.divf %475, %476 : vector<16x1xf32>
    %478 = vector.broadcast %470 : vector<16x1xf32> to vector<16x32xf32>
    %479 = arith.subf %462, %478 : vector<16x32xf32>
    %cst_210 = arith.constant 9.99999974E-6 : f32
    %480 = vector.broadcast %cst_210 : f32 to vector<16x1xf32>
    %481 = arith.addf %477, %480 : vector<16x1xf32>
    %482 = math.rsqrt %481 : vector<16x1xf32>
    %483 = vector.broadcast %482 : vector<16x1xf32> to vector<16x32xf32>
    %484 = arith.mulf %479, %483 : vector<16x32xf32>
    %485 = vector.broadcast %464 : vector<1x32xf32> to vector<16x32xf32>
    %486 = arith.mulf %484, %485 : vector<16x32xf32>
    %487 = vector.broadcast %466 : vector<1x32xf32> to vector<16x32xf32>
    %488 = arith.addf %486, %487 : vector<16x32xf32>
    %c0_211 = arith.constant 0 : index
    %c0_212 = arith.constant 0 : index
    %489 = vector.load %arg15[%c0_211, %c0_212] : memref<32x32xf32, #tpu.memory_space<vmem>>, vector<32x32xf32>
    %cst_213 = arith.constant dense<0.000000e+00> : vector<16x32xf32>
    %490 = tpu.matmul %488, %489, %cst_213 {dimension_numbers = #tpu.dot_dimension_numbers<[1], [0], [0], [1], [0, 0, 1, 1], [], []>} : vector<16x32xf32>, vector<32x32xf32>, vector<16x32xf32> -> vector<16x32xf32>
    %c0_214 = arith.constant 0 : index
    %c0_215 = arith.constant 0 : index
    %491 = vector.load %arg16[%c0_214, %c0_215] : memref<16x32xf32, #tpu.memory_space<vmem>>, vector<16x32xf32>
    %492 = arith.mulf %490, %491 : vector<16x32xf32>
    %c0_216 = arith.constant 0 : index
    %c0_217 = arith.constant 0 : index
    %493 = vector.load %arg17[%c0_216, %c0_217] : memref<2x16xf32, #tpu.memory_space<vmem>>, vector<2x16xf32>
    %cst_218 = arith.constant dense<0.000000e+00> : vector<2x32xf32>
    %494 = tpu.matmul %493, %492, %cst_218 {dimension_numbers = #tpu.dot_dimension_numbers<[1], [0], [0], [1], [0, 0, 1, 1], [], []>} : vector<2x16xf32>, vector<16x32xf32>, vector<2x32xf32> -> vector<2x32xf32>
    %c0_219 = arith.constant 0 : index
    %c0_220 = arith.constant 0 : index
    %495 = vector.load %arg18[%c0_219, %c0_220] : memref<32x4xf32, #tpu.memory_space<vmem>>, vector<32x4xf32>
    %cst_221 = arith.constant dense<0.000000e+00> : vector<2x4xf32>
    %496 = tpu.matmul %494, %495, %cst_221 {dimension_numbers = #tpu.dot_dimension_numbers<[1], [0], [0], [1], [0, 0, 1, 1], [], []>} : vector<2x32xf32>, vector<32x4xf32>, vector<2x4xf32> -> vector<2x4xf32>
    %c0_222 = arith.constant 0 : index
    %c0_223 = arith.constant 0 : index
    %497 = vector.load %arg19[%c0_222, %c0_223] : memref<1x4xf32, #tpu.memory_space<vmem>>, vector<1x4xf32>
    %498 = vector.broadcast %497 : vector<1x4xf32> to vector<2x4xf32>
    %499 = arith.addf %496, %498 : vector<2x4xf32>
    %c0_224 = arith.constant 0 : index
    %c0_225 = arith.constant 0 : index
    %500 = vector.load %arg20[%c0_224, %c0_225] : memref<2x4xf32, #tpu.memory_space<vmem>>, vector<2x4xf32>
    tpu.vector_store %arg20[%c0_224, %c0_225], %499 {strides = array<i32>} : memref<2x4xf32, #tpu.memory_space<vmem>>, vector<2x4xf32>,
    return
  }
}

</mosaic_0001>

<bundles_post_ra>
// kernel: transformer_qnet_forward.1
= control target key start
LH: loop header
LB: loop body
LE: loop exit
PB: predicated region body
PF: predicated region fallthrough
CT: control target
= control target key end

     0   :  { %s13589_s0 = inlined_call_operand.vmem [shape: f32[16,16], index: 0, kind: input, shape index: {}]   ;;  %s13590_s1 = inlined_call_operand.vmem [shape: f32[16,32], index: 1, kind: input, shape index: {}]   ;;  %s13591_s2 = inlined_call_operand.vmem [shape: f32[16,32], index: 2, kind: input, shape index: {}]   ;;  %s13592_s3 = inlined_call_operand.vmem [shape: f32[2,32,96], index: 3, kind: input, shape index: {}]   ;;  %s13593_s4 = inlined_call_operand.vmem [shape: f32[2,1,96], index: 4, kind: input, shape index: {}]   ;;  %s13594_s5 = inlined_call_operand.vmem [shape: f32[2,32,32], index: 5, kind: input, shape index: {}]   ;;  %s13595_s6 = inlined_call_operand.vmem [shape: f32[2,1,32], index: 6, kind: input, shape index: {}]   ;;  %s13596_s7 = inlined_call_operand.vmem [shape: f32[2,1,32], index: 7, kind: input, shape index: {}]   ;;  %s13597_s8 = inlined_call_operand.vmem [shape: f32[2,1,32], index: 8, kind: input, shape index: {}]   ;;  %s13598_s9 = inlined_call_operand.vmem [shape: bf16[2,32,2048], index: 9, kind: input, shape index: {}]   ;;  %s13599_s10 = inlined_call_operand.vmem [shape: f32[2,1,2048], index: 10, kind: input, shape index: {}]   ;;  %s13600_s11 = inlined_call_operand.vmem [shape: bf16[2,2048,32], index: 11, kind: input, shape index: {}]   ;;  %s13601_s12 = inlined_call_operand.vmem [shape: f32[2,1,32], index: 12, kind: input, shape index: {}]   ;;  %s13602_s13 = inlined_call_operand.vmem [shape: f32[2,1,32], index: 13, kind: input, shape index: {}]   ;;  %s13603_s14 = inlined_call_operand.vmem [shape: f32[2,1,32], index: 14, kind: input, shape index: {}]   ;;  %s13604_s15 = inlined_call_operand.vmem [shape: f32[32,32], index: 15, kind: input, shape index: {}]   ;;  %s13605_s16 = inlined_call_operand.vmem [shape: f32[16,32], index: 16, kind: input, shape index: {}]   ;;  %s13606_s17 = inlined_call_operand.vmem [shape: f32[2,16], index: 17, kind: input, shape index: {}]   ;;  %s13607_s18 = inlined_call_operand.vmem [shape: f32[32,4], index: 18, kind: input, shape index: {}]   ;;  %s13608_s19 = inlined_call_operand.vmem [shape: f32[1,4], index: 19, kind: input, shape index: {}]   ;;  %s13609_s20 = inlined_call_operand.hbm [shape: f32[2,4], index: 20, kind: output, shape index: {}]  }
   0x1   :  { %13631 = sst [smem:[#allocation5_spill]] %s13589_s0 }
   0x2   :  { %13632 = sst [smem:[#allocation6_spill]] %s13590_s1 }
   0x3   :  { %13633 = sst [smem:[#allocation7_spill]] %s13591_s2 }
   0x4   :  { %13634 = sst [smem:[#allocation8_spill]] %s13592_s3 }
   0x5   :  { %13635 = sst [smem:[#allocation9_spill]] %s13593_s4 }
   0x6   :  { %s13636_s23 = sld [smem:[#allocation6_spill]]  ;;  %s13637_s26 = sld [smem:[#allocation5_spill]]  ;;  %vm72_vm0 = vcmask 130048  }
   0x7   :  { %s13638_s4 = sld [smem:[#allocation8_spill]] }
   0xc   :  { %v68_v0 = vld [vmem:[%s13636_s23] sm:$0xff]  ;;  %v69_v1 = vld [vmem:[%s13636_s23 + $0x8] sm:$0xff] }
   0xd   :  { %v66_v2 = vld [vmem:[%s13637_s26] sm:$0xff]  ;;  %v10741_v3 = vpack.c.bf16 %v69_v1, %v68_v0  ;;  %v155_v5 = vld [vmem:[%s13638_s4 + $0x8] sm:$0xff] }
   0xe   :  { %10487 = vmatprep.mubr.msk.f32.mxu0 %vm72_vm0, %v66_v2  ;;  %v154_v4 = vld [vmem:[%s13638_s4] sm:$0xff] }
   0xf   :  { %v10745_v6 = vpack.c.bf16 %v155_v5, %v154_v4 }
  0x10   :  { %25 = vsyncpa [#allocation3], 0  ;;  %10742 = vmatprep.subr.bf16.mxu0 %v10741_v3  ;;  %v67_v7 = vld [vmem:[%s13637_s26 + $0x8] sm:$0xff]  ;;  %v156_v8 = vld [vmem:[%s13638_s4 + $0x10] sm:$0xff]  ;;  %s13639_s3 = sld [smem:[#allocation7_spill]]  ;;  %vm165_vm1 = vcmask 261120  }
  0x11   :  { %10744 = vmatpush3.bf16.msra.mxu0 %v10741_v3  ;;  %10746 = vmatprep.subr.bf16.mxu1 %v10745_v6  ;;  %v157_v9 = vld [vmem:[%s13638_s4 + $0x18] sm:$0xff]  ;;  %v11617_v17 = vmov 0.0   ;;  %vm11618_vm2 = vmmov 0   ;;  %s13640_s30 = sld [smem:[#allocation9_spill]]  ;;  %s11619_s0 = smov 96   ;;  %vm258_vm3 = vcmask 64512  }
  0x12   :  { %10748 = vmatpush3.bf16.msra.mxu1 %v10745_v6  ;;  %v10749_v10 = vpack.c.bf16 %v157_v9, %v156_v8  ;;  %10501 = vmatprep.subr.mxu0 %v11617_v17  ;;  %s11620_s21 = smov 64   ;;  %s11621_s1 = smov 88   ;;  %v586_v55 = vld [vmem:[%s13594_s5] sm:$0xff]  ;;  %vm8036_vm4 = vcmask 25600  }
  0x13   :  { %s13629_s22 = smov 120   ;;  %s13627_s2 = smov 56  }
  0x14   :  { %10488 = vmatmul.mubr.msk.f32.vlgmr.msra.gmra.mrb[0].mxu0 %vm72_vm0, %v67_v7  ;;  %10750 = vmatprep.subr.bf16.mxu1 %v10749_v10  ;;  %s13625_s25 = smov 80   ;;  %s13621_s28 = smov 48  }
  0x15   :  { %10503 = vmatprep.mubr.msk.f32.mxu0 %vm11618_vm2, %v11617_v17  ;;  %s13619_s29 = smov 72   ;;  %s13617_s23 = smov 104  }
  0x16   :  { %10752 = vmatpush3.bf16.msra.mxu1 %v10749_v10  ;;  %v70_v11 = vld [vmem:[%s13639_s3] sm:$0xff]  ;;  %v71_v12 = vld [vmem:[%s13639_s3 + $0x8] sm:$0xff]  ;;  %s13623_s3 = smov 112   ;;  %s13615_s27 = smov 40  }
  0x17   :  { %10511 = vmatprep.subr.mxu1 %v11617_v17  ;;  %v8054_v18 = vld [vmem:[%s13640_s30] ss:$0 sm:$0xff]  ;;  %s13645_s26 = smov 48  }
  0xe7   :  { %v10489_v13 = vpop.f32.mrb[0].mxu0 }
  0xe8   :  { %v145_v14 = vpop.f32.mrb[1].mxu0  ;;  %v11771_v16 = vadd.f32 %v10489_v13, %v71_v12 }
  0xe9   :  { %v11769_v15 = vadd.f32 %v145_v14, %v70_v11 }
  0xeb   :  { %10498 = vmatprep.mubr.msk.f32.mxu1 %vm165_vm1, %v11769_v15 }
  0xec   :  { %10499 = vmatmul.mubr.msk.f32.vlgmr.msra.gmra.mrb[0].mxu1 %vm165_vm1, %v11771_v16 }
  0xed   :  { %10513 = vmatprep.mubr.msk.f32.mxu1 %vm11618_vm2, %v11617_v17 }
 0x1bf   :  { %v10500_v19 = vpop.f32.mrb[0].mxu1 }
 0x1c0   :  { %v238_v20 = vpop.f32.mrb[1].mxu1  ;;  %v11790_v22 = vadd.f32 %v10500_v19, %v8054_v18 }
 0x1c1   :  { %v11786_v21 = vadd.f32 %v8054_v18, %v238_v20 }
 0x1c3   :  { %256 = vrot.lane.b32.xlu0 %v11786_v21, %s11619_s0 }
 0x1c7   :  { %422 = vrot.lane.b32.xlu0 %v11790_v22, %s11619_s0 }
 0x235   :  { %v257_v23 = vpop.permute.xlu0 %256 }
 0x236   :  { %10502 = vmatpush3.xpose.msk.msra.mxu0 %vm258_vm3, %v257_v23 }
 0x237   :  { %10506 = vmatprep.subr.mxu0 %v11617_v17 }
 0x239   :  { %10504 = vmatmul.mubr.msk.f32.vlgmr.msra.gmra.mrb[2].mxu0 %vm258_vm3, %v11786_v21  ;;  %v423_v24 = vpop.permute.xlu0 %422 }
 0x23a   :  { %10512 = vmatpush3.xpose.msk.msra.mxu1 %vm258_vm3, %v423_v24  ;;  %10508 = vmatprep.mubr.msk.f32.mxu0 %vm11618_vm2, %v11617_v17 }
 0x23b   :  { %10521 = vmatprep.subr.mxu1 %v586_v55 }
 0x23d   :  { %10514 = vmatmul.mubr.msk.f32.vlgmr.msra.gmra.mrb[2].mxu1 %vm258_vm3, %v11790_v22 }
 0x23e   :  { %10522 = vmatpush3.msra.mxu1 %v586_v55 }
 0x23f   :  { %10531 = vmatprep.subr.mxu1 %v11617_v17 }
 0x30c   :  { %v329_v25 = vpop.f32.mrb[2].mxu0 }
 0x30d   :  { %v333_v26 = vmul.f32 0.35355338, %v329_v25  ;;  %v10505_v27 = vpop.f32.mrb[3].mxu0  ;;  %v1002_v25 = vld [vmem:[%s13594_s5 + $0x8] sm:$0xff] }
 0x30f   :  { %v334_v28 = vsel %vm258_vm3, %v333_v26, -inf }
 0x310   :  { %335 = vmax.xlane.f32.xlu1 %v334_v28  ;;  %v494_v29 = vpop.f32.mrb[2].mxu1 }
 0x311   :  { %v498_v30 = vmul.f32 0.35355338, %v494_v29  ;;  %v10515_v31 = vpop.f32.mrb[3].mxu1 }
 0x313   :  { %v499_v32 = vsel %vm258_vm3, %v498_v30, -inf }
 0x314   :  { %500 = vmax.xlane.f32.xlu1 %v499_v32 }
 0x39d   :  { %v336_v33 = vpop.xlane.xlu1 %335 }
 0x39e   :  { %v337_v34 = vsub.f32 %v333_v26, %v336_v33 }
 0x3a0   :  { %v338_v35 = vmul.f32 1.442695, %v337_v34 }
 0x3a1   :  { %v501_v36 = vpop.xlane.xlu1 %500 }
 0x3a2   :  { %11513 = vpow2.f32 %v338_v35  ;;  %v502_v37 = vsub.f32 %v498_v30, %v501_v36 }
 0x3a4   :  { %v503_v38 = vmul.f32 1.442695, %v502_v37 }
 0x3a6   :  { %11515 = vpow2.f32 %v503_v38 }
 0x3ac   :  { %v11514_v39 = vpop.eup %11513 }
 0x3ad   :  { %v340_v40 = vsel %vm258_vm3, %v11514_v39, 0.0 }
 0x3ae   :  { %341 = vadd.xlane.f32.xlu0 %v340_v40 }
 0x3b0   :  { %v11516_v41 = vpop.eup %11515 }
 0x3b1   :  { %v505_v42 = vsel %vm258_vm3, %v11516_v41, 0.0 }
 0x3b2   :  { %506 = vadd.xlane.f32.xlu1 %v505_v42 }
 0x3c3   :  { %345 = vrot.lane.b32.xlu1 %v11786_v21, %s11620_s21 }
 0x3c4   :  { %838 = vrot.lane.b32.xlu0 %v11790_v22, %s11621_s1 }
 0x3c7   :  { %510 = vrot.lane.b32.xlu1 %v11790_v22, %s11620_s21 }
 0x3cb   :  { %672 = vrot.lane.b32.xlu1 %v11786_v21, %s11621_s1 }
 0x3cf   :  { %670 = vrot.lane.b32.xlu1 %v11786_v21, %s13629_s22 }
 0x3d3   :  { %836 = vrot.lane.b32.xlu1 %v11790_v22, %s13629_s22  ;;  %s13646_s22 = smov 72  }
 0x43b   :  { %v342_v43 = vpop.xlane.xlu0 %341 }
 0x43c   :  { %11517 = vrcp.f32 %v342_v43 }
 0x43f   :  { %v507_v44 = vpop.xlane.xlu1 %506  ;;  %v839_v53 = vpop.permute.xlu0 %838 }
 0x440   :  { %11519 = vrcp.f32 %v507_v44 }
 0x443   :  { %v346_v45 = vpop.permute.xlu1 %345 }
 0x444   :  { %10507 = vmatpush3.msra.mxu0 %v346_v45 }
 0x445   :  { %10516 = vmatprep.subr.mxu0 %v11617_v17 }
 0x446   :  { %v11518_v46 = vpop.eup %11517 }
 0x447   :  { %v344_v47 = vmul.f32 %v11518_v46, %v11514_v39  ;;  %v511_v48 = vpop.permute.xlu1 %510 }
 0x449   :  { %10509 = vmatmul.mubr.msk.f32.vlgmr.msra.gmra.mrb[4].mxu0 %vm258_vm3, %v344_v47 }
 0x44a   :  { %v11520_v49 = vpop.eup %11519  ;;  %10517 = vmatpush3.msra.mxu0 %v511_v48  ;;  %10518 = vmatprep.mubr.msk.f32.mxu0 %vm11618_vm2, %v11617_v17 }
 0x44b   :  { %v509_v50 = vmul.f32 %v11520_v49, %v11516_v41  ;;  %v673_v51 = vpop.permute.xlu1 %672  ;;  %10526 = vmatprep.subr.mxu0 %v11617_v17 }
 0x44d   :  { %10519 = vmatmul.mubr.msk.f32.vlgmr.msra.gmra.mrb[6].mxu0 %vm258_vm3, %v509_v50 }
 0x44e   :  { %10528 = vmatprep.mubr.msk.f32.mxu0 %vm11618_vm2, %v11617_v17 }
 0x44f   :  { %v671_v52 = vpop.permute.xlu1 %670 }
 0x451   :  { %10527 = vmatpush3.xpose.msk.msra.mxu0 %vm258_vm3, %v673_v51 }
 0x452   :  { %10536 = vmatprep.subr.mxu0 %v11617_v17 }
 0x453   :  { %v837_v54 = vpop.permute.xlu1 %836 }
 0x454   :  { %10529 = vmatmul.mubr.msk.f32.vlgmr.msra.gmra.mrb[8].mxu0 %vm258_vm3, %v671_v52 }
 0x455   :  { %10537 = vmatpush3.xpose.msk.msra.mxu0 %vm258_vm3, %v839_v53  ;;  %10538 = vmatprep.mubr.msk.f32.mxu0 %vm11618_vm2, %v11617_v17 }
 0x456   :  { %10551 = vmatprep.subr.mxu0 %v11617_v17 }
 0x458   :  { %10539 = vmatmul.mubr.msk.f32.vlgmr.msra.gmra.mrb[10].mxu0 %vm258_vm3, %v837_v54 }
 0x459   :  { %10553 = vmatprep.mubr.msk.f32.mxu0 %vm11618_vm2, %v11617_v17 }
 0x51c   :  { %v417_v56 = vpop.f32.mrb[4].mxu0 }
 0x51d   :  { %v10510_v57 = vpop.f32.mrb[5].mxu0  ;;  %10523 = vmatprep.mubr.msk.f32.mxu1 %vm258_vm3, %v417_v56 }
 0x520   :  { %v582_v58 = vpop.f32.mrb[6].mxu0 }
 0x521   :  { %v10520_v59 = vpop.f32.mrb[7].mxu0  ;;  %10524 = vmatmul.mubr.msk.f32.vlgmr.msra.gmra.mrb[4].mxu1 %vm258_vm3, %v582_v58  ;;  %v1418_v58 = vld [vmem:[%s13594_s5 + $0x10] sm:$0xff] }
 0x522   :  { %10533 = vmatprep.mubr.msk.f32.mxu1 %vm11618_vm2, %v11617_v17 }
 0x527   :  { %v744_v60 = vpop.f32.mrb[8].mxu0 }
 0x528   :  { %v748_v61 = vmul.f32 0.35355338, %v744_v60  ;;  %v10530_v62 = vpop.f32.mrb[9].mxu0 }
 0x52a   :  { %v749_v63 = vsel %vm258_vm3, %v748_v61, -inf }
 0x52b   :  { %750 = vmax.xlane.f32.xlu1 %v749_v63  ;;  %v910_v0 = vpop.f32.mrb[10].mxu0 }
 0x52c   :  { %v914_v1 = vmul.f32 0.35355338, %v910_v0  ;;  %v10540_v2 = vpop.f32.mrb[11].mxu0 }
 0x52e   :  { %v915_v3 = vsel %vm258_vm3, %v914_v1, -inf }
 0x52f   :  { %916 = vmax.xlane.f32.xlu0 %v915_v3 }
 0x545   :  { %926 = vrot.lane.b32.xlu0 %v11790_v22, %s13627_s2 }
 0x549   :  { %1254 = vrot.lane.b32.xlu0 %v11790_v22, %s13625_s25 }
 0x5b8   :  { %v751_v4 = vpop.xlane.xlu1 %750 }
 0x5b9   :  { %v752_v5 = vsub.f32 %v748_v61, %v751_v4 }
 0x5bb   :  { %v753_v6 = vmul.f32 1.442695, %v752_v5 }
 0x5bc   :  { %v917_v7 = vpop.xlane.xlu0 %916 }
 0x5bd   :  { %11521 = vpow2.f32 %v753_v6  ;;  %v918_v8 = vsub.f32 %v914_v1, %v917_v7 }
 0x5bf   :  { %v919_v9 = vmul.f32 1.442695, %v918_v8 }
 0x5c0   :  { %v927_v26 = vpop.permute.xlu0 %926 }
 0x5c1   :  { %11523 = vpow2.f32 %v919_v9 }
 0x5c4   :  { %v1255_v36 = vpop.permute.xlu0 %1254 }
 0x5c7   :  { %v11522_v10 = vpop.eup %11521 }
 0x5c8   :  { %v755_v11 = vsel %vm258_vm3, %v11522_v10, 0.0 }
 0x5c9   :  { %756 = vadd.xlane.f32.xlu1 %v755_v11 }
 0x5cb   :  { %v11524_v12 = vpop.eup %11523 }
 0x5cc   :  { %v921_v13 = vsel %vm258_vm3, %v11524_v12, 0.0 }
 0x5cd   :  { %922 = vadd.xlane.f32.xlu1 %v921_v13 }
 0x5de   :  { %760 = vrot.lane.b32.xlu1 %v11786_v21, %s13627_s2  ;;  %s13647_s2 = smov 104  }
 0x5e2   :  { %1088 = vrot.lane.b32.xlu1 %v11786_v21, %s13625_s25 }
 0x5e6   :  { %1086 = vrot.lane.b32.xlu1 %v11786_v21, %s13623_s3 }
 0x5ea   :  { %1252 = vrot.lane.b32.xlu1 %v11790_v22, %s13623_s3  ;;  %s13643_s3 = smov 80  }
 0x656   :  { %v757_v14 = vpop.xlane.xlu1 %756 }
 0x657   :  { %11525 = vrcp.f32 %v757_v14 }
 0x65a   :  { %v923_v18 = vpop.xlane.xlu1 %922 }
 0x65b   :  { %11527 = vrcp.f32 %v923_v18 }
 0x65e   :  { %v761_v19 = vpop.permute.xlu1 %760 }
 0x65f   :  { %10532 = vmatpush3.msra.mxu1 %v761_v19 }
 0x660   :  { %10541 = vmatprep.subr.mxu1 %v11617_v17 }
 0x661   :  { %v11526_v20 = vpop.eup %11525 }
 0x662   :  { %v759_v23 = vmul.f32 %v11526_v20, %v11522_v10  ;;  %v1089_v24 = vpop.permute.xlu1 %1088 }
 0x663   :  { %10552 = vmatpush3.xpose.msk.msra.mxu0 %vm258_vm3, %v1089_v24 }
 0x664   :  { %10534 = vmatmul.mubr.msk.f32.vlgmr.msra.gmra.mrb[6].mxu1 %vm258_vm3, %v759_v23  ;;  %10556 = vmatprep.subr.mxu0 %v11617_v17 }
 0x665   :  { %v11528_v27 = vpop.eup %11527  ;;  %10542 = vmatpush3.msra.mxu1 %v927_v26  ;;  %10543 = vmatprep.mubr.msk.f32.mxu1 %vm11618_vm2, %v11617_v17 }
 0x666   :  { %v925_v28 = vmul.f32 %v11528_v27, %v11524_v12  ;;  %v1087_v29 = vpop.permute.xlu1 %1086  ;;  %10546 = vmatprep.subr.mxu1 %v1002_v25 }
 0x667   :  { %10554 = vmatmul.mubr.msk.f32.vlgmr.msra.gmra.mrb[12].mxu0 %vm258_vm3, %v1087_v29 }
 0x668   :  { %10544 = vmatmul.mubr.msk.f32.vlgmr.msra.gmra.mrb[8].mxu1 %vm258_vm3, %v925_v28  ;;  %10558 = vmatprep.mubr.msk.f32.mxu0 %vm11618_vm2, %v11617_v17 }
 0x669   :  { %10547 = vmatpush3.msra.mxu1 %v1002_v25 }
 0x66a   :  { %10561 = vmatprep.subr.mxu1 %v11617_v17  ;;  %v1253_v39 = vpop.permute.xlu1 %1252 }
 0x737   :  { %v832_v30 = vpop.f32.mrb[6].mxu1 }
 0x738   :  { %v10535_v31 = vpop.f32.mrb[7].mxu1  ;;  %10548 = vmatprep.mubr.msk.f32.mxu1 %vm258_vm3, %v832_v30 }
 0x73a   :  { %v1160_v32 = vpop.f32.mrb[12].mxu0 }
 0x73b   :  { %v1164_v33 = vmul.f32 0.35355338, %v1160_v32  ;;  %v998_v34 = vpop.f32.mrb[8].mxu1  ;;  %v10555_v35 = vpop.f32.mrb[13].mxu0 }
 0x73c   :  { %v10545_v37 = vpop.f32.mrb[9].mxu1  ;;  %10549 = vmatmul.mubr.msk.f32.vlgmr.msra.gmra.mrb[4].mxu1 %vm258_vm3, %v998_v34 }
 0x73d   :  { %10562 = vmatpush3.xpose.msk.msra.mxu1 %vm258_vm3, %v1255_v36  ;;  %v1165_v38 = vsel %vm258_vm3, %v1164_v33, -inf  ;;  %10563 = vmatprep.mubr.msk.f32.mxu1 %vm11618_vm2, %v11617_v17 }
 0x73e   :  { %1166 = vmax.xlane.f32.xlu0 %v1165_v38  ;;  %10571 = vmatprep.subr.mxu1 %v1418_v58 }
 0x740   :  { %10564 = vmatmul.mubr.msk.f32.vlgmr.msra.gmra.mrb[10].mxu1 %vm258_vm3, %v1253_v39 }
 0x741   :  { %10572 = vmatpush3.msra.mxu1 %v1418_v58 }
 0x742   :  { %10581 = vmatprep.subr.mxu1 %v11617_v17 }
 0x7cb   :  { %v1167_v40 = vpop.xlane.xlu0 %1166 }
 0x7cc   :  { %v1168_v41 = vsub.f32 %v1164_v33, %v1167_v40 }
 0x7ce   :  { %v1169_v42 = vmul.f32 1.442695, %v1168_v41  ;;  %v8057_v41 = vld [vmem:[%s13595_s6] ss:$0 sm:$0xff] }
 0x7d0   :  { %11529 = vpow2.f32 %v1169_v42 }
 0x7da   :  { %v11530_v43 = vpop.eup %11529 }
 0x7db   :  { %v1171_v44 = vsel %vm258_vm3, %v11530_v43, 0.0 }
 0x7dc   :  { %1172 = vadd.xlane.f32.xlu0 %v1171_v44 }
 0x813   :  { %v1326_v45 = vpop.f32.mrb[10].mxu1 }
 0x814   :  { %v1330_v46 = vmul.f32 0.35355338, %v1326_v45  ;;  %v10565_v47 = vpop.f32.mrb[11].mxu1 }
 0x816   :  { %v1331_v48 = vsel %vm258_vm3, %v1330_v46, -inf }
 0x817   :  { %1332 = vmax.xlane.f32.xlu1 %v1331_v48 }
 0x828   :  { %1176 = vrot.lane.b32.xlu1 %v11786_v21, %s13621_s28 }
 0x82c   :  { %1504 = vrot.lane.b32.xlu1 %v11786_v21, %s13619_s29 }
 0x830   :  { %1502 = vrot.lane.b32.xlu1 %v11786_v21, %s13617_s23 }
 0x834   :  { %1668 = vrot.lane.b32.xlu1 %v11790_v22, %s13617_s23  ;;  %s13644_s23 = smov 112  }
 0x869   :  { %v1173_v49 = vpop.xlane.xlu0 %1172 }
 0x86a   :  { %11531 = vrcp.f32 %v1173_v49 }
 0x874   :  { %v11532_v51 = vpop.eup %11531 }
 0x875   :  { %v1175_v54 = vmul.f32 %v11532_v51, %v11530_v43 }
 0x8a4   :  { %v1333_v50 = vpop.xlane.xlu1 %1332 }
 0x8a5   :  { %v1334_v52 = vsub.f32 %v1330_v46, %v1333_v50 }
 0x8a7   :  { %v1335_v53 = vmul.f32 1.442695, %v1334_v52 }
 0x8a8   :  { %v1177_v55 = vpop.permute.xlu1 %1176 }
 0x8a9   :  { %11533 = vpow2.f32 %v1335_v53  ;;  %10557 = vmatpush3.msra.mxu0 %v1177_v55 }
 0x8aa   :  { %10559 = vmatmul.mubr.msk.f32.vlgmr.msra.gmra.mrb[14].mxu0 %vm258_vm3, %v1175_v54  ;;  %10566 = vmatprep.subr.mxu0 %v11617_v17 }
 0x8ab   :  { %10568 = vmatprep.mubr.msk.f32.mxu0 %vm11618_vm2, %v11617_v17 }
 0x8ac   :  { %v1505_v61 = vpop.permute.xlu1 %1504 }
 0x8b0   :  { %v1503_v0 = vpop.permute.xlu1 %1502 }
 0x8b3   :  { %v11534_v56 = vpop.eup %11533 }
 0x8b4   :  { %v1337_v57 = vsel %vm258_vm3, %v11534_v56, 0.0  ;;  %v1669_v2 = vpop.permute.xlu1 %1668 }
 0x8b5   :  { %1338 = vadd.xlane.f32.xlu0 %v1337_v57 }
 0x8cb   :  { %1342 = vrot.lane.b32.xlu0 %v11790_v22, %s13621_s28 }
 0x8cf   :  { %1670 = vrot.lane.b32.xlu0 %v11790_v22, %s13619_s29  ;;  %s13648_s29 = smov 40  }
 0x942   :  { %v1339_v59 = vpop.xlane.xlu0 %1338 }
 0x943   :  { %11535 = vrcp.f32 %v1339_v59  ;;  %v1981_v59 = vld [vmem:[%s13598_s9 + $0x40] sm:$0xff] }
 0x946   :  { %v1343_v60 = vpop.permute.xlu0 %1342 }
 0x947   :  { %10567 = vmatpush3.msra.mxu0 %v1343_v60  ;;  %v1974_v60 = vld [vmem:[%s13598_s9 + $0x8] sm:$0xff] }
 0x948   :  { %10576 = vmatprep.subr.mxu0 %v11617_v17 }
 0x94a   :  { %v1671_v1 = vpop.permute.xlu0 %1670 }
 0x94d   :  { %v11536_v62 = vpop.eup %11535 }
 0x94e   :  { %v1341_v63 = vmul.f32 %v11536_v62, %v11534_v56  ;;  %v1982_v62 = vld [vmem:[%s13598_s9 + $0x48] sm:$0xff] }
 0x950   :  { %10569 = vmatmul.mubr.msk.f32.vlgmr.msra.gmra.mrb[16].mxu0 %vm258_vm3, %v1341_v63 }
 0x951   :  { %10577 = vmatpush3.xpose.msk.msra.mxu0 %vm258_vm3, %v1505_v61  ;;  %10578 = vmatprep.mubr.msk.f32.mxu0 %vm11618_vm2, %v11617_v17 }
 0x952   :  { %10586 = vmatprep.subr.mxu0 %v11617_v17 }
 0x954   :  { %10579 = vmatmul.mubr.msk.f32.vlgmr.msra.gmra.mrb[18].mxu0 %vm258_vm3, %v1503_v0  ;;  %v11438_v0 = vcombine.high %v1974_v60, %v1982_v62 }
 0x955   :  { %10587 = vmatpush3.xpose.msk.msra.mxu0 %vm258_vm3, %v1671_v1  ;;  %10588 = vmatprep.mubr.msk.f32.mxu0 %vm11618_vm2, %v11617_v17  ;;  %v11439_v1 = vcombine.low %v1974_v60, %v1982_v62  ;;  %v1988_v60 = vld [vmem:[%s13598_s9 + $0x78] sm:$0xff] }
 0x958   :  { %10589 = vmatmul.mubr.msk.f32.vlgmr.msra.gmra.mrb[20].mxu0 %vm258_vm3, %v1669_v2  ;;  %v1989_v2 = vld [vmem:[%s13598_s9 + $0x80] sm:$0xff] }
 0x959   :  { %2223 = vmatprep.mubr.f32.mxu0 %v11617_v17 }
 0x97d   :  { %v1248_v3 = vpop.f32.mrb[14].mxu0 }
 0x97e   :  { %v10560_v4 = vpop.f32.mrb[15].mxu0  ;;  %10573 = vmatprep.mubr.msk.f32.mxu1 %vm258_vm3, %v1248_v3  ;;  %v1997_v3 = vld [vmem:[%s13598_s9 + $0xc0] sm:$0xff] }
 0x97f   :  { %v1990_v4 = vld [vmem:[%s13598_s9 + $0x88] sm:$0xff] }
 0xa23   :  { %v1414_v5 = vpop.f32.mrb[16].mxu0 }
 0xa24   :  { %v10570_v6 = vpop.f32.mrb[17].mxu0  ;;  %10574 = vmatmul.mubr.msk.f32.vlgmr.msra.gmra.mrb[4].mxu1 %vm258_vm3, %v1414_v5  ;;  %v11436_v5 = vcombine.high %v1989_v2, %v1997_v3 }
 0xa25   :  { %10583 = vmatprep.mubr.msk.f32.mxu1 %vm11618_vm2, %v11617_v17  ;;  %v1998_v6 = vld [vmem:[%s13598_s9 + $0xc8] sm:$0xff] }
 0xa27   :  { %v1576_v7 = vpop.f32.mrb[18].mxu0 }
 0xa28   :  { %v1580_v8 = vmul.f32 0.35355338, %v1576_v7  ;;  %v10580_v9 = vpop.f32.mrb[19].mxu0  ;;  %v11437_v7 = vcombine.low %v1989_v2, %v1997_v3  ;;  %v2003_v2 = vld [vmem:[%s13598_s9 + $0xf0] sm:$0xff]  ;;  %v1996_v3 = vld [vmem:[%s13598_s9 + $0xb8] sm:$0xff] }
 0xa29   :  { %v11441_v9 = vcombine.low %v1990_v4, %v1998_v6 }
 0xa2a   :  { %v1581_v10 = vsel %vm258_vm3, %v1580_v8, -inf }
 0xa2b   :  { %1582 = vmax.xlane.f32.xlu0 %v1581_v10  ;;  %v1742_v11 = vpop.f32.mrb[20].mxu0  ;;  %v1975_v10 = vld [vmem:[%s13598_s9 + $0x10] sm:$0xff] }
 0xa2c   :  { %v1746_v12 = vmul.f32 0.35355338, %v1742_v11  ;;  %v10590_v13 = vpop.f32.mrb[21].mxu0  ;;  %v1983_v11 = vld [vmem:[%s13598_s9 + $0x50] sm:$0xff] }
 0xa2d   :  { %v11442_v13 = vcombine.high %v1975_v10, %v1983_v11 }
 0xa2e   :  { %v1747_v14 = vsel %vm258_vm3, %v1746_v12, -inf }
 0xa2f   :  { %1748 = vmax.xlane.f32.xlu1 %v1747_v14  ;;  %v1984_v14 = vld [vmem:[%s13598_s9 + $0x58] sm:$0xff] }
 0xa40   :  { %1592 = vrot.lane.b32.xlu1 %v11786_v21, %s13615_s27 }
 0xab8   :  { %v1583_v18 = vpop.xlane.xlu0 %1582 }
 0xab9   :  { %v1584_v19 = vsub.f32 %v1580_v8, %v1583_v18  ;;  %v11440_v8 = vcombine.high %v1990_v4, %v1998_v6  ;;  %v11443_v18 = vcombine.low %v1975_v10, %v1983_v11  ;;  %v2004_v4 = vld [vmem:[%s13598_s9 + $0xf8] sm:$0xff]  ;;  %v9509_v11 = vld [vmem:[%s13600_s11 + $0x40] sm:$0xff]  }
 0xaba   :  { %v11465_v10 = vcombine.low %v1996_v3, %v2004_v4 }
 0xabb   :  { %v1585_v20 = vmul.f32 1.442695, %v1584_v19 }
 0xabc   :  { %v1749_v23 = vpop.xlane.xlu1 %1748 }
 0xabd   :  { %11537 = vpow2.f32 %v1585_v20  ;;  %v1750_v24 = vsub.f32 %v1746_v12, %v1749_v23  ;;  %v1976_v12 = vld [vmem:[%s13598_s9 + $0x18] sm:$0xff] }
 0xabe   :  { %v11446_v19 = vcombine.high %v1976_v12, %v1984_v14  ;;  %v11447_v20 = vcombine.low %v1976_v12, %v1984_v14  ;;  %v9525_v12 = vld [vmem:[%s13600_s11 + $0xc0] sm:$0xff]  }
 0xabf   :  { %v1751_v25 = vmul.f32 1.442695, %v1750_v24  ;;  %v9517_v14 = vld [vmem:[%s13600_s11 + $0x80] sm:$0xff]  }
 0xac0   :  { %v1593_v26 = vpop.permute.xlu1 %1592 }
 0xac1   :  { %11539 = vpow2.f32 %v1751_v25  ;;  %10582 = vmatpush3.msra.mxu1 %v1593_v26 }
 0xac2   :  { %10591 = vmatprep.subr.mxu1 %v11617_v17 }
 0xac7   :  { %v11538_v27 = vpop.eup %11537 }
 0xac8   :  { %v1587_v28 = vsel %vm258_vm3, %v11538_v27, 0.0 }
 0xac9   :  { %1588 = vadd.xlane.f32.xlu0 %v1587_v28 }
 0xacb   :  { %v11540_v29 = vpop.eup %11539 }
 0xacc   :  { %v1753_v30 = vsel %vm258_vm3, %v11540_v29, 0.0 }
 0xacd   :  { %1754 = vadd.xlane.f32.xlu0 %v1753_v30 }
 0xae3   :  { %1758 = vrot.lane.b32.xlu0 %v11790_v22, %s13615_s27  ;;  %v1834_v22 = vld [vmem:[%s13594_s5 + $0x18] sm:$0xff] }
 0xb56   :  { %v1589_v21 = vpop.xlane.xlu0 %1588 }
 0xb57   :  { %11541 = vrcp.f32 %v1589_v21  ;;  %v8090_v21 = vld [vmem:[%s13596_s7] ss:$0 sm:$0xff] }
 0xb5a   :  { %v1755_v31 = vpop.xlane.xlu0 %1754 }
 0xb5b   :  { %11543 = vrcp.f32 %v1755_v31 }
 0xb5e   :  { %v1759_v34 = vpop.permute.xlu0 %1758 }
 0xb61   :  { %v11542_v32 = vpop.eup %11541 }
 0xb62   :  { %v1591_v33 = vmul.f32 %v11542_v32, %v11538_v27 }
 0xb64   :  { %10584 = vmatmul.mubr.msk.f32.vlgmr.msra.gmra.mrb[12].mxu1 %vm258_vm3, %v1591_v33  ;;  %v8091_v33 = vld [vmem:[%s13597_s8] ss:$0 sm:$0xff] }
 0xb65   :  { %v11544_v35 = vpop.eup %11543  ;;  %10592 = vmatpush3.msra.mxu1 %v1759_v34  ;;  %10593 = vmatprep.mubr.msk.f32.mxu1 %vm11618_vm2, %v11617_v17  ;;  %v1991_v34 = vld [vmem:[%s13598_s9 + $0x90] sm:$0xff] }
 0xb66   :  { %v1757_v36 = vmul.f32 %v11544_v35, %v11540_v29  ;;  %10596 = vmatprep.subr.mxu1 %v1834_v22 }
 0xb68   :  { %10594 = vmatmul.mubr.msk.f32.vlgmr.msra.gmra.mrb[14].mxu1 %vm258_vm3, %v1757_v36  ;;  %v1999_v36 = vld [vmem:[%s13598_s9 + $0xd0] sm:$0xff] }
 0xb69   :  { %10597 = vmatpush3.msra.mxu1 %v1834_v22  ;;  %v1992_v22 = vld [vmem:[%s13598_s9 + $0x98] sm:$0xff] }
 0xb6a   :  { %10762 = vmatprep.subr.bf16.mxu1 %v11438_v0 }
 0xc37   :  { %v1664_v37 = vpop.f32.mrb[12].mxu1 }
 0xc38   :  { %v10585_v38 = vpop.f32.mrb[13].mxu1  ;;  %10598 = vmatprep.mubr.msk.f32.mxu1 %vm258_vm3, %v1664_v37  ;;  %v2000_v37 = vld [vmem:[%s13598_s9 + $0xd8] sm:$0xff] }
 0xc3b   :  { %v1830_v39 = vpop.f32.mrb[14].mxu1 }
 0xc3c   :  { %v10595_v40 = vpop.f32.mrb[15].mxu1  ;;  %10599 = vmatmul.mubr.msk.f32.vlgmr.msra.gmra.mrb[4].mxu1 %vm258_vm3, %v1830_v39 }
 0xc3d   :  { %2300 = vmatprep.mubr.f32.mxu1 %v11617_v17  ;;  %10764 = vmatpush1.bf16.msra.mxu1 %v11439_v1  ;;  %v11444_v40 = vcombine.high %v1991_v34, %v1999_v36  ;;  %v1995_v1 = vld [vmem:[%s13598_s9 + $0xb0] sm:$0xff] }
 0xc3e   :  { %10766 = vmatprep.subr.bf16.mxu1 %v11440_v8  ;;  %v11464_v8 = vcombine.high %v1996_v3, %v2004_v4 }
 0xc41   :  { %10768 = vmatpush1.bf16.msra.mxu1 %v11441_v9  ;;  %v11461_v9 = vcombine.low %v1995_v1, %v2003_v2 }
 0xc42   :  { %10778 = vmatprep.subr.bf16.mxu1 %v11446_v19  ;;  %v9526_v19 = vld [vmem:[%s13600_s11 + $0xc8] sm:$0xff]  }
 0xd0f   :  { %v10600_v42 = vpop.f32.mrb[4].mxu1 }
 0xd10   :  { %v11418_v43 = vadd.f32 %v10600_v42, %v8057_v41  ;;  %v1907_v44 = vpop.f32.mrb[5].mxu1  ;;  %v1977_v42 = vld [vmem:[%s13598_s9 + $0x20] sm:$0xff] }
 0xd11   :  { %v11419_v45 = vadd.f32 %v8057_v41, %v1907_v44  ;;  %v11448_v41 = vcombine.high %v1992_v22, %v2000_v37  ;;  %v1978_v44 = vld [vmem:[%s13598_s9 + $0x28] sm:$0xff] }
 0xd12   :  { %v1919_v46 = vadd.f32 %v11418_v43, %v11771_v16  ;;  %v1985_v43 = vld [vmem:[%s13598_s9 + $0x60] sm:$0xff] }
 0xd13   :  { %v1918_v47 = vadd.f32 %v11419_v45, %v11769_v15  ;;  %v1973_v15 = vld [vmem:[%s13598_s9] sm:$0xff]  ;;  %v1986_v45 = vld [vmem:[%s13598_s9 + $0x68] sm:$0xff] }
 0xd14   :  { %v1925_v48 = vsel %vm165_vm1, %v1919_v46, 0.0  ;;  %v11434_v61 = vcombine.high %v1973_v15, %v1981_v59  ;;  %v11435_v63 = vcombine.low %v1973_v15, %v1981_v59  ;;  %v1987_v15 = vld [vmem:[%s13598_s9 + $0x70] sm:$0xff]  ;;  %v1980_v59 = vld [vmem:[%s13598_s9 + $0x38] sm:$0xff] }
 0xd15   :  { %1926 = vadd.xlane.f32.xlu0 %v1925_v48  ;;  %v1922_v49 = vsel %vm165_vm1, %v1918_v47, 0.0  ;;  %v11462_v0 = vcombine.high %v1980_v59, %v1988_v60  ;;  %v11463_v6 = vcombine.low %v1980_v59, %v1988_v60 }
 0xd16   :  { %1923 = vadd.xlane.f32.xlu1 %v1922_v49  ;;  %10754 = vmatprep.subr.bf16.mxu0 %v11434_v61  ;;  %v11450_v49 = vcombine.high %v1977_v42, %v1985_v43 }
 0xd17   :  { %10756 = vmatpush1.bf16.msra.mxu0 %v11435_v63 }
 0xd18   :  { %10758 = vmatprep.subr.bf16.mxu0 %v11436_v5 }
 0xd1b   :  { %10760 = vmatpush1.bf16.msra.mxu0 %v11437_v7  ;;  %v11460_v7 = vcombine.high %v1995_v1, %v2003_v2 }
 0xd1c   :  { %10770 = vmatprep.subr.bf16.mxu0 %v11442_v13  ;;  %v8479_v13 = vld [vmem:[%s13600_s11] sm:$0xff]  }
 0xda2   :  { %v1927_v50 = vpop.xlane.xlu0 %1926 }
 0xda3   :  { %v1930_v51 = vmul.f32 0.03125, %v1927_v50  ;;  %v1924_v52 = vpop.xlane.xlu1 %1923  ;;  %v11454_v50 = vcombine.high %v1978_v44, %v1986_v45 }
 0xda4   :  { %v1929_v53 = vmul.f32 0.03125, %v1924_v52  ;;  %v2001_v52 = vld [vmem:[%s13598_s9 + $0xe0] sm:$0xff] }
 0xda5   :  { %v1932_v54 = vsub.f32 %v1919_v46, %v1930_v51  ;;  %v11445_v46 = vcombine.low %v1991_v34, %v1999_v36  ;;  %v1993_v51 = vld [vmem:[%s13598_s9 + $0xa0] sm:$0xff]  ;;  %v9530_v36 = vld [vmem:[%s13600_s11 + $0xe8] sm:$0xff]  }
 0xda6   :  { %v1931_v55 = vsub.f32 %v1918_v47, %v1929_v53  ;;  %v11449_v47 = vcombine.low %v1992_v22, %v2000_v37  ;;  %v1994_v53 = vld [vmem:[%s13598_s9 + $0xa8] sm:$0xff]  ;;  %v11453_v61 = vcombine.low %v1993_v51, %v2001_v52  ;;  %v9521_v34 = vld [vmem:[%s13600_s11 + $0xa0] sm:$0xff]  }
 0xda7   :  { %v1934_v56 = vmul.f32 %v1932_v54, %v1932_v54  ;;  %v9506_v22 = vld [vmem:[%s13600_s11 + $0x28] sm:$0xff]  }
 0xda8   :  { %v1933_v57 = vmul.f32 %v1931_v55, %v1931_v55  ;;  %v9522_v37 = vld [vmem:[%s13600_s11 + $0xa8] sm:$0xff]  }
 0xda9   :  { %v1938_v58 = vsel %vm165_vm1, %v1934_v56, 0.0  ;;  %v11455_v56 = vcombine.low %v1978_v44, %v1986_v45  ;;  %v9532_v44 = vld [vmem:[%s13600_s11 + $0xf8] sm:$0xff]  }
 0xdaa   :  { %1939 = vadd.xlane.f32.xlu0 %v1938_v58  ;;  %v1935_v16 = vsel %vm165_vm1, %v1933_v57, 0.0  ;;  %v11452_v57 = vcombine.high %v1993_v51, %v2001_v52  ;;  %v9508_v45 = vld [vmem:[%s13600_s11 + $0x38] sm:$0xff]  }
 0xdab   :  { %1936 = vadd.xlane.f32.xlu1 %v1935_v16  ;;  %v1979_v16 = vld [vmem:[%s13598_s9 + $0x30] sm:$0xff] }
 0xdac   :  { %v11458_v63 = vcombine.high %v1979_v16, %v1987_v15  ;;  %v11459_v5 = vcombine.low %v1979_v16, %v1987_v15 }
 0xe37   :  { %v1940_v23 = vpop.xlane.xlu0 %1939 }
 0xe38   :  { %v1942_v24 = vmul.f32 0.03125, %v1940_v23  ;;  %v1937_v25 = vpop.xlane.xlu1 %1936  ;;  %v9518_v23 = vld [vmem:[%s13600_s11 + $0x88] sm:$0xff]  }
 0xe39   :  { %v1941_v26 = vmul.f32 0.03125, %v1937_v25  ;;  %v9527_v25 = vld [vmem:[%s13600_s11 + $0xd0] sm:$0xff]  }
 0xe3a   :  { %v1944_v27 = vadd.f32 1e-05, %v1942_v24  ;;  %v9511_v24 = vld [vmem:[%s13600_s11 + $0x50] sm:$0xff]  }
 0xe3b   :  { %v1943_v28 = vadd.f32 1e-05, %v1941_v26  ;;  %v9503_v26 = vld [vmem:[%s13600_s11 + $0x10] sm:$0xff]  }
 0xe3c   :  { %11545 = vrsqrt.f32 %v1944_v27  ;;  %v9519_v27 = vld [vmem:[%s13600_s11 + $0x90] sm:$0xff]  }
 0xe3d   :  { %11547 = vrsqrt.f32 %v1943_v28  ;;  %v9512_v28 = vld [vmem:[%s13600_s11 + $0x58] sm:$0xff]  }
 0xe46   :  { %v11546_v29 = vpop.eup %11545 }
 0xe47   :  { %v11548_v30 = vpop.eup %11547  ;;  %v1948_v31 = vmul.f32 %v11546_v29, %v1932_v54  ;;  %v2002_v54 = vld [vmem:[%s13598_s9 + $0xe8] sm:$0xff]  ;;  %v9528_v29 = vld [vmem:[%s13600_s11 + $0xd8] sm:$0xff]  }
 0xe48   :  { %v1947_v32 = vmul.f32 %v11548_v30, %v1931_v55  ;;  %v11451_v55 = vcombine.low %v1977_v42, %v1985_v43  ;;  %v11456_v58 = vcombine.high %v1994_v53, %v2002_v54  ;;  %v11457_v62 = vcombine.low %v1994_v53, %v2002_v54  ;;  %v9504_v30 = vld [vmem:[%s13600_s11 + $0x18] sm:$0xff]   ;;  %v9523_v42 = vld [vmem:[%s13600_s11 + $0xb0] sm:$0xff]   ;;  %v12214_v54 = vld [vmem:[%s13599_s10] sm:$0xff] }
 0xe49   :  { %v1956_v38 = vmul.f32 %v8090_v21, %v1948_v31  ;;  %v9513_v31 = vld [vmem:[%s13600_s11 + $0x60] sm:$0xff]   ;;  %v9516_v43 = vld [vmem:[%s13600_s11 + $0x78] sm:$0xff]  }
 0xe4a   :  { %v1955_v35 = vmul.f32 %v8090_v21, %v1947_v32  ;;  %v9520_v21 = vld [vmem:[%s13600_s11 + $0x98] sm:$0xff]   ;;  %v9529_v32 = vld [vmem:[%s13600_s11 + $0xe0] sm:$0xff]  }
 0xe4b   :  { %v12021_v48 = vadd.f32 %v8091_v33, %v1956_v38  ;;  %v9515_v38 = vld [vmem:[%s13600_s11 + $0x70] sm:$0xff]  }
 0xe4c   :  { %v12003_v39 = vadd.f32 %v8091_v33, %v1955_v35  ;;  %v9505_v33 = vld [vmem:[%s13600_s11 + $0x20] sm:$0xff]   ;;  %v9514_v35 = vld [vmem:[%s13600_s11 + $0x68] sm:$0xff]  }
 0xe4e   :  { %8093 = vmatmul.mubr.msk.f32.vlgmr.msra.gmra.mrb[22].mxu0 %vm165_vm1, %v12003_v39  ;;  %8095 = vmatmul.mubr.msk.f32.vlgmr.msra.gmra.mrb[16].mxu1 %vm165_vm1, %v12003_v39 }
 0xe4f   :  { %10772 = vmatpush1.bf16.msra.mxu0 %v11443_v18  ;;  %10780 = vmatpush1.bf16.msra.mxu1 %v11447_v20  ;;  %v9510_v18 = vld [vmem:[%s13600_s11 + $0x48] sm:$0xff]  }
 0xe50   :  { %2229 = vmatprep.mubr.f32.mxu0 %v11617_v17  ;;  %2306 = vmatprep.mubr.f32.mxu1 %v11617_v17  ;;  %v9502_v20 = vld [vmem:[%s13600_s11 + $0x8] sm:$0xff]  }
 0xe51   :  { %10774 = vmatprep.subr.bf16.mxu0 %v11444_v40  ;;  %10782 = vmatprep.subr.bf16.mxu1 %v11448_v41  ;;  %v9531_v40 = vld [vmem:[%s13600_s11 + $0xf0] sm:$0xff]  }
 0xe52   :  { %8094 = vmatmul.mubr.msk.f32.gmra.mrb[24].mxu0 %vm165_vm1, %v12021_v48  ;;  %8096 = vmatmul.mubr.msk.f32.gmra.mrb[18].mxu1 %vm165_vm1, %v12021_v48  ;;  %v9507_v41 = vld [vmem:[%s13600_s11 + $0x30] sm:$0xff]  }
 0xe53   :  { %10776 = vmatpush1.bf16.msra.mxu0 %v11445_v46  ;;  %10784 = vmatpush1.bf16.msra.mxu1 %v11449_v47  ;;  %v9524_v46 = vld [vmem:[%s13600_s11 + $0xb8] sm:$0xff]   ;;  %v9541_v47 = vld [vmem:[%s13600_s11 + $0x140] sm:$0xff]  }
 0xe54   :  { %2377 = vmatprep.mubr.f32.mxu0 %v11617_v17  ;;  %2454 = vmatprep.mubr.f32.mxu1 %v11617_v17 }
 0xe55   :  { %10786 = vmatprep.subr.bf16.mxu0 %v11450_v49  ;;  %10794 = vmatprep.subr.bf16.mxu1 %v11454_v50  ;;  %v9557_v49 = vld [vmem:[%s13600_s11 + $0x1c0] sm:$0xff]   ;;  %v2073_v50 = vlaneseq }
 0xe56   :  { %8097 = vmatmul.mubr.msk.f32.vlgmr.msra.gmra.mrb[26].mxu0 %vm165_vm1, %v12003_v39  ;;  %8099 = vmatmul.mubr.msk.f32.vlgmr.msra.gmra.mrb[20].mxu1 %vm165_vm1, %v12003_v39 }
 0xe57   :  { %10788 = vmatpush1.bf16.msra.mxu0 %v11451_v55  ;;  %10796 = vmatpush1.bf16.msra.mxu1 %v11455_v56  ;;  %v12203_v51 = vshrl.u32 %v2073_v50, 7  ;;  %v9544_v50 = vld [vmem:[%s13600_s11 + $0x158] sm:$0xff]  }
 0xe58   :  { %2383 = vmatprep.mubr.f32.mxu0 %v11617_v17  ;;  %2460 = vmatprep.mubr.f32.mxu1 %v11617_v17 }
 0xe59   :  { %10790 = vmatprep.subr.bf16.mxu0 %v11452_v57  ;;  %10798 = vmatprep.subr.bf16.mxu1 %v11456_v58  ;;  %v12206_v52 = vsub.s32 0, %v12203_v51  ;;  %v12209_v53 = vsub.s32 2, %v12203_v51  ;;  %v12217_v55 = vsub.s32 1, %v12203_v51  ;;  %v12220_v56 = vsub.s32 3, %v12203_v51 }
 0xe5a   :  { %8098 = vmatmul.mubr.msk.f32.gmra.mrb[28].mxu0 %vm165_vm1, %v12021_v48  ;;  %8100 = vmatmul.mubr.msk.f32.gmra.mrb[22].mxu1 %vm165_vm1, %v12021_v48  ;;  %v12234_v4 = vsub.s32 7, %v12203_v51 }
 0xe5b   :  { %10792 = vmatpush1.bf16.msra.mxu0 %v11453_v61  ;;  %10800 = vmatpush1.bf16.msra.mxu1 %v11457_v62  ;;  %v2076_v57 = vrot.slane %v12214_v54, %v12206_v52  ;;  %v2084_v58 = vrot.slane %v12214_v54, %v12209_v53  ;;  %v2080_v16 = vrot.slane %v12214_v54, %v12217_v55  ;;  %v12231_v61 = vsub.s32 5, %v12203_v51 }
 0xe5c   :  { %2531 = vmatprep.mubr.f32.mxu0 %v11617_v17  ;;  %2608 = vmatprep.mubr.f32.mxu1 %v11617_v17  ;;  %v2088_v15 = vrot.slane %v12214_v54, %v12220_v56 }
 0xe5d   :  { %10802 = vmatprep.subr.bf16.mxu0 %v11458_v63  ;;  %10810 = vmatprep.subr.bf16.mxu1 %v11462_v0 }
 0xe5e   :  { %8101 = vmatmul.mubr.msk.f32.vlgmr.msra.gmra.mrb[30].mxu0 %vm165_vm1, %v12003_v39  ;;  %8103 = vmatmul.mubr.msk.f32.vlgmr.msra.gmra.mrb[24].mxu1 %vm165_vm1, %v12003_v39 }
 0xe5f   :  { %10804 = vmatpush1.bf16.msra.mxu0 %v11459_v5  ;;  %10812 = vmatpush1.bf16.msra.mxu1 %v11463_v6 }
 0xe60   :  { %2537 = vmatprep.mubr.f32.mxu0 %v11617_v17  ;;  %2614 = vmatprep.mubr.f32.mxu1 %v11617_v17 }
 0xe61   :  { %10806 = vmatprep.subr.bf16.mxu0 %v11460_v7  ;;  %10814 = vmatprep.subr.bf16.mxu1 %v11464_v8 }
 0xe62   :  { %8102 = vmatmul.mubr.msk.f32.gmra.mrb[32].mxu0 %vm165_vm1, %v12021_v48  ;;  %8104 = vmatmul.mubr.msk.f32.gmra.mrb[26].mxu1 %vm165_vm1, %v12021_v48 }
 0xe63   :  { %10808 = vmatpush1.bf16.msra.mxu0 %v11461_v9  ;;  %10816 = vmatpush1.bf16.msra.mxu1 %v11465_v10  ;;  %v12238_v9 = vrot.slane %v12214_v54, %v12231_v61 }
 0xe64   :  { %2685 = vmatprep.mubr.f32.mxu0 %v11617_v17  ;;  %2762 = vmatprep.mubr.f32.mxu1 %v11617_v17 }
 0xe65   :  { %10818 = vmatprep.subr.bf16.mxu0 %v9509_v11  ;;  %10850 = vmatprep.subr.bf16.mxu1 %v9525_v12 }
 0xe66   :  { %8105 = vmatmul.mubr.msk.f32.vlgmr.msra.gmra.mrb[34].mxu0 %vm165_vm1, %v12003_v39  ;;  %8107 = vmatmul.mubr.msk.f32.vlgmr.msra.gmra.mrb[28].mxu1 %vm165_vm1, %v12003_v39 }
 0xe67   :  { %2691 = vmatprep.mubr.f32.mxu0 %v11617_v17  ;;  %2768 = vmatprep.mubr.f32.mxu1 %v11617_v17 }
 0xe68   :  { %10820 = vmatpush3.bf16.msra.mxu0 %v8479_v13  ;;  %10852 = vmatpush3.bf16.msra.mxu1 %v9517_v14 }
 0xe69   :  { %10822 = vmatprep.subr.bf16.mxu0 %v9510_v18  ;;  %10854 = vmatprep.subr.bf16.mxu1 %v9526_v19  ;;  %v9533_v19 = vld [vmem:[%s13600_s11 + $0x100] sm:$0xff]  }
 0xe6a   :  { %8106 = vmatmul.mubr.msk.f32.gmra.mrb[36].mxu0 %vm165_vm1, %v12021_v48  ;;  %8108 = vmatmul.mubr.msk.f32.gmra.mrb[30].mxu1 %vm165_vm1, %v12021_v48 }
 0xe6c   :  { %10824 = vmatpush3.bf16.msra.mxu0 %v9502_v20  ;;  %10856 = vmatpush3.bf16.msra.mxu1 %v9518_v23  ;;  %v9549_v20 = vld [vmem:[%s13600_s11 + $0x180] sm:$0xff]  }
 0xe6d   :  { %10826 = vmatprep.subr.bf16.mxu0 %v9511_v24  ;;  %10858 = vmatprep.subr.bf16.mxu1 %v9527_v25  ;;  %v12248_v25 = vrot.slane %v12214_v54, %v12234_v4 }
 0xe70   :  { %10828 = vmatpush3.bf16.msra.mxu0 %v9503_v26  ;;  %10860 = vmatpush3.bf16.msra.mxu1 %v9519_v27  ;;  %v9542_v26 = vld [vmem:[%s13600_s11 + $0x148] sm:$0xff]  }
 0xe71   :  { %10830 = vmatprep.subr.bf16.mxu0 %v9512_v28  ;;  %10862 = vmatprep.subr.bf16.mxu1 %v9528_v29  ;;  %v9558_v27 = vld [vmem:[%s13600_s11 + $0x1c8] sm:$0xff]  }
 0xe74   :  { %10832 = vmatpush3.bf16.msra.mxu0 %v9504_v30  ;;  %10864 = vmatpush3.bf16.msra.mxu1 %v9520_v21 }
 0xe75   :  { %10834 = vmatprep.subr.bf16.mxu0 %v9513_v31  ;;  %10866 = vmatprep.subr.bf16.mxu1 %v9529_v32 }
 0xe78   :  { %10836 = vmatpush3.bf16.msra.mxu0 %v9505_v33  ;;  %10868 = vmatpush3.bf16.msra.mxu1 %v9521_v34 }
 0xe79   :  { %10838 = vmatprep.subr.bf16.mxu0 %v9514_v35  ;;  %10870 = vmatprep.subr.bf16.mxu1 %v9530_v36  ;;  %v9534_v35 = vld [vmem:[%s13600_s11 + $0x108] sm:$0xff]  }
 0xe7a   :  { %v9550_v36 = vld [vmem:[%s13600_s11 + $0x188] sm:$0xff]  }
 0xe7c   :  { %10840 = vmatpush3.bf16.msra.mxu0 %v9506_v22  ;;  %10872 = vmatpush3.bf16.msra.mxu1 %v9522_v37 }
 0xe7d   :  { %10842 = vmatprep.subr.bf16.mxu0 %v9515_v38  ;;  %10874 = vmatprep.subr.bf16.mxu1 %v9531_v40  ;;  %v9543_v38 = vld [vmem:[%s13600_s11 + $0x150] sm:$0xff]  }
 0xe7e   :  { %v9559_v40 = vld [vmem:[%s13600_s11 + $0x1d0] sm:$0xff]  }
 0xe80   :  { %10844 = vmatpush3.bf16.msra.mxu0 %v9507_v41  ;;  %10876 = vmatpush3.bf16.msra.mxu1 %v9523_v42 }
 0xe81   :  { %10846 = vmatprep.subr.bf16.mxu0 %v9516_v43  ;;  %10878 = vmatprep.subr.bf16.mxu1 %v9532_v44 }
 0xe84   :  { %10848 = vmatpush3.bf16.msra.mxu0 %v9508_v45  ;;  %10880 = vmatpush3.bf16.msra.mxu1 %v9524_v46 }
 0xe85   :  { %10882 = vmatprep.subr.bf16.mxu0 %v9541_v47  ;;  %10914 = vmatprep.subr.bf16.mxu1 %v9557_v49  ;;  %v9535_v47 = vld [vmem:[%s13600_s11 + $0x110] sm:$0xff]  }
 0xe86   :  { %v9551_v49 = vld [vmem:[%s13600_s11 + $0x190] sm:$0xff]  }
 0xf21   :  { %v2225_v59 = vpop.f32.mrb[22].mxu0  ;;  %v2302_v60 = vpop.f32.mrb[16].mxu1 }
 0xf22   :  { %v2226_v62 = vadd.f32 %v2225_v59, %v2076_v57  ;;  %v2303_v63 = vadd.f32 %v2302_v60, %v2084_v58  ;;  %v2227_v0 = vpop.f32.mrb[23].mxu0  ;;  %v2304_v1 = vpop.f32.mrb[17].mxu1  ;;  %v9536_v60 = vld [vmem:[%s13600_s11 + $0x118] sm:$0xff]  }
 0xf23   :  { %v2228_v2 = vadd.f32 %v2227_v0, %v2080_v16  ;;  %v2305_v3 = vadd.f32 %v2304_v1, %v2088_v15  ;;  %v9561_v0 = vld [vmem:[%s13600_s11 + $0x1e0] sm:$0xff]  }
 0xf24   :  { %v2775_v10 = vmax.f32 %v2226_v62, 0.0  ;;  %v2777_v11 = vmax.f32 %v2303_v63, 0.0  ;;  %v9552_v62 = vld [vmem:[%s13600_s11 + $0x198] sm:$0xff]   ;;  %v9545_v63 = vld [vmem:[%s13600_s11 + $0x160] sm:$0xff]  }
 0xf25   :  { %v2776_v5 = vmax.f32 %v2228_v2, 0.0  ;;  %v2778_v6 = vmax.f32 %v2305_v3, 0.0  ;;  %v2231_v7 = vpop.f32.mrb[24].mxu0  ;;  %v2308_v8 = vpop.f32.mrb[18].mxu1 }
 0xf26   :  { %v2232_v12 = vadd.f32 %v2231_v7, %v2076_v57  ;;  %v2309_v13 = vadd.f32 %v2308_v8, %v2084_v58  ;;  %v2233_v14 = vpop.f32.mrb[25].mxu0  ;;  %v2310_v18 = vpop.f32.mrb[19].mxu1  ;;  %v9560_v57 = vld [vmem:[%s13600_s11 + $0x1d8] sm:$0xff]   ;;  %v9553_v7 = vld [vmem:[%s13600_s11 + $0x1a0] sm:$0xff]   ;;  %v9546_v8 = vld [vmem:[%s13600_s11 + $0x168] sm:$0xff]  }
 0xf27   :  { %v2234_v23 = vadd.f32 %v2233_v14, %v2080_v16  ;;  %v2311_v24 = vadd.f32 %v2310_v18, %v2088_v15  ;;  %3383 = vmatprep.mubr.f32.mxu0 %v2776_v5  ;;  %3458 = vmatprep.mubr.f32.mxu1 %v2778_v6  ;;  %v9537_v6 = vld [vmem:[%s13600_s11 + $0x120] sm:$0xff]   ;;  %v12342_v14 = vsub.s32 6, %v12203_v51 }
 0xf28   :  { %3384 = vmatmul.mubr.f32.vlgmr.msra.gmra.mrb[38].mxu0 %v2775_v10  ;;  %3459 = vmatmul.mubr.f32.vlgmr.msra.gmra.mrb[32].mxu1 %v2777_v11  ;;  %v2791_v31 = vmax.f32 %v2232_v12, 0.0  ;;  %v2793_v32 = vmax.f32 %v2309_v13, 0.0  ;;  %v9562_v10 = vld [vmem:[%s13600_s11 + $0x1e8] sm:$0xff]   ;;  %v12339_v13 = vsub.s32 4, %v12203_v51  ;;  %v9563_v51 = vld [vmem:[%s13600_s11 + $0x1f0] sm:$0xff]  }
 0xf29   :  { %v2792_v28 = vmax.f32 %v2234_v23, 0.0  ;;  %v2794_v29 = vmax.f32 %v2311_v24, 0.0  ;;  %10884 = vmatpush3.bf16.msra.mxu0 %v9533_v19  ;;  %10916 = vmatpush3.bf16.msra.mxu1 %v9549_v20  ;;  %v12256_v30 = vpop.f32.mrb[26].mxu0  ;;  %v12258_v21 = vpop.f32.mrb[20].mxu1  ;;  %v9538_v20 = vld [vmem:[%s13600_s11 + $0x128] sm:$0xff]   ;;  %v9547_v24 = vld [vmem:[%s13600_s11 + $0x170] sm:$0xff]  }
 0xf2a   :  { %v2381_v33 = vpop.f32.mrb[27].mxu0  ;;  %v2458_v34 = vpop.f32.mrb[21].mxu1  ;;  %10886 = vmatprep.subr.bf16.mxu0 %v9542_v26  ;;  %10918 = vmatprep.subr.bf16.mxu1 %v9558_v27  ;;  %v9554_v23 = vld [vmem:[%s13600_s11 + $0x1a8] sm:$0xff]  }
 0xf2b   :  { %v2382_v22 = vadd.f32 %v2381_v33, %v12238_v9  ;;  %v2459_v37 = vadd.f32 %v2458_v34, %v12248_v25  ;;  %3388 = vmatprep.mubr.f32.mxu0 %v2792_v28  ;;  %3463 = vmatprep.mubr.f32.mxu1 %v2794_v29  ;;  %v2092_v28 = vrot.slane %v12214_v54, %v12339_v13  ;;  %v9539_v33 = vld [vmem:[%s13600_s11 + $0x130] sm:$0xff]  }
 0xf2c   :  { %3389 = vmatmul.mubr.f32.gmra.mrb[40].mxu0 %v2791_v31  ;;  %3464 = vmatmul.mubr.f32.gmra.mrb[34].mxu1 %v2793_v32  ;;  %v2100_v29 = vrot.slane %v12214_v54, %v12342_v14  ;;  %v9555_v34 = vld [vmem:[%s13600_s11 + $0x1b0] sm:$0xff]   ;;  %v9564_v54 = vld [vmem:[%s13600_s11 + $0x1f8] sm:$0xff]  }
 0xf2d   :  { %v2780_v41 = vmax.f32 %v2382_v22, 0.0  ;;  %v2782_v42 = vmax.f32 %v2459_v37, 0.0  ;;  %10888 = vmatpush3.bf16.msra.mxu0 %v9534_v35  ;;  %10920 = vmatpush3.bf16.msra.mxu1 %v9550_v36  ;;  %v12274_v43 = vpop.f32.mrb[28].mxu0  ;;  %v12276_v44 = vpop.f32.mrb[22].mxu1  ;;  %v9548_v35 = vld [vmem:[%s13600_s11 + $0x178] sm:$0xff]   ;;  %v12387_v36 = vld [vmem:[%s13599_s10 + $0x8] sm:$0xff]  ;;  %v2380_v22 = vadd.f32 %v12256_v30, %v2092_v28 }
 0xf2e   :  { %v12278_v45 = vpop.f32.mrb[29].mxu0  ;;  %v12280_v46 = vpop.f32.mrb[23].mxu1  ;;  %10890 = vmatprep.subr.bf16.mxu0 %v9543_v38  ;;  %10922 = vmatprep.subr.bf16.mxu1 %v9559_v40  ;;  %v2457_v37 = vadd.f32 %v12258_v21, %v2100_v29  ;;  %v9540_v38 = vld [vmem:[%s13600_s11 + $0x138] sm:$0xff]   ;;  %v12403_v30 = vrot.slane %v12387_v36, %v12217_v55  ;;  %v12407_v21 = vrot.slane %v12387_v36, %v12220_v56 }
 0xf2f   :  { %3533 = vmatprep.mubr.f32.mxu0 %v2780_v41  ;;  %3608 = vmatprep.mubr.f32.mxu1 %v2782_v42  ;;  %v9556_v40 = vld [vmem:[%s13600_s11 + $0x1b8] sm:$0xff]   ;;  %v2388_v41 = vadd.f32 %v12278_v45, %v12238_v9  ;;  %v2465_v42 = vadd.f32 %v12280_v46, %v12248_v25  ;;  %v2779_v9 = vmax.f32 %v2380_v22, 0.0  ;;  %v2386_v45 = vadd.f32 %v12274_v43, %v2092_v28  ;;  %v9581_v43 = vld [vmem:[%s13600_s11 + $0x280] sm:$0xff]  }
 0xf30   :  { %v2781_v25 = vmax.f32 %v2457_v37, 0.0  ;;  %v2463_v46 = vadd.f32 %v12276_v44, %v2100_v29  ;;  %v9574_v44 = vld [vmem:[%s13600_s11 + $0x248] sm:$0xff]   ;;  %v9576_v28 = vld [vmem:[%s13600_s11 + $0x258] sm:$0xff]   ;;  %v9569_v22 = vld [vmem:[%s13600_s11 + $0x220] sm:$0xff]  }
 0xf31   :  { %10892 = vmatpush3.bf16.msra.mxu0 %v9535_v47  ;;  %10924 = vmatpush3.bf16.msra.mxu1 %v9551_v49  ;;  %v12294_v58 = vpop.f32.mrb[30].mxu0  ;;  %v12296_v16 = vpop.f32.mrb[24].mxu1  ;;  %v9573_v47 = vld [vmem:[%s13600_s11 + $0x240] sm:$0xff]   ;;  %v9592_v29 = vld [vmem:[%s13600_s11 + $0x2d8] sm:$0xff]  }
 0xf32   :  { %v12298_v15 = vpop.f32.mrb[31].mxu0  ;;  %v12300_v59 = vpop.f32.mrb[25].mxu1  ;;  %10894 = vmatprep.subr.bf16.mxu0 %v9544_v50  ;;  %10926 = vmatprep.subr.bf16.mxu1 %v9560_v57  ;;  %v9589_v49 = vld [vmem:[%s13600_s11 + $0x2c0] sm:$0xff]   ;;  %v2796_v50 = vmax.f32 %v2388_v41, 0.0  ;;  %v2798_v57 = vmax.f32 %v2465_v42, 0.0  ;;  %v9570_v41 = vld [vmem:[%s13600_s11 + $0x228] sm:$0xff]  }
 0xf33   :  { %v9585_v37 = vld [vmem:[%s13600_s11 + $0x2a0] sm:$0xff]   ;;  %v9586_v42 = vld [vmem:[%s13600_s11 + $0x2a8] sm:$0xff]  }
 0xf35   :  { %10896 = vmatpush3.bf16.msra.mxu0 %v9536_v60  ;;  %10928 = vmatpush3.bf16.msra.mxu1 %v9552_v62  ;;  %v12314_v1 = vpop.f32.mrb[32].mxu0  ;;  %v12316_v2 = vpop.f32.mrb[26].mxu1  ;;  %v2536_v60 = vadd.f32 %v12298_v15, %v12403_v30  ;;  %v2613_v62 = vadd.f32 %v12300_v59, %v12407_v21  ;;  %v9590_v15 = vld [vmem:[%s13600_s11 + $0x2c8] sm:$0xff]   ;;  %v2795_v59 = vmax.f32 %v2386_v45, 0.0  ;;  %v9571_v45 = vld [vmem:[%s13600_s11 + $0x230] sm:$0xff]  }
 0xf36   :  { %v12318_v3 = vpop.f32.mrb[33].mxu0  ;;  %v12320_v5 = vpop.f32.mrb[27].mxu1  ;;  %10898 = vmatprep.subr.bf16.mxu0 %v9545_v63  ;;  %10930 = vmatprep.subr.bf16.mxu1 %v9561_v0  ;;  %v9565_v63 = vld [vmem:[%s13600_s11 + $0x200] sm:$0xff]   ;;  %v2797_v0 = vmax.f32 %v2463_v46, 0.0  ;;  %v9587_v46 = vld [vmem:[%s13600_s11 + $0x2b0] sm:$0xff]  }
 0xf39   :  { %10900 = vmatpush3.bf16.msra.mxu0 %v9537_v6  ;;  %10932 = vmatpush3.bf16.msra.mxu1 %v9553_v7  ;;  %v12334_v11 = vpop.f32.mrb[34].mxu0  ;;  %v12336_v12 = vpop.f32.mrb[28].mxu1  ;;  %v2784_v6 = vmax.f32 %v2536_v60, 0.0  ;;  %v2786_v7 = vmax.f32 %v2613_v62, 0.0 }
 0xf3a   :  { %v12344_v18 = vpop.f32.mrb[35].mxu0  ;;  %v12346_v19 = vpop.f32.mrb[29].mxu1  ;;  %10902 = vmatprep.subr.bf16.mxu0 %v9546_v8  ;;  %10934 = vmatprep.subr.bf16.mxu1 %v9562_v10  ;;  %v9566_v8 = vld [vmem:[%s13600_s11 + $0x208] sm:$0xff]  }
 0xf3b   :  { %v9582_v10 = vld [vmem:[%s13600_s11 + $0x288] sm:$0xff]  }
 0xf3d   :  { %10904 = vmatpush3.bf16.msra.mxu0 %v9538_v20  ;;  %10936 = vmatpush3.bf16.msra.mxu1 %v9554_v23  ;;  %v12360_v26 = vpop.f32.mrb[36].mxu0  ;;  %v12362_v27 = vpop.f32.mrb[30].mxu1  ;;  %v9575_v20 = vld [vmem:[%s13600_s11 + $0x250] sm:$0xff]  }
 0xf3e   :  { %v12368_v31 = vpop.f32.mrb[37].mxu0  ;;  %v12370_v32 = vpop.f32.mrb[31].mxu1  ;;  %10906 = vmatprep.subr.bf16.mxu0 %v9547_v24  ;;  %10938 = vmatprep.subr.bf16.mxu1 %v9563_v51  ;;  %v9591_v23 = vld [vmem:[%s13600_s11 + $0x2d0] sm:$0xff]  }
 0xf3f   :  { %v9567_v24 = vld [vmem:[%s13600_s11 + $0x210] sm:$0xff]  }
 0xf40   :  { %v9583_v51 = vld [vmem:[%s13600_s11 + $0x290] sm:$0xff]  }
 0xf41   :  { %10908 = vmatpush3.bf16.msra.mxu0 %v9539_v33  ;;  %10940 = vmatpush3.bf16.msra.mxu1 %v9555_v34  ;;  %v9568_v33 = vld [vmem:[%s13600_s11 + $0x218] sm:$0xff]  }
 0xf42   :  { %10910 = vmatprep.subr.bf16.mxu0 %v9548_v35  ;;  %10942 = vmatprep.subr.bf16.mxu1 %v9564_v54  ;;  %v9584_v34 = vld [vmem:[%s13600_s11 + $0x298] sm:$0xff]   ;;  %v9577_v35 = vld [vmem:[%s13600_s11 + $0x260] sm:$0xff]  }
 0xf43   :  { %v9593_v54 = vld [vmem:[%s13600_s11 + $0x2e0] sm:$0xff]  }
 0xf45   :  { %10912 = vmatpush3.bf16.msra.mxu0 %v9540_v38  ;;  %10944 = vmatpush3.bf16.msra.mxu1 %v9556_v40  ;;  %v9578_v38 = vld [vmem:[%s13600_s11 + $0x268] sm:$0xff]  }
 0xf46   :  { %10946 = vmatprep.subr.bf16.mxu0 %v9573_v47  ;;  %10978 = vmatprep.subr.bf16.mxu1 %v9589_v49  ;;  %v9594_v40 = vld [vmem:[%s13600_s11 + $0x2e8] sm:$0xff]   ;;  %v9579_v47 = vld [vmem:[%s13600_s11 + $0x270] sm:$0xff]  }
 0xf47   :  { %v9595_v49 = vld [vmem:[%s13600_s11 + $0x2f0] sm:$0xff]  }
 0xf48   :  { %3534 = vmatmul.mubr.f32.vlgmr.msra.gmra.mrb[42].mxu0 %v2779_v9  ;;  %3609 = vmatmul.mubr.f32.vlgmr.msra.gmra.mrb[36].mxu1 %v2781_v25  ;;  %v2108_v9 = vrot.slane %v12387_v36, %v12206_v52  ;;  %v2116_v25 = vrot.slane %v12387_v36, %v12209_v53 }
 0xf49   :  { %3538 = vmatprep.mubr.f32.mxu0 %v2796_v50  ;;  %3613 = vmatprep.mubr.f32.mxu1 %v2798_v57  ;;  %v9580_v50 = vld [vmem:[%s13600_s11 + $0x278] sm:$0xff]  }
 0xf4a   :  { %10948 = vmatpush3.bf16.msra.mxu0 %v9565_v63  ;;  %10980 = vmatpush3.bf16.msra.mxu1 %v9581_v43  ;;  %v9596_v57 = vld [vmem:[%s13600_s11 + $0x2f8] sm:$0xff]   ;;  %v2534_v60 = vadd.f32 %v12294_v58, %v2108_v9  ;;  %v2611_v62 = vadd.f32 %v12296_v16, %v2116_v25  ;;  %v12523_v58 = vrot.slane %v12387_v36, %v12231_v61 }
 0xf4b   :  { %10950 = vmatprep.subr.bf16.mxu0 %v9574_v44  ;;  %10982 = vmatprep.subr.bf16.mxu1 %v9590_v15  ;;  %v9572_v63 = vld [vmem:[%s13600_s11 + $0x238] sm:$0xff]   ;;  %v2542_v44 = vadd.f32 %v12318_v3, %v12403_v30  ;;  %v2619_v15 = vadd.f32 %v12320_v5, %v12407_v21  ;;  %v12527_v16 = vrot.slane %v12387_v36, %v12234_v4 }
 0xf4c   :  { %3539 = vmatmul.mubr.f32.gmra.mrb[44].mxu0 %v2795_v59  ;;  %3614 = vmatmul.mubr.f32.gmra.mrb[38].mxu1 %v2797_v0  ;;  %v9588_v43 = vld [vmem:[%s13600_s11 + $0x2b8] sm:$0xff]   ;;  %v9605_v59 = vld [vmem:[%s13600_s11 + $0x340] sm:$0xff]   ;;  %v2783_v3 = vmax.f32 %v2534_v60, 0.0  ;;  %v2785_v5 = vmax.f32 %v2611_v62, 0.0  ;;  %v2540_v30 = vadd.f32 %v12314_v1, %v2108_v9  ;;  %v2617_v21 = vadd.f32 %v12316_v2, %v2116_v25  ;;  %v9606_v2 = vld [vmem:[%s13600_s11 + $0x348] sm:$0xff]  }
 0xf4d   :  { %3683 = vmatprep.mubr.f32.mxu0 %v2784_v6  ;;  %3758 = vmatprep.mubr.f32.mxu1 %v2786_v7  ;;  %v9621_v0 = vld [vmem:[%s13600_s11 + $0x3c0] sm:$0xff]   ;;  %v2800_v6 = vmax.f32 %v2542_v44, 0.0  ;;  %v2802_v7 = vmax.f32 %v2619_v15, 0.0  ;;  %v9610_v9 = vld [vmem:[%s13600_s11 + $0x368] sm:$0xff]   ;;  %v2124_v60 = vrot.slane %v12387_v36, %v12339_v13  ;;  %v2132_v62 = vrot.slane %v12387_v36, %v12342_v14  ;;  %v9612_v44 = vld [vmem:[%s13600_s11 + $0x378] sm:$0xff]  }
 0xf4e   :  { %10952 = vmatpush3.bf16.msra.mxu0 %v9566_v8  ;;  %10984 = vmatpush3.bf16.msra.mxu1 %v9582_v10  ;;  %v2690_v8 = vadd.f32 %v12344_v18, %v12523_v58  ;;  %v2767_v10 = vadd.f32 %v12346_v19, %v12527_v16  ;;  %v9613_v1 = vld [vmem:[%s13600_s11 + $0x380] sm:$0xff]   ;;  %v9622_v18 = vld [vmem:[%s13600_s11 + $0x3c8] sm:$0xff]   ;;  %v2799_v19 = vmax.f32 %v2540_v30, 0.0  ;;  %v9628_v15 = vld [vmem:[%s13600_s11 + $0x3f8] sm:$0xff]   ;;  %v2773_v30 = vadd.f32 %v12370_v32, %v12527_v16 }
 0xf4f   :  { %10954 = vmatprep.subr.bf16.mxu0 %v9575_v20  ;;  %10986 = vmatprep.subr.bf16.mxu1 %v9591_v23  ;;  %v9597_v20 = vld [vmem:[%s13600_s11 + $0x300] sm:$0xff]   ;;  %v2801_v23 = vmax.f32 %v2617_v21, 0.0  ;;  %v9626_v25 = vld [vmem:[%s13600_s11 + $0x3e8] sm:$0xff]   ;;  %v2688_v36 = vadd.f32 %v12334_v11, %v2124_v60  ;;  %v2694_v21 = vadd.f32 %v12360_v26, %v2124_v60 }
 0xf51   :  { %v2787_v11 = vmax.f32 %v2688_v36, 0.0 }
 0xf52   :  { %10956 = vmatpush3.bf16.msra.mxu0 %v9567_v24  ;;  %10988 = vmatpush3.bf16.msra.mxu1 %v9583_v51  ;;  %v2788_v24 = vmax.f32 %v2690_v8, 0.0  ;;  %v2790_v51 = vmax.f32 %v2767_v10, 0.0  ;;  %v2806_v8 = vmax.f32 %v2773_v30, 0.0 }
 0xf53   :  { %10958 = vmatprep.subr.bf16.mxu0 %v9576_v28  ;;  %10990 = vmatprep.subr.bf16.mxu1 %v9592_v29  ;;  %v9598_v28 = vld [vmem:[%s13600_s11 + $0x308] sm:$0xff]  }
 0xf54   :  { %v9614_v29 = vld [vmem:[%s13600_s11 + $0x388] sm:$0xff]  }
 0xf56   :  { %10960 = vmatpush3.bf16.msra.mxu0 %v9568_v33  ;;  %10992 = vmatpush3.bf16.msra.mxu1 %v9584_v34  ;;  %v9607_v33 = vld [vmem:[%s13600_s11 + $0x350] sm:$0xff]  }
 0xf57   :  { %10962 = vmatprep.subr.bf16.mxu0 %v9577_v35  ;;  %10994 = vmatprep.subr.bf16.mxu1 %v9593_v54  ;;  %v9623_v34 = vld [vmem:[%s13600_s11 + $0x3d0] sm:$0xff]  }
 0xf58   :  { %v9599_v35 = vld [vmem:[%s13600_s11 + $0x310] sm:$0xff]  }
 0xf59   :  { %v9615_v54 = vld [vmem:[%s13600_s11 + $0x390] sm:$0xff]  }
 0xf5a   :  { %10964 = vmatpush3.bf16.msra.mxu0 %v9569_v22  ;;  %10996 = vmatpush3.bf16.msra.mxu1 %v9585_v37  ;;  %v9608_v22 = vld [vmem:[%s13600_s11 + $0x358] sm:$0xff]  }
 0xf5b   :  { %10966 = vmatprep.subr.bf16.mxu0 %v9578_v38  ;;  %10998 = vmatprep.subr.bf16.mxu1 %v9594_v40  ;;  %v9624_v37 = vld [vmem:[%s13600_s11 + $0x3d8] sm:$0xff]  }
 0xf5c   :  { %v9600_v38 = vld [vmem:[%s13600_s11 + $0x318] sm:$0xff]  }
 0xf5d   :  { %v9616_v40 = vld [vmem:[%s13600_s11 + $0x398] sm:$0xff]  }
 0xf5e   :  { %10968 = vmatpush3.bf16.msra.mxu0 %v9570_v41  ;;  %11000 = vmatpush3.bf16.msra.mxu1 %v9586_v42  ;;  %v9609_v41 = vld [vmem:[%s13600_s11 + $0x360] sm:$0xff]  }
 0xf5f   :  { %10970 = vmatprep.subr.bf16.mxu0 %v9579_v47  ;;  %11002 = vmatprep.subr.bf16.mxu1 %v9595_v49  ;;  %v9625_v42 = vld [vmem:[%s13600_s11 + $0x3e0] sm:$0xff]  }
 0xf60   :  { %v9601_v47 = vld [vmem:[%s13600_s11 + $0x320] sm:$0xff]  }
 0xf61   :  { %v9617_v49 = vld [vmem:[%s13600_s11 + $0x3a0] sm:$0xff]  }
 0xf62   :  { %10972 = vmatpush3.bf16.msra.mxu0 %v9571_v45  ;;  %11004 = vmatpush3.bf16.msra.mxu1 %v9587_v46  ;;  %v9602_v45 = vld [vmem:[%s13600_s11 + $0x328] sm:$0xff]  }
 0xf63   :  { %10974 = vmatprep.subr.bf16.mxu0 %v9580_v50  ;;  %11006 = vmatprep.subr.bf16.mxu1 %v9596_v57  ;;  %v9618_v46 = vld [vmem:[%s13600_s11 + $0x3a8] sm:$0xff]   ;;  %v9611_v50 = vld [vmem:[%s13600_s11 + $0x370] sm:$0xff]  }
 0xf64   :  { %v9627_v57 = vld [vmem:[%s13600_s11 + $0x3f0] sm:$0xff]  }
 0xf66   :  { %10976 = vmatpush3.bf16.msra.mxu0 %v9572_v63  ;;  %11008 = vmatpush3.bf16.msra.mxu1 %v9588_v43  ;;  %v9603_v63 = vld [vmem:[%s13600_s11 + $0x330] sm:$0xff]  }
 0xf67   :  { %11010 = vmatprep.subr.bf16.mxu0 %v9605_v59  ;;  %11042 = vmatprep.subr.bf16.mxu1 %v9621_v0  ;;  %v9619_v43 = vld [vmem:[%s13600_s11 + $0x3b0] sm:$0xff]   ;;  %v2765_v59 = vadd.f32 %v12336_v12, %v2132_v62  ;;  %v9604_v0 = vld [vmem:[%s13600_s11 + $0x338] sm:$0xff]  }
 0xf69   :  { %3684 = vmatmul.mubr.f32.vlgmr.msra.gmra.mrb[46].mxu0 %v2783_v3  ;;  %3759 = vmatmul.mubr.f32.vlgmr.msra.gmra.mrb[40].mxu1 %v2785_v5  ;;  %v9620_v3 = vld [vmem:[%s13600_s11 + $0x3b8] sm:$0xff]   ;;  %v2696_v5 = vadd.f32 %v12368_v31, %v12523_v58  ;;  %v2789_v12 = vmax.f32 %v2765_v59, 0.0  ;;  %v2803_v31 = vmax.f32 %v2694_v21, 0.0 }
 0xf6a   :  { %3688 = vmatprep.mubr.f32.mxu0 %v2800_v6  ;;  %3763 = vmatprep.mubr.f32.mxu1 %v2802_v7  ;;  %v2771_v6 = vadd.f32 %v12362_v27, %v2132_v62 }
 0xf6b   :  { %11012 = vmatpush3.bf16.msra.mxu0 %v9597_v20  ;;  %11044 = vmatpush3.bf16.msra.mxu1 %v9613_v1  ;;  %v2804_v7 = vmax.f32 %v2696_v5, 0.0 }
 0xf6c   :  { %11014 = vmatprep.subr.bf16.mxu0 %v9606_v2  ;;  %11046 = vmatprep.subr.bf16.mxu1 %v9622_v18  ;;  %v2805_v58 = vmax.f32 %v2771_v6, 0.0 }
 0xf6d   :  { %3689 = vmatmul.mubr.f32.gmra.mrb[48].mxu0 %v2799_v19  ;;  %3764 = vmatmul.mubr.f32.gmra.mrb[42].mxu1 %v2801_v23 }
 0xf6e   :  { %3833 = vmatprep.mubr.f32.mxu0 %v2788_v24  ;;  %3908 = vmatprep.mubr.f32.mxu1 %v2790_v51 }
 0xf6f   :  { %11016 = vmatpush3.bf16.msra.mxu0 %v9598_v28  ;;  %11048 = vmatpush3.bf16.msra.mxu1 %v9614_v29 }
 0xf70   :  { %11018 = vmatprep.subr.bf16.mxu0 %v9607_v33  ;;  %11050 = vmatprep.subr.bf16.mxu1 %v9623_v34 }
 0xf73   :  { %11020 = vmatpush3.bf16.msra.mxu0 %v9599_v35  ;;  %11052 = vmatpush3.bf16.msra.mxu1 %v9615_v54 }
 0xf74   :  { %11022 = vmatprep.subr.bf16.mxu0 %v9608_v22  ;;  %11054 = vmatprep.subr.bf16.mxu1 %v9624_v37 }
 0xf77   :  { %11024 = vmatpush3.bf16.msra.mxu0 %v9600_v38  ;;  %11056 = vmatpush3.bf16.msra.mxu1 %v9616_v40 }
 0xf78   :  { %11026 = vmatprep.subr.bf16.mxu0 %v9609_v41  ;;  %11058 = vmatprep.subr.bf16.mxu1 %v9625_v42 }
 0xf7b   :  { %11028 = vmatpush3.bf16.msra.mxu0 %v9601_v47  ;;  %11060 = vmatpush3.bf16.msra.mxu1 %v9617_v49 }
 0xf7c   :  { %11030 = vmatprep.subr.bf16.mxu0 %v9610_v9  ;;  %11062 = vmatprep.subr.bf16.mxu1 %v9626_v25 }
 0xf7f   :  { %11032 = vmatpush3.bf16.msra.mxu0 %v9602_v45  ;;  %11064 = vmatpush3.bf16.msra.mxu1 %v9618_v46 }
 0xf80   :  { %11034 = vmatprep.subr.bf16.mxu0 %v9611_v50  ;;  %11066 = vmatprep.subr.bf16.mxu1 %v9627_v57 }
 0xf83   :  { %11036 = vmatpush3.bf16.msra.mxu0 %v9603_v63  ;;  %11068 = vmatpush3.bf16.msra.mxu1 %v9619_v43 }
 0xf84   :  { %11038 = vmatprep.subr.bf16.mxu0 %v9612_v44  ;;  %11070 = vmatprep.subr.bf16.mxu1 %v9628_v15 }
 0xf87   :  { %11040 = vmatpush3.bf16.msra.mxu0 %v9604_v0  ;;  %11072 = vmatpush3.bf16.msra.mxu1 %v9620_v3 }
 0xf88   :  { %10617 = vmatprep.subr.mxu1 %v11617_v17 }
 0xf8a   :  { %3834 = vmatmul.mubr.f32.vlgmr.msra.gmra.mrb[50].mxu0 %v2787_v11  ;;  %3909 = vmatmul.mubr.f32.vlgmr.msra.gmra.mrb[44].mxu1 %v2789_v12 }
 0xf8b   :  { %3838 = vmatprep.mubr.f32.mxu0 %v2804_v7  ;;  %3913 = vmatprep.mubr.f32.mxu1 %v2806_v8 }
 0xf8e   :  { %3839 = vmatmul.mubr.f32.gmra.mrb[52].mxu0 %v2803_v31  ;;  %3914 = vmatmul.mubr.f32.gmra.mrb[46].mxu1 %v2805_v58 }
 0xf8f   :  { %10619 = vmatprep.mubr.msk.f32.mxu1 %vm11618_vm2, %v11617_v17 }
 0xffb   :  { %v9843_v32 = vpop.f32.mrb[38].mxu0  ;;  %v9881_v16 = vpop.f32.mrb[32].mxu1 }
 0xffc   :  { %v9844_v26 = vpop.f32.mrb[39].mxu0  ;;  %v9882_v10 = vpop.f32.mrb[33].mxu1 }
 0xffd   :  { %v9845_v27 = vadd.f32 %v9844_v26, %v9843_v32  ;;  %v9883_v20 = vadd.f32 %v9882_v10, %v9881_v16 }
 0xfff   :  { %v3461_v1 = vadd.f32 %v9883_v20, %v9845_v27  ;;  %v9846_v2 = vpop.f32.mrb[40].mxu0  ;;  %v9884_v18 = vpop.f32.mrb[34].mxu1  ;;  %v8092_v27 = vld [vmem:[%s13601_s12] ss:$0 sm:$0xff] }
0x1000   :  { %v9847_v19 = vpop.f32.mrb[41].mxu0  ;;  %v9885_v23 = vpop.f32.mrb[35].mxu1 }
0x1001   :  { %v9848_v24 = vadd.f32 %v9847_v19, %v9846_v2  ;;  %v9886_v51 = vadd.f32 %v9885_v23, %v9884_v18 }
0x1003   :  { %v3466_v28 = vadd.f32 %v9886_v51, %v9848_v24 }
0x101b   :  { %v9919_v29 = vpop.f32.mrb[42].mxu0  ;;  %v9957_v33 = vpop.f32.mrb[36].mxu1 }
0x101c   :  { %v9920_v34 = vpop.f32.mrb[43].mxu0  ;;  %v9958_v35 = vpop.f32.mrb[37].mxu1 }
0x101d   :  { %v9921_v54 = vadd.f32 %v9920_v34, %v9919_v29  ;;  %v9959_v22 = vadd.f32 %v9958_v35, %v9957_v33 }
0x101f   :  { %v3536_v37 = vadd.f32 %v9921_v54, %v3461_v1  ;;  %v9922_v38 = vpop.f32.mrb[44].mxu0  ;;  %v9960_v40 = vpop.f32.mrb[38].mxu1 }
0x1020   :  { %v9923_v41 = vpop.f32.mrb[45].mxu0  ;;  %v9961_v42 = vpop.f32.mrb[39].mxu1 }
0x1021   :  { %v3611_v47 = vadd.f32 %v9959_v22, %v3536_v37  ;;  %v9924_v49 = vadd.f32 %v9923_v41, %v9922_v38  ;;  %v9962_v9 = vadd.f32 %v9961_v42, %v9960_v40 }
0x1023   :  { %v3541_v25 = vadd.f32 %v9924_v49, %v3466_v28 }
0x1025   :  { %v3616_v45 = vadd.f32 %v9962_v9, %v3541_v25  ;;  %v8113_v9 = vld [vmem:[%s13638_s4 + $0x30] sm:$0xff]  ;;  %v8114_v25 = vld [vmem:[%s13638_s4 + $0x38] sm:$0xff] }
0x103c   :  { %v9995_v46 = vpop.f32.mrb[46].mxu0  ;;  %v10033_v50 = vpop.f32.mrb[40].mxu1 }
0x103d   :  { %v9996_v57 = vpop.f32.mrb[47].mxu0  ;;  %v10034_v60 = vpop.f32.mrb[41].mxu1 }
0x103e   :  { %v9997_v62 = vadd.f32 %v9996_v57, %v9995_v46  ;;  %v10035_v63 = vadd.f32 %v10034_v60, %v10033_v50 }
0x1040   :  { %v3686_v43 = vadd.f32 %v9997_v62, %v3611_v47  ;;  %v9998_v44 = vpop.f32.mrb[48].mxu0  ;;  %v10036_v15 = vpop.f32.mrb[42].mxu1  ;;  %v8112_v47 = vld [vmem:[%s13638_s4 + $0x28] sm:$0xff] }
0x1041   :  { %v9999_v36 = vpop.f32.mrb[49].mxu0  ;;  %v10037_v59 = vpop.f32.mrb[43].mxu1 }
0x1042   :  { %v3761_v0 = vadd.f32 %v10035_v63, %v3686_v43  ;;  %v10000_v3 = vadd.f32 %v9999_v36, %v9998_v44  ;;  %v10038_v5 = vadd.f32 %v10037_v59, %v10036_v15  ;;  %v8109_v44 = vld [vmem:[%s13602_s13] ss:$0 sm:$0xff] }
0x1043   :  { %v8110_v36 = vld [vmem:[%s13603_s14] ss:$0 sm:$0xff] }
0x1044   :  { %v3691_v30 = vadd.f32 %v10000_v3, %v3616_v45  ;;  %v11077_v45 = vpack.c.bf16 %v8114_v25, %v8113_v9  ;;  %v8127_v25 = vld [vmem:[%s13594_s5 + $0x20] sm:$0xff] }
0x1046   :  { %v3766_v11 = vadd.f32 %v10038_v5, %v3691_v30 }
0x105d   :  { %v10071_v12 = vpop.f32.mrb[50].mxu0  ;;  %v10109_v21 = vpop.f32.mrb[44].mxu1 }
0x105e   :  { %v10072_v6 = vpop.f32.mrb[51].mxu0  ;;  %v10110_v7 = vpop.f32.mrb[45].mxu1 }
0x105f   :  { %v10073_v8 = vadd.f32 %v10072_v6, %v10071_v12  ;;  %v10111_v31 = vadd.f32 %v10110_v7, %v10109_v21  ;;  %v8116_v12 = vld [vmem:[%s13640_s30 + $0x1] ss:$0 sm:$0xff]  ;;  %s13641_s30 = smov 120  }
0x1061   :  { %v3836_v58 = vadd.f32 %v10073_v8, %v3761_v0  ;;  %v10074_v32 = vpop.f32.mrb[52].mxu0  ;;  %v10112_v16 = vpop.f32.mrb[46].mxu1 }
0x1062   :  { %v10075_v26 = vpop.f32.mrb[53].mxu0  ;;  %v10113_v10 = vpop.f32.mrb[47].mxu1 }
0x1063   :  { %v3911_v20 = vadd.f32 %v10111_v31, %v3836_v58  ;;  %v10076_v1 = vadd.f32 %v10075_v26, %v10074_v32  ;;  %v10114_v2 = vadd.f32 %v10113_v10, %v10112_v16 }
0x1065   :  { %v3841_v18 = vadd.f32 %v10076_v1, %v3766_v11  ;;  %v3919_v19 = vadd.f32 %v8092_v27, %v3911_v20 }
0x1067   :  { %v3916_v23 = vadd.f32 %v10114_v2, %v3841_v18  ;;  %v3921_v24 = vadd.f32 %v3919_v19, %v12003_v39 }
0x1069   :  { %v3925_v51 = vsel %vm165_vm1, %v3921_v24, 0.0  ;;  %v3920_v28 = vadd.f32 %v8092_v27, %v3916_v23 }
0x106a   :  { %3926 = vadd.xlane.f32.xlu1 %v3925_v51 }
0x106b   :  { %v3922_v29 = vadd.f32 %v3920_v28, %v12021_v48  ;;  %v8111_v48 = vld [vmem:[%s13638_s4 + $0x20] sm:$0xff] }
0x106c   :  { %v11073_v49 = vpack.c.bf16 %v8112_v47, %v8111_v48 }
0x106d   :  { %v3928_v33 = vsel %vm165_vm1, %v3922_v29, 0.0 }
0x106e   :  { %3929 = vadd.xlane.f32.xlu0 %v3928_v33  ;;  %11074 = vmatprep.subr.bf16.mxu0 %v11073_v49 }
0x106f   :  { %11076 = vmatpush3.bf16.msra.mxu0 %v11073_v49 }
0x1070   :  { %11078 = vmatprep.subr.bf16.mxu0 %v11077_v45 }
0x1073   :  { %11080 = vmatpush3.bf16.msra.mxu0 %v11077_v45 }
0x1074   :  { %10612 = vmatprep.subr.mxu0 %v11617_v17 }
0x10f7   :  { %v3927_v34 = vpop.xlane.xlu1 %3926 }
0x10f8   :  { %v3931_v35 = vmul.f32 0.03125, %v3927_v34 }
0x10fa   :  { %v3933_v54 = vsub.f32 %v3921_v24, %v3931_v35 }
0x10fb   :  { %v3930_v22 = vpop.xlane.xlu0 %3929 }
0x10fc   :  { %v3932_v37 = vmul.f32 0.03125, %v3930_v22  ;;  %v3935_v38 = vmul.f32 %v3933_v54, %v3933_v54 }
0x10fe   :  { %v3934_v40 = vsub.f32 %v3922_v29, %v3932_v37  ;;  %v3937_v41 = vsel %vm165_vm1, %v3935_v38, 0.0 }
0x10ff   :  { %3938 = vadd.xlane.f32.xlu1 %v3937_v41 }
0x1100   :  { %v3936_v39 = vmul.f32 %v3934_v40, %v3934_v40 }
0x1102   :  { %v3940_v42 = vsel %vm165_vm1, %v3936_v39, 0.0 }
0x1103   :  { %3941 = vadd.xlane.f32.xlu0 %v3940_v42 }
0x118c   :  { %v3939_v46 = vpop.xlane.xlu1 %3938 }
0x118d   :  { %v3943_v50 = vmul.f32 0.03125, %v3939_v46 }
0x118f   :  { %v3945_v57 = vadd.f32 1e-05, %v3943_v50 }
0x1190   :  { %v3942_v60 = vpop.xlane.xlu0 %3941 }
0x1191   :  { %11549 = vrsqrt.f32 %v3945_v57  ;;  %v3944_v62 = vmul.f32 0.03125, %v3942_v60 }
0x1193   :  { %v3946_v63 = vadd.f32 1e-05, %v3944_v62 }
0x1195   :  { %11551 = vrsqrt.f32 %v3946_v63 }
0x119b   :  { %v11550_v43 = vpop.eup %11549 }
0x119c   :  { %v3949_v15 = vmul.f32 %v11550_v43, %v3933_v54 }
0x119e   :  { %v3957_v59 = vmul.f32 %v8109_v44, %v3949_v15 }
0x119f   :  { %v11552_v0 = vpop.eup %11551 }
0x11a0   :  { %v3950_v3 = vmul.f32 %v11552_v0, %v3934_v40  ;;  %v12674_v5 = vadd.f32 %v8110_v36, %v3957_v59 }
0x11a2   :  { %v3958_v30 = vmul.f32 %v8109_v44, %v3950_v3  ;;  %10609 = vmatprep.mubr.msk.f32.mxu0 %vm165_vm1, %v12674_v5 }
0x11a4   :  { %v12678_v11 = vadd.f32 %v8110_v36, %v3958_v30 }
0x11a6   :  { %10610 = vmatmul.mubr.msk.f32.vlgmr.msra.gmra.mrb[54].mxu0 %vm165_vm1, %v12678_v11 }
0x11a7   :  { %10614 = vmatprep.mubr.msk.f32.mxu0 %vm11618_vm2, %v11617_v17 }
0x1279   :  { %v10611_v21 = vpop.f32.mrb[54].mxu0 }
0x127a   :  { %v12687_v6 = vadd.f32 %v10611_v21, %v8116_v12  ;;  %v4052_v7 = vpop.f32.mrb[55].mxu0 }
0x127b   :  { %v12689_v8 = vadd.f32 %v8116_v12, %v4052_v7 }
0x127c   :  { %4236 = vrot.lane.b32.xlu0 %v12687_v6, %s11619_s0 }
0x127d   :  { %4071 = vrot.lane.b32.xlu1 %v12689_v8, %s11619_s0 }
0x12ee   :  { %v4237_v58 = vpop.permute.xlu0 %4236 }
0x12ef   :  { %v4072_v31 = vpop.permute.xlu1 %4071 }
0x12f0   :  { %10613 = vmatpush3.xpose.msk.msra.mxu0 %vm258_vm3, %v4072_v31 }
0x12f1   :  { %10622 = vmatprep.subr.mxu0 %v11617_v17 }
0x12f3   :  { %10615 = vmatmul.mubr.msk.f32.vlgmr.msra.gmra.mrb[56].mxu0 %vm258_vm3, %v12689_v8 }
0x12f4   :  { %10623 = vmatpush3.xpose.msk.msra.mxu0 %vm258_vm3, %v4237_v58  ;;  %10624 = vmatprep.mubr.msk.f32.mxu0 %vm11618_vm2, %v11617_v17 }
0x12f5   :  { %10632 = vmatprep.subr.mxu0 %v8127_v25 }
0x12f7   :  { %10625 = vmatmul.mubr.msk.f32.vlgmr.msra.gmra.mrb[58].mxu0 %vm258_vm3, %v12687_v6 }
0x12f8   :  { %10633 = vmatpush3.msra.mxu0 %v8127_v25 }
0x12f9   :  { %10642 = vmatprep.subr.mxu0 %v11617_v17 }
0x13c6   :  { %v4143_v32 = vpop.f32.mrb[56].mxu0 }
0x13c7   :  { %v4147_v16 = vmul.f32 0.35355338, %v4143_v32  ;;  %v10616_v26 = vpop.f32.mrb[57].mxu0 }
0x13c9   :  { %v4148_v10 = vsel %vm258_vm3, %v4147_v16, -inf }
0x13ca   :  { %4149 = vmax.xlane.f32.xlu1 %v4148_v10  ;;  %v4308_v27 = vpop.f32.mrb[58].mxu0 }
0x13cb   :  { %v4312_v20 = vmul.f32 0.35355338, %v4308_v27  ;;  %v10626_v1 = vpop.f32.mrb[59].mxu0 }
0x13cd   :  { %v4313_v2 = vsel %vm258_vm3, %v4312_v20, -inf }
0x13ce   :  { %4314 = vmax.xlane.f32.xlu0 %v4313_v2 }
0x13db   :  { %4159 = vrot.lane.b32.xlu1 %v12689_v8, %s11620_s21 }
0x1457   :  { %v4150_v18 = vpop.xlane.xlu1 %4149 }
0x1458   :  { %v4151_v19 = vsub.f32 %v4147_v16, %v4150_v18 }
0x145a   :  { %v4152_v23 = vmul.f32 1.442695, %v4151_v19 }
0x145b   :  { %v4160_v24 = vpop.permute.xlu1 %4159  ;;  %v4315_v51 = vpop.xlane.xlu0 %4314 }
0x145c   :  { %11553 = vpow2.f32 %v4152_v23  ;;  %v4316_v28 = vsub.f32 %v4312_v20, %v4315_v51  ;;  %10618 = vmatpush3.msra.mxu1 %v4160_v24 }
0x145d   :  { %10627 = vmatprep.subr.mxu1 %v11617_v17 }
0x145e   :  { %v4317_v29 = vmul.f32 1.442695, %v4316_v28 }
0x1460   :  { %11555 = vpow2.f32 %v4317_v29 }
0x1466   :  { %v11554_v33 = vpop.eup %11553 }
0x1467   :  { %v4154_v34 = vsel %vm258_vm3, %v11554_v33, 0.0 }
0x1468   :  { %4155 = vadd.xlane.f32.xlu1 %v4154_v34  ;;  %v8136_v34 = vld [vmem:[%s13594_s5 + $0x28] sm:$0xff] }
0x146a   :  { %v11556_v35 = vpop.eup %11555 }
0x146b   :  { %v4319_v54 = vsel %vm258_vm3, %v11556_v35, 0.0 }
0x146c   :  { %4320 = vadd.xlane.f32.xlu0 %v4319_v54 }
0x1479   :  { %4487 = vrot.lane.b32.xlu1 %v12689_v8, %s11621_s1 }
0x147d   :  { %4485 = vrot.lane.b32.xlu1 %v12689_v8, %s13641_s30 }
0x1481   :  { %4651 = vrot.lane.b32.xlu1 %v12687_v6, %s13641_s30 }
0x1482   :  { %4324 = vrot.lane.b32.xlu0 %v12687_v6, %s11620_s21 }
0x1486   :  { %4653 = vrot.lane.b32.xlu0 %v12687_v6, %s11621_s1  ;;  %s13642_s1 = smov 56  }
0x14f5   :  { %v4156_v22 = vpop.xlane.xlu1 %4155 }
0x14f6   :  { %11557 = vrcp.f32 %v4156_v22 }
0x14f9   :  { %v4321_v37 = vpop.xlane.xlu0 %4320  ;;  %v4488_v42 = vpop.permute.xlu1 %4487 }
0x14fa   :  { %11559 = vrcp.f32 %v4321_v37 }
0x14fd   :  { %v4325_v41 = vpop.permute.xlu0 %4324  ;;  %v4486_v47 = vpop.permute.xlu1 %4485 }
0x1500   :  { %v11558_v38 = vpop.eup %11557 }
0x1501   :  { %v4158_v40 = vmul.f32 %v11558_v38, %v11554_v33  ;;  %v4654_v49 = vpop.permute.xlu0 %4653  ;;  %v4652_v9 = vpop.permute.xlu1 %4651 }
0x1503   :  { %10620 = vmatmul.mubr.msk.f32.vlgmr.msra.gmra.mrb[48].mxu1 %vm258_vm3, %v4158_v40 }
0x1504   :  { %v11560_v39 = vpop.eup %11559  ;;  %10628 = vmatpush3.msra.mxu1 %v4325_v41  ;;  %10629 = vmatprep.mubr.msk.f32.mxu1 %vm11618_vm2, %v11617_v17 }
0x1505   :  { %v4323_v48 = vmul.f32 %v11560_v39, %v11556_v35  ;;  %10637 = vmatprep.subr.mxu1 %v11617_v17 }
0x1507   :  { %10630 = vmatmul.mubr.msk.f32.vlgmr.msra.gmra.mrb[50].mxu1 %vm258_vm3, %v4323_v48 }
0x1508   :  { %10639 = vmatprep.mubr.msk.f32.mxu1 %vm11618_vm2, %v11617_v17 }
0x150b   :  { %10638 = vmatpush3.xpose.msk.msra.mxu1 %vm258_vm3, %v4488_v42 }
0x150c   :  { %10647 = vmatprep.subr.mxu1 %v11617_v17 }
0x150e   :  { %10640 = vmatmul.mubr.msk.f32.vlgmr.msra.gmra.mrb[52].mxu1 %vm258_vm3, %v4486_v47 }
0x150f   :  { %10648 = vmatpush3.xpose.msk.msra.mxu1 %vm258_vm3, %v4654_v49  ;;  %10649 = vmatprep.mubr.msk.f32.mxu1 %vm11618_vm2, %v11617_v17 }
0x1510   :  { %10662 = vmatprep.subr.mxu1 %v11617_v17 }
0x1512   :  { %10650 = vmatmul.mubr.msk.f32.vlgmr.msra.gmra.mrb[54].mxu1 %vm258_vm3, %v4652_v9 }
0x1513   :  { %10664 = vmatprep.mubr.msk.f32.mxu1 %vm11618_vm2, %v11617_v17 }
0x15d6   :  { %v4231_v45 = vpop.f32.mrb[48].mxu1 }
0x15d7   :  { %v10621_v46 = vpop.f32.mrb[49].mxu1  ;;  %10634 = vmatprep.mubr.msk.f32.mxu0 %vm258_vm3, %v4231_v45 }
0x15da   :  { %v4396_v50 = vpop.f32.mrb[50].mxu1 }
0x15db   :  { %v10631_v57 = vpop.f32.mrb[51].mxu1  ;;  %10635 = vmatmul.mubr.msk.f32.vlgmr.msra.gmra.mrb[60].mxu0 %vm258_vm3, %v4396_v50 }
0x15dc   :  { %10644 = vmatprep.mubr.msk.f32.mxu0 %vm11618_vm2, %v11617_v17 }
0x15e1   :  { %v4559_v60 = vpop.f32.mrb[52].mxu1 }
0x15e2   :  { %v4563_v62 = vmul.f32 0.35355338, %v4559_v60  ;;  %v10641_v63 = vpop.f32.mrb[53].mxu1 }
0x15e4   :  { %v4564_v43 = vsel %vm258_vm3, %v4563_v62, -inf }
0x15e5   :  { %4565 = vmax.xlane.f32.xlu0 %v4564_v43  ;;  %v4725_v44 = vpop.f32.mrb[54].mxu1 }
0x15e6   :  { %v4729_v15 = vmul.f32 0.35355338, %v4725_v44  ;;  %v10651_v36 = vpop.f32.mrb[55].mxu1 }
0x15e7   :  { %v8145_v36 = vld [vmem:[%s13594_s5 + $0x30] sm:$0xff] }
0x15e8   :  { %v4730_v59 = vsel %vm258_vm3, %v4729_v15, -inf }
0x15e9   :  { %4731 = vmax.xlane.f32.xlu1 %v4730_v59 }
0x15fa   :  { %4575 = vrot.lane.b32.xlu1 %v12689_v8, %s13642_s1 }
0x15fe   :  { %4903 = vrot.lane.b32.xlu1 %v12689_v8, %s13643_s3 }
0x1602   :  { %4901 = vrot.lane.b32.xlu1 %v12689_v8, %s13644_s23 }
0x1606   :  { %5067 = vrot.lane.b32.xlu1 %v12687_v6, %s13644_s23 }
0x1672   :  { %v4566_v0 = vpop.xlane.xlu0 %4565 }
0x1673   :  { %v4567_v3 = vsub.f32 %v4563_v62, %v4566_v0 }
0x1675   :  { %v4568_v30 = vmul.f32 1.442695, %v4567_v3 }
0x1676   :  { %v4732_v12 = vpop.xlane.xlu1 %4731 }
0x1677   :  { %11561 = vpow2.f32 %v4568_v30  ;;  %v4733_v21 = vsub.f32 %v4729_v15, %v4732_v12 }
0x1679   :  { %v4734_v7 = vmul.f32 1.442695, %v4733_v21 }
0x167a   :  { %v4576_v31 = vpop.permute.xlu1 %4575 }
0x167b   :  { %11563 = vpow2.f32 %v4734_v7  ;;  %10643 = vmatpush3.msra.mxu0 %v4576_v31 }
0x167c   :  { %10652 = vmatprep.subr.mxu0 %v11617_v17 }
0x167e   :  { %v4904_v58 = vpop.permute.xlu1 %4903 }
0x167f   :  { %10663 = vmatpush3.xpose.msk.msra.mxu1 %vm258_vm3, %v4904_v58 }
0x1680   :  { %10667 = vmatprep.subr.mxu1 %v11617_v17 }
0x1681   :  { %v11562_v32 = vpop.eup %11561 }
0x1682   :  { %v4902_v16 = vpop.permute.xlu1 %4901  ;;  %v4570_v26 = vsel %vm258_vm3, %v11562_v32, 0.0 }
0x1683   :  { %10665 = vmatmul.mubr.msk.f32.vlgmr.msra.gmra.mrb[56].mxu1 %vm258_vm3, %v4902_v16  ;;  %4571 = vadd.xlane.f32.xlu0 %v4570_v26 }
0x1684   :  { %10669 = vmatprep.mubr.msk.f32.mxu1 %vm11618_vm2, %v11617_v17 }
0x1685   :  { %v11564_v10 = vpop.eup %11563 }
0x1686   :  { %v4736_v27 = vsel %vm258_vm3, %v11564_v10, 0.0  ;;  %v5068_v47 = vpop.permute.xlu1 %5067 }
0x1687   :  { %4737 = vadd.xlane.f32.xlu0 %v4736_v27 }
0x169d   :  { %4741 = vrot.lane.b32.xlu0 %v12687_v6, %s13642_s1 }
0x16a1   :  { %5069 = vrot.lane.b32.xlu0 %v12687_v6, %s13643_s3 }
0x1710   :  { %v4572_v20 = vpop.xlane.xlu0 %4571 }
0x1711   :  { %11565 = vrcp.f32 %v4572_v20 }
0x1714   :  { %v4738_v1 = vpop.xlane.xlu0 %4737 }
0x1715   :  { %11567 = vrcp.f32 %v4738_v1 }
0x1718   :  { %v4742_v19 = vpop.permute.xlu0 %4741 }
0x171b   :  { %v11566_v2 = vpop.eup %11565 }
0x171c   :  { %v4574_v18 = vmul.f32 %v11566_v2, %v11562_v32  ;;  %v5070_v35 = vpop.permute.xlu0 %5069 }
0x171e   :  { %10645 = vmatmul.mubr.msk.f32.vlgmr.msra.gmra.mrb[62].mxu0 %vm258_vm3, %v4574_v18 }
0x171f   :  { %v11568_v23 = vpop.eup %11567  ;;  %10653 = vmatpush3.msra.mxu0 %v4742_v19  ;;  %10654 = vmatprep.mubr.msk.f32.mxu0 %vm11618_vm2, %v11617_v17 }
0x1720   :  { %v4740_v24 = vmul.f32 %v11568_v23, %v11564_v10  ;;  %10657 = vmatprep.subr.mxu0 %v8136_v34 }
0x1722   :  { %10655 = vmatmul.mubr.msk.f32.vlgmr.msra.gmra.mrb[64].mxu0 %vm258_vm3, %v4740_v24 }
0x1723   :  { %10658 = vmatpush3.msra.mxu0 %v8136_v34 }
0x1724   :  { %10672 = vmatprep.subr.mxu0 %v11617_v17 }
0x1756   :  { %v4975_v51 = vpop.f32.mrb[56].mxu1 }
0x1757   :  { %v4979_v28 = vmul.f32 0.35355338, %v4975_v51  ;;  %v10666_v29 = vpop.f32.mrb[57].mxu1 }
0x1759   :  { %v4980_v33 = vsel %vm258_vm3, %v4979_v28, -inf }
0x175a   :  { %4981 = vmax.xlane.f32.xlu0 %v4980_v33 }
0x17e7   :  { %v4982_v54 = vpop.xlane.xlu0 %4981 }
0x17e8   :  { %v4983_v22 = vsub.f32 %v4979_v28, %v4982_v54 }
0x17ea   :  { %v4984_v37 = vmul.f32 1.442695, %v4983_v22 }
0x17ec   :  { %11569 = vpow2.f32 %v4984_v37 }
0x17f1   :  { %v4647_v38 = vpop.f32.mrb[62].mxu0 }
0x17f2   :  { %v10646_v40 = vpop.f32.mrb[63].mxu0  ;;  %10659 = vmatprep.mubr.msk.f32.mxu0 %vm258_vm3, %v4647_v38 }
0x17f5   :  { %v4813_v41 = vpop.f32.mrb[64].mxu0 }
0x17f6   :  { %v11570_v39 = vpop.eup %11569  ;;  %v10656_v42 = vpop.f32.mrb[65].mxu0  ;;  %10660 = vmatmul.mubr.msk.f32.vlgmr.msra.gmra.mrb[60].mxu0 %vm258_vm3, %v4813_v41 }
0x17f7   :  { %10673 = vmatpush3.xpose.msk.msra.mxu0 %vm258_vm3, %v5070_v35  ;;  %v4986_v48 = vsel %vm258_vm3, %v11570_v39, 0.0  ;;  %10674 = vmatprep.mubr.msk.f32.mxu0 %vm11618_vm2, %v11617_v17 }
0x17f8   :  { %4987 = vadd.xlane.f32.xlu0 %v4986_v48  ;;  %10682 = vmatprep.subr.mxu0 %v8145_v36 }
0x17fa   :  { %10675 = vmatmul.mubr.msk.f32.vlgmr.msra.gmra.mrb[66].mxu0 %vm258_vm3, %v5068_v47 }
0x17fb   :  { %10683 = vmatpush3.msra.mxu0 %v8145_v36 }
0x17fc   :  { %10692 = vmatprep.subr.mxu0 %v11617_v17 }
0x1885   :  { %v4988_v46 = vpop.xlane.xlu0 %4987 }
0x1886   :  { %11571 = vrcp.f32 %v4988_v46  ;;  %v8120_v46 = vld [vmem:[%s13595_s6 + $0x1] ss:$0 sm:$0xff] }
0x1890   :  { %v11572_v57 = vpop.eup %11571 }
0x1891   :  { %v4990_v63 = vmul.f32 %v11572_v57, %v11570_v39 }
0x18cd   :  { %v5141_v49 = vpop.f32.mrb[66].mxu0 }
0x18ce   :  { %v5145_v9 = vmul.f32 0.35355338, %v5141_v49  ;;  %v10676_v25 = vpop.f32.mrb[67].mxu0 }
0x18d0   :  { %v5146_v45 = vsel %vm258_vm3, %v5145_v9, -inf }
0x18d1   :  { %5147 = vmax.xlane.f32.xlu1 %v5146_v45 }
0x18e2   :  { %4991 = vrot.lane.b32.xlu1 %v12689_v8, %s13645_s26 }
0x18e6   :  { %5319 = vrot.lane.b32.xlu1 %v12689_v8, %s13646_s22 }
0x18ea   :  { %5317 = vrot.lane.b32.xlu1 %v12689_v8, %s13647_s2 }
0x18ee   :  { %5483 = vrot.lane.b32.xlu1 %v12687_v6, %s13647_s2 }
0x195e   :  { %v5148_v50 = vpop.xlane.xlu1 %5147 }
0x195f   :  { %v5149_v60 = vsub.f32 %v5145_v9, %v5148_v50 }
0x1961   :  { %v5150_v62 = vmul.f32 1.442695, %v5149_v60 }
0x1962   :  { %v4992_v43 = vpop.permute.xlu1 %4991 }
0x1963   :  { %11573 = vpow2.f32 %v5150_v62  ;;  %10668 = vmatpush3.msra.mxu1 %v4992_v43 }
0x1964   :  { %10670 = vmatmul.mubr.msk.f32.vlgmr.msra.gmra.mrb[58].mxu1 %vm258_vm3, %v4990_v63  ;;  %10677 = vmatprep.subr.mxu1 %v11617_v17 }
0x1965   :  { %10679 = vmatprep.mubr.msk.f32.mxu1 %vm11618_vm2, %v11617_v17 }
0x1966   :  { %v5320_v3 = vpop.permute.xlu1 %5319 }
0x196a   :  { %v5318_v21 = vpop.permute.xlu1 %5317 }
0x196d   :  { %v11574_v44 = vpop.eup %11573 }
0x196e   :  { %v5152_v15 = vsel %vm258_vm3, %v11574_v44, 0.0  ;;  %v5484_v31 = vpop.permute.xlu1 %5483 }
0x196f   :  { %5153 = vadd.xlane.f32.xlu0 %v5152_v15 }
0x1985   :  { %5157 = vrot.lane.b32.xlu0 %v12687_v6, %s13645_s26 }
0x1989   :  { %5485 = vrot.lane.b32.xlu0 %v12687_v6, %s13646_s22 }
0x19fc   :  { %v5154_v59 = vpop.xlane.xlu0 %5153 }
0x19fd   :  { %11575 = vrcp.f32 %v5154_v59 }
0x1a00   :  { %v5158_v0 = vpop.permute.xlu0 %5157 }
0x1a01   :  { %10678 = vmatpush3.msra.mxu1 %v5158_v0 }
0x1a02   :  { %10687 = vmatprep.subr.mxu1 %v11617_v17 }
0x1a04   :  { %v5486_v7 = vpop.permute.xlu0 %5485 }
0x1a07   :  { %v11576_v30 = vpop.eup %11575 }
0x1a08   :  { %v5156_v12 = vmul.f32 %v11576_v30, %v11574_v44 }
0x1a0a   :  { %10680 = vmatmul.mubr.msk.f32.vlgmr.msra.gmra.mrb[60].mxu1 %vm258_vm3, %v5156_v12 }
0x1a0b   :  { %10688 = vmatpush3.xpose.msk.msra.mxu1 %vm258_vm3, %v5320_v3  ;;  %10689 = vmatprep.mubr.msk.f32.mxu1 %vm11618_vm2, %v11617_v17 }
0x1a0c   :  { %10697 = vmatprep.subr.mxu1 %v11617_v17 }
0x1a0e   :  { %10690 = vmatmul.mubr.msk.f32.vlgmr.msra.gmra.mrb[62].mxu1 %vm258_vm3, %v5318_v21 }
0x1a0f   :  { %10698 = vmatpush3.xpose.msk.msra.mxu1 %vm258_vm3, %v5486_v7  ;;  %10699 = vmatprep.mubr.msk.f32.mxu1 %vm11618_vm2, %v11617_v17 }
0x1a12   :  { %10700 = vmatmul.mubr.msk.f32.vlgmr.msra.gmra.mrb[64].mxu1 %vm258_vm3, %v5484_v31 }
0x1a13   :  { %6042 = vmatprep.mubr.f32.mxu1 %v11617_v17 }
0x1a37   :  { %v5063_v58 = vpop.f32.mrb[58].mxu1 }
0x1a38   :  { %v10671_v32 = vpop.f32.mrb[59].mxu1  ;;  %10684 = vmatprep.mubr.msk.f32.mxu0 %vm258_vm3, %v5063_v58  ;;  %v8171_v58 = vld [vmem:[%s13598_s9 + $0x140] sm:$0xff] }
0x1a39   :  { %v8164_v32 = vld [vmem:[%s13598_s9 + $0x108] sm:$0xff] }
0x1add   :  { %v5229_v16 = vpop.f32.mrb[60].mxu1 }
0x1ade   :  { %v10681_v26 = vpop.f32.mrb[61].mxu1  ;;  %10685 = vmatmul.mubr.msk.f32.vlgmr.msra.gmra.mrb[60].mxu0 %vm258_vm3, %v5229_v16 }
0x1adf   :  { %10694 = vmatprep.mubr.msk.f32.mxu0 %vm11618_vm2, %v11617_v17  ;;  %v8172_v26 = vld [vmem:[%s13598_s9 + $0x148] sm:$0xff] }
0x1ae1   :  { %v5391_v10 = vpop.f32.mrb[62].mxu1 }
0x1ae2   :  { %v5395_v27 = vmul.f32 0.35355338, %v5391_v10  ;;  %v10691_v20 = vpop.f32.mrb[63].mxu1 }
0x1ae3   :  { %v11471_v20 = vcombine.low %v8164_v32, %v8172_v26 }
0x1ae4   :  { %v5396_v1 = vsel %vm258_vm3, %v5395_v27, -inf }
0x1ae5   :  { %5397 = vmax.xlane.f32.xlu0 %v5396_v1  ;;  %v5557_v2 = vpop.f32.mrb[64].mxu1  ;;  %v8179_v1 = vld [vmem:[%s13598_s9 + $0x180] sm:$0xff] }
0x1ae6   :  { %v5561_v18 = vmul.f32 0.35355338, %v5557_v2  ;;  %v10701_v19 = vpop.f32.mrb[65].mxu1  ;;  %v8187_v2 = vld [vmem:[%s13598_s9 + $0x1c0] sm:$0xff] }
0x1ae7   :  { %v11468_v19 = vcombine.high %v8179_v1, %v8187_v2 }
0x1ae8   :  { %v5562_v23 = vsel %vm258_vm3, %v5561_v18, -inf }
0x1ae9   :  { %5563 = vmax.xlane.f32.xlu1 %v5562_v23  ;;  %v8188_v23 = vld [vmem:[%s13598_s9 + $0x1c8] sm:$0xff] }
0x1afa   :  { %5407 = vrot.lane.b32.xlu1 %v12689_v8, %s13648_s29 }
0x1b72   :  { %v5398_v24 = vpop.xlane.xlu0 %5397 }
0x1b73   :  { %v5399_v51 = vsub.f32 %v5395_v27, %v5398_v24  ;;  %v11470_v27 = vcombine.high %v8164_v32, %v8172_v26  ;;  %v11469_v24 = vcombine.low %v8179_v1, %v8187_v2  ;;  %v8192_v32 = vld [vmem:[%s13598_s9 + $0x1e8] sm:$0xff]  ;;  %v8177_v1 = vld [vmem:[%s13598_s9 + $0x170] sm:$0xff]  ;;  %v8170_v2 = vld [vmem:[%s13598_s9 + $0x138] sm:$0xff] }
0x1b75   :  { %v5400_v28 = vmul.f32 1.442695, %v5399_v51 }
0x1b76   :  { %v5564_v29 = vpop.xlane.xlu1 %5563 }
0x1b77   :  { %11577 = vpow2.f32 %v5400_v28  ;;  %v5565_v33 = vsub.f32 %v5561_v18, %v5564_v29  ;;  %v8180_v18 = vld [vmem:[%s13598_s9 + $0x188] sm:$0xff]  ;;  %v8165_v29 = vld [vmem:[%s13598_s9 + $0x110] sm:$0xff] }
0x1b78   :  { %v11472_v51 = vcombine.high %v8180_v18, %v8188_v23  ;;  %v11473_v28 = vcombine.low %v8180_v18, %v8188_v23  ;;  %v8178_v18 = vld [vmem:[%s13598_s9 + $0x178] sm:$0xff] }
0x1b79   :  { %v5566_v34 = vmul.f32 1.442695, %v5565_v33  ;;  %v8173_v33 = vld [vmem:[%s13598_s9 + $0x150] sm:$0xff] }
0x1b7a   :  { %v5408_v35 = vpop.permute.xlu1 %5407 }
0x1b7b   :  { %11579 = vpow2.f32 %v5566_v34  ;;  %10693 = vmatpush3.msra.mxu0 %v5408_v35  ;;  %v8166_v34 = vld [vmem:[%s13598_s9 + $0x118] sm:$0xff]  ;;  %v11474_v35 = vcombine.high %v8165_v29, %v8173_v33 }
0x1b7c   :  { %10702 = vmatprep.subr.mxu0 %v11617_v17 }
0x1b81   :  { %v11578_v54 = vpop.eup %11577 }
0x1b82   :  { %v5402_v22 = vsel %vm258_vm3, %v11578_v54, 0.0 }
0x1b83   :  { %5403 = vadd.xlane.f32.xlu0 %v5402_v22  ;;  %v11475_v22 = vcombine.low %v8165_v29, %v8173_v33  ;;  %v8193_v29 = vld [vmem:[%s13598_s9 + $0x1f0] sm:$0xff]  ;;  %v8186_v33 = vld [vmem:[%s13598_s9 + $0x1b8] sm:$0xff] }
0x1b85   :  { %v11580_v37 = vpop.eup %11579 }
0x1b86   :  { %v5568_v38 = vsel %vm258_vm3, %v11580_v37, 0.0 }
0x1b87   :  { %5569 = vadd.xlane.f32.xlu0 %v5568_v38 }
0x1b9d   :  { %5573 = vrot.lane.b32.xlu0 %v12687_v6, %s13648_s29  ;;  %v8154_v6 = vld [vmem:[%s13594_s5 + $0x38] sm:$0xff] }
0x1c10   :  { %v5404_v8 = vpop.xlane.xlu0 %5403 }
0x1c11   :  { %11581 = vrcp.f32 %v5404_v8 }
0x1c14   :  { %v5570_v40 = vpop.xlane.xlu0 %5569 }
0x1c15   :  { %11583 = vrcp.f32 %v5570_v40 }
0x1c18   :  { %v5574_v42 = vpop.permute.xlu0 %5573 }
0x1c1b   :  { %v11582_v41 = vpop.eup %11581 }
0x1c1c   :  { %v5406_v39 = vmul.f32 %v11582_v41, %v11578_v54  ;;  %v8174_v54 = vld [vmem:[%s13598_s9 + $0x158] sm:$0xff] }
0x1c1d   :  { %v11479_v38 = vcombine.low %v8166_v34, %v8174_v54 }
0x1c1e   :  { %10695 = vmatmul.mubr.msk.f32.vlgmr.msra.gmra.mrb[68].mxu0 %vm258_vm3, %v5406_v39 }
0x1c1f   :  { %v11584_v48 = vpop.eup %11583  ;;  %10703 = vmatpush3.msra.mxu0 %v5574_v42  ;;  %10704 = vmatprep.mubr.msk.f32.mxu0 %vm11618_vm2, %v11617_v17 }
0x1c20   :  { %v5572_v47 = vmul.f32 %v11584_v48, %v11580_v37  ;;  %10707 = vmatprep.subr.mxu0 %v8154_v6  ;;  %v11478_v37 = vcombine.high %v8166_v34, %v8174_v54  ;;  %v8194_v34 = vld [vmem:[%s13598_s9 + $0x1f8] sm:$0xff]  ;;  %v11495_v54 = vcombine.low %v8170_v2, %v8178_v18 }
0x1c22   :  { %10705 = vmatmul.mubr.msk.f32.vlgmr.msra.gmra.mrb[70].mxu0 %vm258_vm3, %v5572_v47 }
0x1c23   :  { %10708 = vmatpush3.msra.mxu0 %v8154_v6 }
0x1c24   :  { %11090 = vmatprep.subr.bf16.mxu0 %v11470_v27 }
0x1cf1   :  { %v5479_v49 = vpop.f32.mrb[68].mxu0 }
0x1cf2   :  { %v10696_v9 = vpop.f32.mrb[69].mxu0  ;;  %10709 = vmatprep.mubr.msk.f32.mxu0 %vm258_vm3, %v5479_v49  ;;  %v8159_v49 = vld [vmem:[%s13596_s7 + $0x1] ss:$0 sm:$0xff] }
0x1cf5   :  { %v5645_v25 = vpop.f32.mrb[70].mxu0 }
0x1cf6   :  { %v10706_v45 = vpop.f32.mrb[71].mxu0  ;;  %10710 = vmatmul.mubr.msk.f32.vlgmr.msra.gmra.mrb[60].mxu0 %vm258_vm3, %v5645_v25 }
0x1cf7   :  { %6119 = vmatprep.mubr.f32.mxu0 %v11617_v17  ;;  %11092 = vmatpush1.bf16.msra.mxu0 %v11471_v20  ;;  %v8160_v45 = vld [vmem:[%s13597_s8 + $0x1] ss:$0 sm:$0xff]  ;;  %v8169_v20 = vld [vmem:[%s13598_s9 + $0x130] sm:$0xff] }
0x1cf8   :  { %11094 = vmatprep.subr.bf16.mxu0 %v11472_v51  ;;  %v11494_v51 = vcombine.high %v8170_v2, %v8178_v18 }
0x1cfb   :  { %11096 = vmatpush1.bf16.msra.mxu0 %v11473_v28  ;;  %v8185_v28 = vld [vmem:[%s13598_s9 + $0x1b0] sm:$0xff] }
0x1cfc   :  { %11106 = vmatprep.subr.bf16.mxu0 %v11478_v37  ;;  %v11496_v37 = vcombine.high %v8186_v33, %v8194_v34 }
0x1dc9   :  { %v10711_v50 = vpop.f32.mrb[60].mxu0 }
0x1dca   :  { %v11420_v57 = vadd.f32 %v10711_v50, %v8120_v46  ;;  %v5722_v60 = vpop.f32.mrb[61].mxu0 }
0x1dcb   :  { %v11421_v62 = vadd.f32 %v8120_v46, %v5722_v60  ;;  %v8181_v46 = vld [vmem:[%s13598_s9 + $0x190] sm:$0xff]  ;;  %v8182_v60 = vld [vmem:[%s13598_s9 + $0x198] sm:$0xff] }
0x1dcc   :  { %v5734_v63 = vadd.f32 %v11420_v57, %v12678_v11  ;;  %v8189_v57 = vld [vmem:[%s13598_s9 + $0x1d0] sm:$0xff] }
0x1dcd   :  { %v5733_v43 = vadd.f32 %v11421_v62, %v12674_v5  ;;  %v8163_v5 = vld [vmem:[%s13598_s9 + $0x100] sm:$0xff]  ;;  %v8190_v62 = vld [vmem:[%s13598_s9 + $0x1d8] sm:$0xff] }
0x1dce   :  { %v5742_v44 = vsel %vm165_vm1, %v5734_v63, 0.0  ;;  %v11466_v16 = vcombine.high %v8163_v5, %v8171_v58  ;;  %v11467_v10 = vcombine.low %v8163_v5, %v8171_v58  ;;  %v8191_v5 = vld [vmem:[%s13598_s9 + $0x1e0] sm:$0xff]  ;;  %v8184_v58 = vld [vmem:[%s13598_s9 + $0x1a8] sm:$0xff] }
0x1dcf   :  { %5743 = vadd.xlane.f32.xlu0 %v5742_v44  ;;  %v5739_v15 = vsel %vm165_vm1, %v5733_v43, 0.0  ;;  %v11476_v44 = vcombine.high %v8181_v46, %v8189_v57  ;;  %v11488_v27 = vcombine.high %v8184_v58, %v8192_v32  ;;  %v11489_v23 = vcombine.low %v8184_v58, %v8192_v32  ;;  %v9660_v58 = vld [vmem:[%s13600_s11 + $0x4f8] sm:$0xff]  }
0x1dd0   :  { %5740 = vadd.xlane.f32.xlu1 %v5739_v15  ;;  %11082 = vmatprep.subr.bf16.mxu1 %v11466_v16  ;;  %v11480_v15 = vcombine.high %v8182_v60, %v8190_v62  ;;  %v9636_v32 = vld [vmem:[%s13600_s11 + $0x438] sm:$0xff]  }
0x1dd1   :  { %11084 = vmatpush1.bf16.msra.mxu1 %v11467_v10 }
0x1dd2   :  { %11086 = vmatprep.subr.bf16.mxu1 %v11468_v19 }
0x1dd5   :  { %11088 = vmatpush1.bf16.msra.mxu1 %v11469_v24  ;;  %v11490_v24 = vcombine.high %v8169_v20, %v8177_v1 }
0x1dd6   :  { %11098 = vmatprep.subr.bf16.mxu1 %v11474_v35  ;;  %v11491_v35 = vcombine.low %v8169_v20, %v8177_v1 }
0x1e5c   :  { %v5744_v36 = vpop.xlane.xlu0 %5743 }
0x1e5d   :  { %v5746_v59 = vmul.f32 0.03125, %v5744_v36  ;;  %v5741_v0 = vpop.xlane.xlu1 %5740  ;;  %v8167_v36 = vld [vmem:[%s13598_s9 + $0x120] sm:$0xff] }
0x1e5e   :  { %v5745_v3 = vmul.f32 0.03125, %v5741_v0  ;;  %v8168_v0 = vld [vmem:[%s13598_s9 + $0x128] sm:$0xff] }
0x1e5f   :  { %v5748_v30 = vsub.f32 %v5734_v63, %v5746_v59  ;;  %v8175_v59 = vld [vmem:[%s13598_s9 + $0x160] sm:$0xff] }
0x1e60   :  { %v5747_v12 = vsub.f32 %v5733_v43, %v5745_v3  ;;  %v8176_v3 = vld [vmem:[%s13598_s9 + $0x168] sm:$0xff]  ;;  %v11483_v16 = vcombine.low %v8167_v36, %v8175_v59 }
0x1e61   :  { %v5750_v21 = vmul.f32 %v5748_v30, %v5748_v30  ;;  %v11487_v26 = vcombine.low %v8168_v0, %v8176_v3 }
0x1e62   :  { %v5749_v7 = vmul.f32 %v5747_v12, %v5747_v12 }
0x1e63   :  { %v5754_v31 = vsel %vm165_vm1, %v5750_v21, 0.0 }
0x1e64   :  { %5755 = vadd.xlane.f32.xlu0 %v5754_v31  ;;  %v5751_v11 = vsel %vm165_vm1, %v5749_v7, 0.0  ;;  %v11482_v7 = vcombine.high %v8167_v36, %v8175_v59  ;;  %v11486_v31 = vcombine.high %v8168_v0, %v8176_v3  ;;  %v9649_v36 = vld [vmem:[%s13600_s11 + $0x4a0] sm:$0xff]   ;;  %v9642_v59 = vld [vmem:[%s13600_s11 + $0x468] sm:$0xff]  }
0x1e65   :  { %5752 = vadd.xlane.f32.xlu1 %v5751_v11  ;;  %v8183_v11 = vld [vmem:[%s13598_s9 + $0x1a0] sm:$0xff]  ;;  %v9658_v0 = vld [vmem:[%s13600_s11 + $0x4e8] sm:$0xff]  }
0x1e66   :  { %v11484_v10 = vcombine.high %v8183_v11, %v8191_v5  ;;  %v11485_v19 = vcombine.low %v8183_v11, %v8191_v5  ;;  %v9634_v3 = vld [vmem:[%s13600_s11 + $0x428] sm:$0xff]   ;;  %v9651_v11 = vld [vmem:[%s13600_s11 + $0x4b0] sm:$0xff]   ;;  %v9644_v5 = vld [vmem:[%s13600_s11 + $0x478] sm:$0xff]  }
0x1ef1   :  { %v5756_v8 = vpop.xlane.xlu0 %5755 }
0x1ef2   :  { %v5758_v40 = vmul.f32 0.03125, %v5756_v8  ;;  %v5753_v41 = vpop.xlane.xlu1 %5752  ;;  %v11497_v8 = vcombine.low %v8186_v33, %v8194_v34 }
0x1ef3   :  { %v5757_v39 = vmul.f32 0.03125, %v5753_v41  ;;  %v9653_v41 = vld [vmem:[%s13600_s11 + $0x4c0] sm:$0xff]  }
0x1ef4   :  { %v5760_v42 = vadd.f32 1e-05, %v5758_v40  ;;  %v9637_v40 = vld [vmem:[%s13600_s11 + $0x440] sm:$0xff]  }
0x1ef5   :  { %v5759_v48 = vadd.f32 1e-05, %v5757_v39  ;;  %v9629_v39 = vld [vmem:[%s13600_s11 + $0x400] sm:$0xff]  }
0x1ef6   :  { %11585 = vrsqrt.f32 %v5760_v42  ;;  %v9645_v42 = vld [vmem:[%s13600_s11 + $0x480] sm:$0xff]  }
0x1ef7   :  { %11587 = vrsqrt.f32 %v5759_v48  ;;  %v9638_v48 = vld [vmem:[%s13600_s11 + $0x448] sm:$0xff]  }
0x1f00   :  { %v11586_v47 = vpop.eup %11585 }
0x1f01   :  { %v11588_v6 = vpop.eup %11587  ;;  %v5764_v9 = vmul.f32 %v11586_v47, %v5748_v30  ;;  %v11477_v30 = vcombine.low %v8181_v46, %v8189_v57  ;;  %v9654_v47 = vld [vmem:[%s13600_s11 + $0x4c8] sm:$0xff]   ;;  %v9647_v46 = vld [vmem:[%s13600_s11 + $0x490] sm:$0xff]   ;;  %v9656_v57 = vld [vmem:[%s13600_s11 + $0x4d8] sm:$0xff]  }
0x1f02   :  { %v5763_v25 = vmul.f32 %v11588_v6, %v5747_v12  ;;  %v11481_v12 = vcombine.low %v8182_v60, %v8190_v62  ;;  %v9630_v6 = vld [vmem:[%s13600_s11 + $0x408] sm:$0xff]   ;;  %v9632_v60 = vld [vmem:[%s13600_s11 + $0x418] sm:$0xff]  }
0x1f03   :  { %v5772_v63 = vmul.f32 %v8159_v49, %v5764_v9  ;;  %v9639_v9 = vld [vmem:[%s13600_s11 + $0x450] sm:$0xff]   ;;  %v9648_v62 = vld [vmem:[%s13600_s11 + $0x498] sm:$0xff]  }
0x1f04   :  { %v5771_v50 = vmul.f32 %v8159_v49, %v5763_v25  ;;  %v9646_v49 = vld [vmem:[%s13600_s11 + $0x488] sm:$0xff]   ;;  %v9655_v25 = vld [vmem:[%s13600_s11 + $0x4d0] sm:$0xff]  }
0x1f05   :  { %v12922_v21 = vadd.f32 %v8160_v45, %v5772_v63  ;;  %v9641_v63 = vld [vmem:[%s13600_s11 + $0x460] sm:$0xff]  }
0x1f06   :  { %v12904_v43 = vadd.f32 %v8160_v45, %v5771_v50  ;;  %v9631_v45 = vld [vmem:[%s13600_s11 + $0x410] sm:$0xff]   ;;  %v9640_v50 = vld [vmem:[%s13600_s11 + $0x458] sm:$0xff]  }
0x1f08   :  { %8197 = vmatmul.mubr.msk.f32.vlgmr.msra.gmra.mrb[66].mxu1 %vm165_vm1, %v12904_v43  ;;  %8199 = vmatmul.mubr.msk.f32.vlgmr.msra.gmra.mrb[72].mxu0 %vm165_vm1, %v12904_v43 }
0x1f09   :  { %11100 = vmatpush1.bf16.msra.mxu1 %v11475_v22  ;;  %11108 = vmatpush1.bf16.msra.mxu0 %v11479_v38  ;;  %v11492_v22 = vcombine.high %v8185_v28, %v8193_v29  ;;  %v11493_v38 = vcombine.low %v8185_v28, %v8193_v29 }
0x1f0a   :  { %6048 = vmatprep.mubr.f32.mxu1 %v11617_v17  ;;  %6125 = vmatprep.mubr.f32.mxu0 %v11617_v17 }
0x1f0b   :  { %11102 = vmatprep.subr.bf16.mxu1 %v11476_v44  ;;  %11110 = vmatprep.subr.bf16.mxu0 %v11480_v15  ;;  %v9657_v44 = vld [vmem:[%s13600_s11 + $0x4e0] sm:$0xff]  }
0x1f0c   :  { %8198 = vmatmul.mubr.msk.f32.gmra.mrb[68].mxu1 %vm165_vm1, %v12922_v21  ;;  %8200 = vmatmul.mubr.msk.f32.gmra.mrb[74].mxu0 %vm165_vm1, %v12922_v21  ;;  %v9633_v15 = vld [vmem:[%s13600_s11 + $0x420] sm:$0xff]  }
0x1f0d   :  { %11104 = vmatpush1.bf16.msra.mxu1 %v11477_v30  ;;  %11112 = vmatpush1.bf16.msra.mxu0 %v11481_v12  ;;  %v9650_v30 = vld [vmem:[%s13600_s11 + $0x4a8] sm:$0xff]   ;;  %v9643_v12 = vld [vmem:[%s13600_s11 + $0x470] sm:$0xff]  }
0x1f0e   :  { %6196 = vmatprep.mubr.f32.mxu1 %v11617_v17  ;;  %6273 = vmatprep.mubr.f32.mxu0 %v11617_v17 }
0x1f0f   :  { %11114 = vmatprep.subr.bf16.mxu1 %v11482_v7  ;;  %11122 = vmatprep.subr.bf16.mxu0 %v11486_v31  ;;  %v9659_v7 = vld [vmem:[%s13600_s11 + $0x4f0] sm:$0xff]  }
0x1f10   :  { %8201 = vmatmul.mubr.msk.f32.vlgmr.msra.gmra.mrb[70].mxu1 %vm165_vm1, %v12904_v43  ;;  %8203 = vmatmul.mubr.msk.f32.vlgmr.msra.gmra.mrb[76].mxu0 %vm165_vm1, %v12904_v43  ;;  %v9635_v31 = vld [vmem:[%s13600_s11 + $0x430] sm:$0xff]  }
0x1f11   :  { %11116 = vmatpush1.bf16.msra.mxu1 %v11483_v16  ;;  %11124 = vmatpush1.bf16.msra.mxu0 %v11487_v26  ;;  %v9652_v16 = vld [vmem:[%s13600_s11 + $0x4b8] sm:$0xff]   ;;  %v9669_v26 = vld [vmem:[%s13600_s11 + $0x540] sm:$0xff]  }
0x1f12   :  { %6202 = vmatprep.mubr.f32.mxu1 %v11617_v17  ;;  %6279 = vmatprep.mubr.f32.mxu0 %v11617_v17 }
0x1f13   :  { %11118 = vmatprep.subr.bf16.mxu1 %v11484_v10  ;;  %11126 = vmatprep.subr.bf16.mxu0 %v11488_v27  ;;  %v9685_v10 = vld [vmem:[%s13600_s11 + $0x5c0] sm:$0xff]   ;;  %v13107_v27 = vld [vmem:[%s13599_s10 + $0x10] sm:$0xff] }
0x1f14   :  { %8202 = vmatmul.mubr.msk.f32.gmra.mrb[72].mxu1 %vm165_vm1, %v12922_v21  ;;  %8204 = vmatmul.mubr.msk.f32.gmra.mrb[78].mxu0 %vm165_vm1, %v12922_v21  ;;  %v5895_v20 = vrot.slane %v13107_v27, %v12206_v52  ;;  %v5903_v1 = vrot.slane %v13107_v27, %v12209_v53  ;;  %v5899_v2 = vrot.slane %v13107_v27, %v12217_v55 }
0x1f15   :  { %11120 = vmatpush1.bf16.msra.mxu1 %v11485_v19  ;;  %11128 = vmatpush1.bf16.msra.mxu0 %v11489_v23  ;;  %v5907_v18 = vrot.slane %v13107_v27, %v12220_v56 }
0x1f16   :  { %6350 = vmatprep.mubr.f32.mxu1 %v11617_v17  ;;  %6427 = vmatprep.mubr.f32.mxu0 %v11617_v17 }
0x1f17   :  { %11130 = vmatprep.subr.bf16.mxu1 %v11490_v24  ;;  %11138 = vmatprep.subr.bf16.mxu0 %v11494_v51 }
0x1f18   :  { %8205 = vmatmul.mubr.msk.f32.vlgmr.msra.gmra.mrb[74].mxu1 %vm165_vm1, %v12904_v43  ;;  %8207 = vmatmul.mubr.msk.f32.vlgmr.msra.gmra.mrb[80].mxu0 %vm165_vm1, %v12904_v43 }
0x1f19   :  { %11132 = vmatpush1.bf16.msra.mxu1 %v11491_v35  ;;  %11140 = vmatpush1.bf16.msra.mxu0 %v11495_v54 }
0x1f1a   :  { %6356 = vmatprep.mubr.f32.mxu1 %v11617_v17  ;;  %6433 = vmatprep.mubr.f32.mxu0 %v11617_v17 }
0x1f1b   :  { %11134 = vmatprep.subr.bf16.mxu1 %v11492_v22  ;;  %11142 = vmatprep.subr.bf16.mxu0 %v11496_v37 }
0x1f1c   :  { %8206 = vmatmul.mubr.msk.f32.gmra.mrb[76].mxu1 %vm165_vm1, %v12922_v21  ;;  %8208 = vmatmul.mubr.msk.f32.gmra.mrb[82].mxu0 %vm165_vm1, %v12922_v21 }
0x1f1d   :  { %11136 = vmatpush1.bf16.msra.mxu1 %v11493_v38  ;;  %11144 = vmatpush1.bf16.msra.mxu0 %v11497_v8  ;;  %v13119_v38 = vrot.slane %v13107_v27, %v12231_v61 }
0x1f1e   :  { %6504 = vmatprep.mubr.f32.mxu1 %v11617_v17  ;;  %6581 = vmatprep.mubr.f32.mxu0 %v11617_v17 }
0x1f1f   :  { %11146 = vmatprep.subr.bf16.mxu1 %v9637_v40  ;;  %11178 = vmatprep.subr.bf16.mxu0 %v9653_v41 }
0x1f20   :  { %8209 = vmatmul.mubr.msk.f32.vlgmr.msra.gmra.mrb[78].mxu1 %vm165_vm1, %v12904_v43  ;;  %8211 = vmatmul.mubr.msk.f32.vlgmr.msra.gmra.mrb[84].mxu0 %vm165_vm1, %v12904_v43 }
0x1f21   :  { %6510 = vmatprep.mubr.f32.mxu1 %v11617_v17  ;;  %6587 = vmatprep.mubr.f32.mxu0 %v11617_v17 }
0x1f22   :  { %11148 = vmatpush3.bf16.msra.mxu1 %v9629_v39  ;;  %11180 = vmatpush3.bf16.msra.mxu0 %v9645_v42 }
0x1f23   :  { %11150 = vmatprep.subr.bf16.mxu1 %v9638_v48  ;;  %11182 = vmatprep.subr.bf16.mxu0 %v9654_v47  ;;  %v9661_v47 = vld [vmem:[%s13600_s11 + $0x500] sm:$0xff]  }
0x1f24   :  { %8210 = vmatmul.mubr.msk.f32.gmra.mrb[80].mxu1 %vm165_vm1, %v12922_v21  ;;  %8212 = vmatmul.mubr.msk.f32.gmra.mrb[86].mxu0 %vm165_vm1, %v12922_v21 }
0x1f26   :  { %11152 = vmatpush3.bf16.msra.mxu1 %v9630_v6  ;;  %11184 = vmatpush3.bf16.msra.mxu0 %v9646_v49  ;;  %v9677_v6 = vld [vmem:[%s13600_s11 + $0x580] sm:$0xff]  }
0x1f27   :  { %11154 = vmatprep.subr.bf16.mxu1 %v9639_v9  ;;  %11186 = vmatprep.subr.bf16.mxu0 %v9655_v25  ;;  %v13129_v25 = vrot.slane %v13107_v27, %v12234_v4 }
0x1f2a   :  { %11156 = vmatpush3.bf16.msra.mxu1 %v9631_v45  ;;  %11188 = vmatpush3.bf16.msra.mxu0 %v9647_v46  ;;  %v9670_v45 = vld [vmem:[%s13600_s11 + $0x548] sm:$0xff]  }
0x1f2b   :  { %11158 = vmatprep.subr.bf16.mxu1 %v9640_v50  ;;  %11190 = vmatprep.subr.bf16.mxu0 %v9656_v57  ;;  %v9686_v46 = vld [vmem:[%s13600_s11 + $0x5c8] sm:$0xff]  }
0x1f2e   :  { %11160 = vmatpush3.bf16.msra.mxu1 %v9632_v60  ;;  %11192 = vmatpush3.bf16.msra.mxu0 %v9648_v62 }
0x1f2f   :  { %11162 = vmatprep.subr.bf16.mxu1 %v9641_v63  ;;  %11194 = vmatprep.subr.bf16.mxu0 %v9657_v44 }
0x1f32   :  { %11164 = vmatpush3.bf16.msra.mxu1 %v9633_v15  ;;  %11196 = vmatpush3.bf16.msra.mxu0 %v9649_v36 }
0x1f33   :  { %11166 = vmatprep.subr.bf16.mxu1 %v9642_v59  ;;  %11198 = vmatprep.subr.bf16.mxu0 %v9658_v0  ;;  %v9662_v59 = vld [vmem:[%s13600_s11 + $0x508] sm:$0xff]  }
0x1f34   :  { %v9678_v0 = vld [vmem:[%s13600_s11 + $0x588] sm:$0xff]  }
0x1f36   :  { %11168 = vmatpush3.bf16.msra.mxu1 %v9634_v3  ;;  %11200 = vmatpush3.bf16.msra.mxu0 %v9650_v30 }
0x1f37   :  { %11170 = vmatprep.subr.bf16.mxu1 %v9643_v12  ;;  %11202 = vmatprep.subr.bf16.mxu0 %v9659_v7  ;;  %v9671_v12 = vld [vmem:[%s13600_s11 + $0x550] sm:$0xff]  }
0x1f38   :  { %v9687_v7 = vld [vmem:[%s13600_s11 + $0x5d0] sm:$0xff]  }
0x1f3a   :  { %11172 = vmatpush3.bf16.msra.mxu1 %v9635_v31  ;;  %11204 = vmatpush3.bf16.msra.mxu0 %v9651_v11 }
0x1f3b   :  { %11174 = vmatprep.subr.bf16.mxu1 %v9644_v5  ;;  %11206 = vmatprep.subr.bf16.mxu0 %v9660_v58 }
0x1f3e   :  { %11176 = vmatpush3.bf16.msra.mxu1 %v9636_v32  ;;  %11208 = vmatpush3.bf16.msra.mxu0 %v9652_v16 }
0x1f3f   :  { %11210 = vmatprep.subr.bf16.mxu1 %v9669_v26  ;;  %11242 = vmatprep.subr.bf16.mxu0 %v9685_v10  ;;  %v9663_v26 = vld [vmem:[%s13600_s11 + $0x510] sm:$0xff]  }
0x1f40   :  { %v9679_v10 = vld [vmem:[%s13600_s11 + $0x590] sm:$0xff]  }
0x1fdb   :  { %v6044_v19 = vpop.f32.mrb[66].mxu1  ;;  %v6121_v23 = vpop.f32.mrb[72].mxu0 }
0x1fdc   :  { %v6045_v24 = vadd.f32 %v6044_v19, %v5895_v20  ;;  %v6122_v51 = vadd.f32 %v6121_v23, %v5903_v1  ;;  %v6046_v28 = vpop.f32.mrb[67].mxu1  ;;  %v6123_v29 = vpop.f32.mrb[73].mxu0 }
0x1fdd   :  { %v6047_v33 = vadd.f32 %v6046_v28, %v5899_v2  ;;  %v6124_v34 = vadd.f32 %v6123_v29, %v5907_v18  ;;  %v9673_v28 = vld [vmem:[%s13600_s11 + $0x560] sm:$0xff]  }
0x1fde   :  { %v6594_v8 = vmax.f32 %v6045_v24, 0.0  ;;  %v6596_v40 = vmax.f32 %v6122_v51, 0.0  ;;  %v9664_v24 = vld [vmem:[%s13600_s11 + $0x518] sm:$0xff]   ;;  %v9689_v29 = vld [vmem:[%s13600_s11 + $0x5e0] sm:$0xff]  }
0x1fdf   :  { %v6595_v35 = vmax.f32 %v6047_v33, 0.0  ;;  %v6597_v54 = vmax.f32 %v6124_v34, 0.0  ;;  %v6050_v22 = vpop.f32.mrb[68].mxu1  ;;  %v6127_v37 = vpop.f32.mrb[74].mxu0  ;;  %v9680_v51 = vld [vmem:[%s13600_s11 + $0x598] sm:$0xff]  }
0x1fe0   :  { %v6051_v41 = vadd.f32 %v6050_v22, %v5895_v20  ;;  %v6128_v39 = vadd.f32 %v6127_v37, %v5903_v1  ;;  %v6052_v42 = vpop.f32.mrb[69].mxu1  ;;  %v6129_v48 = vpop.f32.mrb[75].mxu0  ;;  %v9672_v20 = vld [vmem:[%s13600_s11 + $0x558] sm:$0xff]   ;;  %v9665_v22 = vld [vmem:[%s13600_s11 + $0x520] sm:$0xff]  }
0x1fe1   :  { %v6053_v49 = vadd.f32 %v6052_v42, %v5899_v2  ;;  %v6130_v9 = vadd.f32 %v6129_v48, %v5907_v18  ;;  %7203 = vmatprep.mubr.f32.mxu1 %v6595_v35  ;;  %7278 = vmatprep.mubr.f32.mxu0 %v6597_v54  ;;  %v9688_v1 = vld [vmem:[%s13600_s11 + $0x5d8] sm:$0xff]   ;;  %v9681_v37 = vld [vmem:[%s13600_s11 + $0x5a0] sm:$0xff]  }
0x1fe2   :  { %7204 = vmatmul.mubr.f32.vlgmr.msra.gmra.mrb[82].mxu1 %v6594_v8  ;;  %7279 = vmatmul.mubr.f32.vlgmr.msra.gmra.mrb[88].mxu0 %v6596_v40  ;;  %v6610_v63 = vmax.f32 %v6051_v41, 0.0  ;;  %v6612_v44 = vmax.f32 %v6128_v39, 0.0  ;;  %v9674_v8 = vld [vmem:[%s13600_s11 + $0x568] sm:$0xff]  }
0x1fe3   :  { %v6611_v50 = vmax.f32 %v6053_v49, 0.0  ;;  %v6613_v57 = vmax.f32 %v6130_v9, 0.0  ;;  %11212 = vmatpush3.bf16.msra.mxu1 %v9661_v47  ;;  %11244 = vmatpush3.bf16.msra.mxu0 %v9677_v6  ;;  %v13137_v60 = vpop.f32.mrb[70].mxu1  ;;  %v13139_v62 = vpop.f32.mrb[76].mxu0  ;;  %v9690_v40 = vld [vmem:[%s13600_s11 + $0x5e8] sm:$0xff]   ;;  %v9675_v49 = vld [vmem:[%s13600_s11 + $0x570] sm:$0xff]  }
0x1fe4   :  { %v6200_v15 = vpop.f32.mrb[71].mxu1  ;;  %v6277_v36 = vpop.f32.mrb[77].mxu0  ;;  %11214 = vmatprep.subr.bf16.mxu1 %v9670_v45  ;;  %11246 = vmatprep.subr.bf16.mxu0 %v9686_v46  ;;  %v9666_v47 = vld [vmem:[%s13600_s11 + $0x528] sm:$0xff]   ;;  %v9691_v9 = vld [vmem:[%s13600_s11 + $0x5f0] sm:$0xff]  }
0x1fe5   :  { %v6201_v3 = vadd.f32 %v6200_v15, %v13119_v38  ;;  %v6278_v30 = vadd.f32 %v6277_v36, %v13129_v25  ;;  %7208 = vmatprep.mubr.f32.mxu1 %v6611_v50  ;;  %7283 = vmatprep.mubr.f32.mxu0 %v6613_v57  ;;  %v9682_v6 = vld [vmem:[%s13600_s11 + $0x5a8] sm:$0xff]   ;;  %v5911_v50 = vrot.slane %v13107_v27, %v12339_v13  ;;  %v9667_v15 = vld [vmem:[%s13600_s11 + $0x530] sm:$0xff]  }
0x1fe6   :  { %7209 = vmatmul.mubr.f32.gmra.mrb[84].mxu1 %v6610_v63  ;;  %7284 = vmatmul.mubr.f32.gmra.mrb[90].mxu0 %v6612_v44  ;;  %v5919_v57 = vrot.slane %v13107_v27, %v12342_v14  ;;  %v9683_v36 = vld [vmem:[%s13600_s11 + $0x5b0] sm:$0xff]   ;;  %v9692_v27 = vld [vmem:[%s13600_s11 + $0x5f8] sm:$0xff]  }
0x1fe7   :  { %v6599_v31 = vmax.f32 %v6201_v3, 0.0  ;;  %v6601_v11 = vmax.f32 %v6278_v30, 0.0  ;;  %11216 = vmatpush3.bf16.msra.mxu1 %v9662_v59  ;;  %11248 = vmatpush3.bf16.msra.mxu0 %v9678_v0  ;;  %v13155_v5 = vpop.f32.mrb[72].mxu1  ;;  %v13157_v58 = vpop.f32.mrb[78].mxu0  ;;  %v9676_v59 = vld [vmem:[%s13600_s11 + $0x578] sm:$0xff]   ;;  %v6199_v3 = vadd.f32 %v13137_v60, %v5911_v50 }
0x1fe8   :  { %v13159_v32 = vpop.f32.mrb[73].mxu1  ;;  %v13161_v16 = vpop.f32.mrb[79].mxu0  ;;  %11218 = vmatprep.subr.bf16.mxu1 %v9671_v12  ;;  %11250 = vmatprep.subr.bf16.mxu0 %v9687_v7  ;;  %v13262_v0 = vld [vmem:[%s13599_s10 + $0x18] sm:$0xff]  ;;  %v6276_v30 = vadd.f32 %v13139_v62, %v5919_v57 }
0x1fe9   :  { %7353 = vmatprep.mubr.f32.mxu1 %v6599_v31  ;;  %7428 = vmatprep.mubr.f32.mxu0 %v6601_v11  ;;  %v9668_v12 = vld [vmem:[%s13600_s11 + $0x538] sm:$0xff]   ;;  %v6207_v31 = vadd.f32 %v13159_v32, %v13119_v38  ;;  %v6284_v11 = vadd.f32 %v13161_v16, %v13129_v25  ;;  %v13278_v60 = vrot.slane %v13262_v0, %v12217_v55  ;;  %v6598_v38 = vmax.f32 %v6199_v3, 0.0  ;;  %v9706_v3 = vld [vmem:[%s13600_s11 + $0x668] sm:$0xff]  }
0x1fea   :  { %v9684_v7 = vld [vmem:[%s13600_s11 + $0x5b8] sm:$0xff]   ;;  %v13282_v62 = vrot.slane %v13262_v0, %v12220_v56  ;;  %v6600_v25 = vmax.f32 %v6276_v30, 0.0  ;;  %v6205_v32 = vadd.f32 %v13155_v5, %v5911_v50  ;;  %v6282_v55 = vadd.f32 %v13157_v58, %v5919_v57  ;;  %v9709_v5 = vld [vmem:[%s13600_s11 + $0x680] sm:$0xff]   ;;  %v9702_v58 = vld [vmem:[%s13600_s11 + $0x648] sm:$0xff]  }
0x1feb   :  { %11220 = vmatpush3.bf16.msra.mxu1 %v9663_v26  ;;  %11252 = vmatpush3.bf16.msra.mxu0 %v9679_v10  ;;  %v13175_v2 = vpop.f32.mrb[74].mxu1  ;;  %v13177_v18 = vpop.f32.mrb[80].mxu0  ;;  %v9701_v26 = vld [vmem:[%s13600_s11 + $0x640] sm:$0xff]   ;;  %v6615_v56 = vmax.f32 %v6207_v31, 0.0  ;;  %v6617_v16 = vmax.f32 %v6284_v11, 0.0  ;;  %v9696_v50 = vld [vmem:[%s13600_s11 + $0x618] sm:$0xff]  }
0x1fec   :  { %v13179_v19 = vpop.f32.mrb[75].mxu1  ;;  %v13181_v23 = vpop.f32.mrb[81].mxu0  ;;  %11222 = vmatprep.subr.bf16.mxu1 %v9672_v20  ;;  %11254 = vmatprep.subr.bf16.mxu0 %v9688_v1  ;;  %v9717_v10 = vld [vmem:[%s13600_s11 + $0x6c0] sm:$0xff]   ;;  %v9712_v57 = vld [vmem:[%s13600_s11 + $0x698] sm:$0xff]   ;;  %v9722_v30 = vld [vmem:[%s13600_s11 + $0x6e8] sm:$0xff]  }
0x1fed   :  { %v6355_v20 = vadd.f32 %v13179_v19, %v13278_v60  ;;  %v6432_v1 = vadd.f32 %v13181_v23, %v13282_v62  ;;  %v9718_v19 = vld [vmem:[%s13600_s11 + $0x6c8] sm:$0xff]   ;;  %v6614_v23 = vmax.f32 %v6205_v32, 0.0  ;;  %v9707_v31 = vld [vmem:[%s13600_s11 + $0x670] sm:$0xff]   ;;  %v9708_v32 = vld [vmem:[%s13600_s11 + $0x678] sm:$0xff]  }
0x1fee   :  { %v9723_v11 = vld [vmem:[%s13600_s11 + $0x6f0] sm:$0xff]  }
0x1fef   :  { %11224 = vmatpush3.bf16.msra.mxu1 %v9664_v24  ;;  %11256 = vmatpush3.bf16.msra.mxu0 %v9680_v51  ;;  %v13195_v33 = vpop.f32.mrb[76].mxu1  ;;  %v13197_v34 = vpop.f32.mrb[82].mxu0  ;;  %v9693_v24 = vld [vmem:[%s13600_s11 + $0x600] sm:$0xff]   ;;  %v6616_v51 = vmax.f32 %v6282_v55, 0.0 }
0x1ff0   :  { %v13199_v35 = vpop.f32.mrb[77].mxu1  ;;  %v13201_v54 = vpop.f32.mrb[83].mxu0  ;;  %11226 = vmatprep.subr.bf16.mxu1 %v9673_v28  ;;  %11258 = vmatprep.subr.bf16.mxu0 %v9689_v29  ;;  %v6603_v28 = vmax.f32 %v6355_v20, 0.0  ;;  %v6605_v29 = vmax.f32 %v6432_v1, 0.0 }
0x1ff1   :  { %v6361_v20 = vadd.f32 %v13199_v35, %v13278_v60  ;;  %v6438_v1 = vadd.f32 %v13201_v54, %v13282_v62 }
0x1ff3   :  { %11228 = vmatpush3.bf16.msra.mxu1 %v9665_v22  ;;  %11260 = vmatpush3.bf16.msra.mxu0 %v9681_v37  ;;  %v13215_v41 = vpop.f32.mrb[78].mxu1  ;;  %v13217_v39 = vpop.f32.mrb[84].mxu0  ;;  %v9694_v22 = vld [vmem:[%s13600_s11 + $0x608] sm:$0xff]   ;;  %v6621_v62 = vmax.f32 %v6438_v1, 0.0 }
0x1ff4   :  { %v13219_v42 = vpop.f32.mrb[79].mxu1  ;;  %v13221_v48 = vpop.f32.mrb[85].mxu0  ;;  %11230 = vmatprep.subr.bf16.mxu1 %v9674_v8  ;;  %11262 = vmatprep.subr.bf16.mxu0 %v9690_v40  ;;  %v9710_v37 = vld [vmem:[%s13600_s11 + $0x688] sm:$0xff]   ;;  %v9703_v8 = vld [vmem:[%s13600_s11 + $0x650] sm:$0xff]  }
0x1ff5   :  { %v9719_v40 = vld [vmem:[%s13600_s11 + $0x6d0] sm:$0xff]  }
0x1ff7   :  { %11232 = vmatpush3.bf16.msra.mxu1 %v9666_v47  ;;  %11264 = vmatpush3.bf16.msra.mxu0 %v9682_v6  ;;  %v13235_v45 = vpop.f32.mrb[80].mxu1  ;;  %v13237_v46 = vpop.f32.mrb[86].mxu0  ;;  %v9695_v47 = vld [vmem:[%s13600_s11 + $0x610] sm:$0xff]  }
0x1ff8   :  { %v13243_v63 = vpop.f32.mrb[81].mxu1  ;;  %v13245_v44 = vpop.f32.mrb[87].mxu0  ;;  %11234 = vmatprep.subr.bf16.mxu1 %v9675_v49  ;;  %11266 = vmatprep.subr.bf16.mxu0 %v9691_v9  ;;  %v9711_v6 = vld [vmem:[%s13600_s11 + $0x690] sm:$0xff]   ;;  %v9704_v49 = vld [vmem:[%s13600_s11 + $0x658] sm:$0xff]  }
0x1ff9   :  { %v9720_v9 = vld [vmem:[%s13600_s11 + $0x6d8] sm:$0xff]  }
0x1ffb   :  { %11236 = vmatpush3.bf16.msra.mxu1 %v9667_v15  ;;  %11268 = vmatpush3.bf16.msra.mxu0 %v9683_v36  ;;  %v9705_v15 = vld [vmem:[%s13600_s11 + $0x660] sm:$0xff]  }
0x1ffc   :  { %11238 = vmatprep.subr.bf16.mxu1 %v9676_v59  ;;  %11270 = vmatprep.subr.bf16.mxu0 %v9692_v27  ;;  %v9721_v36 = vld [vmem:[%s13600_s11 + $0x6e0] sm:$0xff]  }
0x1ffd   :  { %v9697_v59 = vld [vmem:[%s13600_s11 + $0x620] sm:$0xff]  }
0x1ffe   :  { %v9713_v27 = vld [vmem:[%s13600_s11 + $0x6a0] sm:$0xff]  }
0x1fff   :  { %11240 = vmatpush3.bf16.msra.mxu1 %v9668_v12  ;;  %11272 = vmatpush3.bf16.msra.mxu0 %v9684_v7  ;;  %v9698_v12 = vld [vmem:[%s13600_s11 + $0x628] sm:$0xff]  }
0x2000   :  { %11274 = vmatprep.subr.bf16.mxu1 %v9701_v26  ;;  %11306 = vmatprep.subr.bf16.mxu0 %v9717_v10  ;;  %v9714_v7 = vld [vmem:[%s13600_s11 + $0x6a8] sm:$0xff]   ;;  %v5927_v26 = vrot.slane %v13262_v0, %v12206_v52  ;;  %v5935_v10 = vrot.slane %v13262_v0, %v12209_v53  ;;  %v9724_v52 = vld [vmem:[%s13600_s11 + $0x6f8] sm:$0xff]  }
0x2002   :  { %7354 = vmatmul.mubr.f32.vlgmr.msra.gmra.mrb[86].mxu1 %v6598_v38  ;;  %7429 = vmatmul.mubr.f32.vlgmr.msra.gmra.mrb[92].mxu0 %v6600_v25  ;;  %v9699_v38 = vld [vmem:[%s13600_s11 + $0x630] sm:$0xff]   ;;  %v6353_v53 = vadd.f32 %v13175_v2, %v5927_v26  ;;  %v6430_v55 = vadd.f32 %v13177_v18, %v5935_v10  ;;  %v13398_v2 = vrot.slane %v13262_v0, %v12231_v61 }
0x2003   :  { %7358 = vmatprep.mubr.f32.mxu1 %v6615_v56  ;;  %7433 = vmatprep.mubr.f32.mxu0 %v6617_v16  ;;  %v9715_v25 = vld [vmem:[%s13600_s11 + $0x6b0] sm:$0xff]   ;;  %v9700_v56 = vld [vmem:[%s13600_s11 + $0x638] sm:$0xff]   ;;  %v13402_v18 = vrot.slane %v13262_v0, %v12234_v4  ;;  %v6359_v60 = vadd.f32 %v13195_v33, %v5927_v26  ;;  %v6436_v61 = vadd.f32 %v13197_v34, %v5935_v10  ;;  %v6619_v4 = vmax.f32 %v6361_v20, 0.0  ;;  %v9741_v33 = vld [vmem:[%s13600_s11 + $0x780] sm:$0xff]  }
0x2004   :  { %11276 = vmatpush3.bf16.msra.mxu1 %v9693_v24  ;;  %11308 = vmatpush3.bf16.msra.mxu0 %v9709_v5  ;;  %v9716_v16 = vld [vmem:[%s13600_s11 + $0x6b8] sm:$0xff]   ;;  %v9733_v24 = vld [vmem:[%s13600_s11 + $0x740] sm:$0xff]   ;;  %v6602_v35 = vmax.f32 %v6353_v53, 0.0  ;;  %v6604_v54 = vmax.f32 %v6430_v55, 0.0  ;;  %v9734_v34 = vld [vmem:[%s13600_s11 + $0x748] sm:$0xff]   ;;  %v5943_v26 = vrot.slane %v13262_v0, %v12339_v13  ;;  %v5951_v10 = vrot.slane %v13262_v0, %v12342_v14 }
0x2005   :  { %11278 = vmatprep.subr.bf16.mxu1 %v9702_v58  ;;  %11310 = vmatprep.subr.bf16.mxu0 %v9718_v19  ;;  %v9749_v5 = vld [vmem:[%s13600_s11 + $0x7c0] sm:$0xff]   ;;  %v6509_v58 = vadd.f32 %v13219_v42, %v13398_v2  ;;  %v6586_v19 = vadd.f32 %v13221_v48, %v13402_v18  ;;  %v9750_v42 = vld [vmem:[%s13600_s11 + $0x7c8] sm:$0xff]   ;;  %v6618_v48 = vmax.f32 %v6359_v60, 0.0  ;;  %v9756_v13 = vld [vmem:[%s13600_s11 + $0x7f8] sm:$0xff]   ;;  %v6515_v55 = vadd.f32 %v13243_v63, %v13398_v2 }
0x2006   :  { %7359 = vmatmul.mubr.f32.gmra.mrb[88].mxu1 %v6614_v23  ;;  %7434 = vmatmul.mubr.f32.gmra.mrb[94].mxu0 %v6616_v51  ;;  %v9725_v23 = vld [vmem:[%s13600_s11 + $0x700] sm:$0xff]   ;;  %v6620_v51 = vmax.f32 %v6436_v61, 0.0  ;;  %v6507_v14 = vadd.f32 %v13215_v41, %v5943_v26  ;;  %v6584_v0 = vadd.f32 %v13217_v39, %v5951_v10  ;;  %v9748_v53 = vld [vmem:[%s13600_s11 + $0x7b8] sm:$0xff]   ;;  %v6590_v20 = vadd.f32 %v13237_v46, %v5951_v10 }
0x2007   :  { %7503 = vmatprep.mubr.f32.mxu1 %v6603_v28  ;;  %7578 = vmatprep.mubr.f32.mxu0 %v6605_v29  ;;  %v6607_v28 = vmax.f32 %v6509_v58, 0.0  ;;  %v6609_v29 = vmax.f32 %v6586_v19, 0.0  ;;  %v6623_v1 = vmax.f32 %v6515_v55, 0.0 }
0x2008   :  { %11280 = vmatpush3.bf16.msra.mxu1 %v9694_v22  ;;  %11312 = vmatpush3.bf16.msra.mxu0 %v9710_v37  ;;  %v9726_v22 = vld [vmem:[%s13600_s11 + $0x708] sm:$0xff]   ;;  %v6606_v41 = vmax.f32 %v6507_v14, 0.0  ;;  %v6608_v39 = vmax.f32 %v6584_v0, 0.0 }
0x2009   :  { %11282 = vmatprep.subr.bf16.mxu1 %v9703_v8  ;;  %11314 = vmatprep.subr.bf16.mxu0 %v9719_v40  ;;  %v9742_v37 = vld [vmem:[%s13600_s11 + $0x788] sm:$0xff]   ;;  %v9735_v8 = vld [vmem:[%s13600_s11 + $0x750] sm:$0xff]  }
0x200a   :  { %v9751_v40 = vld [vmem:[%s13600_s11 + $0x7d0] sm:$0xff]  }
0x200c   :  { %11284 = vmatpush3.bf16.msra.mxu1 %v9695_v47  ;;  %11316 = vmatpush3.bf16.msra.mxu0 %v9711_v6  ;;  %v9727_v47 = vld [vmem:[%s13600_s11 + $0x710] sm:$0xff]  }
0x200d   :  { %11286 = vmatprep.subr.bf16.mxu1 %v9704_v49  ;;  %11318 = vmatprep.subr.bf16.mxu0 %v9720_v9  ;;  %v9743_v6 = vld [vmem:[%s13600_s11 + $0x790] sm:$0xff]   ;;  %v9736_v49 = vld [vmem:[%s13600_s11 + $0x758] sm:$0xff]  }
0x200e   :  { %v9752_v9 = vld [vmem:[%s13600_s11 + $0x7d8] sm:$0xff]  }
0x2010   :  { %11288 = vmatpush3.bf16.msra.mxu1 %v9696_v50  ;;  %11320 = vmatpush3.bf16.msra.mxu0 %v9712_v57  ;;  %v9728_v50 = vld [vmem:[%s13600_s11 + $0x718] sm:$0xff]  }
0x2011   :  { %11290 = vmatprep.subr.bf16.mxu1 %v9705_v15  ;;  %11322 = vmatprep.subr.bf16.mxu0 %v9721_v36  ;;  %v9744_v57 = vld [vmem:[%s13600_s11 + $0x798] sm:$0xff]   ;;  %v9737_v15 = vld [vmem:[%s13600_s11 + $0x760] sm:$0xff]  }
0x2012   :  { %v9753_v36 = vld [vmem:[%s13600_s11 + $0x7e0] sm:$0xff]  }
0x2014   :  { %11292 = vmatpush3.bf16.msra.mxu1 %v9697_v59  ;;  %11324 = vmatpush3.bf16.msra.mxu0 %v9713_v27  ;;  %v9729_v59 = vld [vmem:[%s13600_s11 + $0x720] sm:$0xff]  }
0x2015   :  { %11294 = vmatprep.subr.bf16.mxu1 %v9706_v3  ;;  %11326 = vmatprep.subr.bf16.mxu0 %v9722_v30  ;;  %v9745_v27 = vld [vmem:[%s13600_s11 + $0x7a0] sm:$0xff]   ;;  %v9738_v3 = vld [vmem:[%s13600_s11 + $0x768] sm:$0xff]  }
0x2016   :  { %v9754_v30 = vld [vmem:[%s13600_s11 + $0x7e8] sm:$0xff]  }
0x2018   :  { %11296 = vmatpush3.bf16.msra.mxu1 %v9698_v12  ;;  %11328 = vmatpush3.bf16.msra.mxu0 %v9714_v7  ;;  %v9730_v12 = vld [vmem:[%s13600_s11 + $0x728] sm:$0xff]  }
0x2019   :  { %11298 = vmatprep.subr.bf16.mxu1 %v9707_v31  ;;  %11330 = vmatprep.subr.bf16.mxu0 %v9723_v11  ;;  %v9746_v7 = vld [vmem:[%s13600_s11 + $0x7a8] sm:$0xff]   ;;  %v9739_v31 = vld [vmem:[%s13600_s11 + $0x770] sm:$0xff]  }
0x201a   :  { %v9755_v11 = vld [vmem:[%s13600_s11 + $0x7f0] sm:$0xff]  }
0x201c   :  { %11300 = vmatpush3.bf16.msra.mxu1 %v9699_v38  ;;  %11332 = vmatpush3.bf16.msra.mxu0 %v9715_v25  ;;  %v9731_v38 = vld [vmem:[%s13600_s11 + $0x730] sm:$0xff]  }
0x201d   :  { %11302 = vmatprep.subr.bf16.mxu1 %v9708_v32  ;;  %11334 = vmatprep.subr.bf16.mxu0 %v9724_v52  ;;  %v9747_v25 = vld [vmem:[%s13600_s11 + $0x7b0] sm:$0xff]   ;;  %v9740_v32 = vld [vmem:[%s13600_s11 + $0x778] sm:$0xff]  }
0x201e   :  { %v9732_v52 = vld [vmem:[%s13600_s11 + $0x738] sm:$0xff]  }
0x2020   :  { %11304 = vmatpush3.bf16.msra.mxu1 %v9700_v56  ;;  %11336 = vmatpush3.bf16.msra.mxu0 %v9716_v16  ;;  %v6592_v56 = vadd.f32 %v13245_v44, %v13402_v18  ;;  %v6513_v16 = vadd.f32 %v13235_v45, %v5943_v26 }
0x2021   :  { %11338 = vmatprep.subr.bf16.mxu1 %v9733_v24  ;;  %11370 = vmatprep.subr.bf16.mxu0 %v9749_v5 }
0x2022   :  { %v6625_v24 = vmax.f32 %v6592_v56, 0.0  ;;  %v6622_v5 = vmax.f32 %v6513_v16, 0.0 }
0x2023   :  { %7504 = vmatmul.mubr.f32.vlgmr.msra.gmra.mrb[90].mxu1 %v6602_v35  ;;  %7579 = vmatmul.mubr.f32.vlgmr.msra.gmra.mrb[96].mxu0 %v6604_v54  ;;  %v6624_v35 = vmax.f32 %v6590_v20, 0.0 }
0x2024   :  { %7508 = vmatprep.mubr.f32.mxu1 %v6619_v4  ;;  %7583 = vmatprep.mubr.f32.mxu0 %v6621_v62 }
0x2025   :  { %11340 = vmatpush3.bf16.msra.mxu1 %v9725_v23  ;;  %11372 = vmatpush3.bf16.msra.mxu0 %v9741_v33 }
0x2026   :  { %11342 = vmatprep.subr.bf16.mxu1 %v9734_v34  ;;  %11374 = vmatprep.subr.bf16.mxu0 %v9750_v42 }
0x2027   :  { %7509 = vmatmul.mubr.f32.gmra.mrb[92].mxu1 %v6618_v48  ;;  %7584 = vmatmul.mubr.f32.gmra.mrb[98].mxu0 %v6620_v51 }
0x2028   :  { %7653 = vmatprep.mubr.f32.mxu1 %v6607_v28  ;;  %7728 = vmatprep.mubr.f32.mxu0 %v6609_v29 }
0x2029   :  { %11344 = vmatpush3.bf16.msra.mxu1 %v9726_v22  ;;  %11376 = vmatpush3.bf16.msra.mxu0 %v9742_v37 }
0x202a   :  { %11346 = vmatprep.subr.bf16.mxu1 %v9735_v8  ;;  %11378 = vmatprep.subr.bf16.mxu0 %v9751_v40 }
0x202d   :  { %11348 = vmatpush3.bf16.msra.mxu1 %v9727_v47  ;;  %11380 = vmatpush3.bf16.msra.mxu0 %v9743_v6 }
0x202e   :  { %11350 = vmatprep.subr.bf16.mxu1 %v9736_v49  ;;  %11382 = vmatprep.subr.bf16.mxu0 %v9752_v9 }
0x2031   :  { %11352 = vmatpush3.bf16.msra.mxu1 %v9728_v50  ;;  %11384 = vmatpush3.bf16.msra.mxu0 %v9744_v57 }
0x2032   :  { %11354 = vmatprep.subr.bf16.mxu1 %v9737_v15  ;;  %11386 = vmatprep.subr.bf16.mxu0 %v9753_v36 }
0x2035   :  { %11356 = vmatpush3.bf16.msra.mxu1 %v9729_v59  ;;  %11388 = vmatpush3.bf16.msra.mxu0 %v9745_v27 }
0x2036   :  { %11358 = vmatprep.subr.bf16.mxu1 %v9738_v3  ;;  %11390 = vmatprep.subr.bf16.mxu0 %v9754_v30 }
0x2039   :  { %11360 = vmatpush3.bf16.msra.mxu1 %v9730_v12  ;;  %11392 = vmatpush3.bf16.msra.mxu0 %v9746_v7 }
0x203a   :  { %11362 = vmatprep.subr.bf16.mxu1 %v9739_v31  ;;  %11394 = vmatprep.subr.bf16.mxu0 %v9755_v11 }
0x203d   :  { %11364 = vmatpush3.bf16.msra.mxu1 %v9731_v38  ;;  %11396 = vmatpush3.bf16.msra.mxu0 %v9747_v25 }
0x203e   :  { %11366 = vmatprep.subr.bf16.mxu1 %v9740_v32  ;;  %11398 = vmatprep.subr.bf16.mxu0 %v9756_v13 }
0x2041   :  { %11368 = vmatpush3.bf16.msra.mxu1 %v9732_v52  ;;  %11400 = vmatpush3.bf16.msra.mxu0 %v9748_v53 }
0x2044   :  { %7654 = vmatmul.mubr.f32.vlgmr.msra.gmra.mrb[94].mxu1 %v6606_v41  ;;  %7729 = vmatmul.mubr.f32.vlgmr.msra.gmra.mrb[100].mxu0 %v6608_v39 }
0x2045   :  { %7658 = vmatprep.mubr.f32.mxu1 %v6623_v1  ;;  %7733 = vmatprep.mubr.f32.mxu0 %v6625_v24  ;;  %v8162_v1 = vld [vmem:[%s13601_s12 + $0x1] ss:$0 sm:$0xff] }
0x2048   :  { %7659 = vmatmul.mubr.f32.gmra.mrb[96].mxu1 %v6622_v5  ;;  %7734 = vmatmul.mubr.f32.gmra.mrb[102].mxu0 %v6624_v35 }
0x2049   :  { %10738 = vmatprep.mubr.msk.f32.mxu0 %vm11618_vm2, %v11617_v17 }
0x20b5   :  { %v10197_v63 = vpop.f32.mrb[82].mxu1  ;;  %v10235_v44 = vpop.f32.mrb[88].mxu0 }
0x20b6   :  { %v10198_v2 = vpop.f32.mrb[83].mxu1  ;;  %v10236_v18 = vpop.f32.mrb[89].mxu0 }
0x20b7   :  { %v10199_v45 = vadd.f32 %v10198_v2, %v10197_v63  ;;  %v10237_v54 = vadd.f32 %v10236_v18, %v10235_v44 }
0x20b9   :  { %v7281_v46 = vadd.f32 %v10237_v54, %v10199_v45  ;;  %v10200_v60 = vpop.f32.mrb[84].mxu1  ;;  %v10238_v61 = vpop.f32.mrb[90].mxu0 }
0x20ba   :  { %v10201_v4 = vpop.f32.mrb[85].mxu1  ;;  %v10239_v62 = vpop.f32.mrb[91].mxu0 }
0x20bb   :  { %v10202_v58 = vadd.f32 %v10201_v4, %v10200_v60  ;;  %v10240_v19 = vadd.f32 %v10239_v62, %v10238_v61 }
0x20bd   :  { %v7286_v23 = vadd.f32 %v10240_v19, %v10202_v58 }
0x20d5   :  { %v10273_v33 = vpop.f32.mrb[86].mxu1  ;;  %v10311_v34 = vpop.f32.mrb[92].mxu0 }
0x20d6   :  { %v10274_v42 = vpop.f32.mrb[87].mxu1  ;;  %v10312_v48 = vpop.f32.mrb[93].mxu0 }
0x20d7   :  { %v10275_v51 = vadd.f32 %v10274_v42, %v10273_v33  ;;  %v10313_v28 = vadd.f32 %v10312_v48, %v10311_v34  ;;  %v7790_v48 = vld [vmem:[%s13604_s15 + $0x8] sm:$0xff] }
0x20d9   :  { %v7356_v29 = vadd.f32 %v10275_v51, %v7281_v46  ;;  %v10276_v22 = vpop.f32.mrb[88].mxu1  ;;  %v10314_v37 = vpop.f32.mrb[94].mxu0 }
0x20da   :  { %v10277_v8 = vpop.f32.mrb[89].mxu1  ;;  %v10315_v40 = vpop.f32.mrb[95].mxu0 }
0x20db   :  { %v7431_v47 = vadd.f32 %v10313_v28, %v7356_v29  ;;  %v10278_v6 = vadd.f32 %v10277_v8, %v10276_v22  ;;  %v10316_v49 = vadd.f32 %v10315_v40, %v10314_v37  ;;  %v7791_v28 = vld [vmem:[%s13604_s15 + $0x10] sm:$0xff]  ;;  %v7792_v29 = vld [vmem:[%s13604_s15 + $0x18] sm:$0xff] }
0x20dc   :  { %v11405_v22 = vpack.c.bf16 %v7792_v29, %v7791_v28 }
0x20dd   :  { %v7361_v9 = vadd.f32 %v10278_v6, %v7286_v23 }
0x20df   :  { %v7436_v50 = vadd.f32 %v10316_v49, %v7361_v9 }
0x20f6   :  { %v10349_v57 = vpop.f32.mrb[90].mxu1  ;;  %v10387_v15 = vpop.f32.mrb[96].mxu0 }
0x20f7   :  { %v10350_v36 = vpop.f32.mrb[91].mxu1  ;;  %v10388_v59 = vpop.f32.mrb[97].mxu0 }
0x20f8   :  { %v10351_v27 = vadd.f32 %v10350_v36, %v10349_v57  ;;  %v10389_v3 = vadd.f32 %v10388_v59, %v10387_v15  ;;  %v8472_v15 = vld [vmem:[%s13603_s14 + $0x1] ss:$0 sm:$0xff] }
0x20fa   :  { %v7506_v30 = vadd.f32 %v10351_v27, %v7431_v47  ;;  %v10352_v12 = vpop.f32.mrb[92].mxu1  ;;  %v10390_v7 = vpop.f32.mrb[98].mxu0 }
0x20fb   :  { %v10353_v31 = vpop.f32.mrb[93].mxu1  ;;  %v10391_v11 = vpop.f32.mrb[99].mxu0 }
0x20fc   :  { %v7581_v26 = vadd.f32 %v10389_v3, %v7506_v30  ;;  %v10354_v10 = vadd.f32 %v10353_v31, %v10352_v12  ;;  %v10392_v38 = vadd.f32 %v10391_v11, %v10390_v7  ;;  %v11630_v7 = vmov 0.0|0.0   ;;  %v7952_v31 = vld [vmem:[%s13607_s18] sm:$0xff]  ;;  %v7953_v11 = vld [vmem:[%s13607_s18 + $0x8] sm:$0xff] }
0x20fd   :  { %11412 = vmatprep.subr.bf16.mxu0 %v11630_v7 }
0x20fe   :  { %v7511_v25 = vadd.f32 %v10354_v10, %v7436_v50  ;;  %v8471_v50 = vld [vmem:[%s13602_s13 + $0x1] ss:$0 sm:$0xff]  ;;  %v11413_v10 = vpack.c.bf16 %v7953_v11, %v7952_v31 }
0x2100   :  { %v7586_v32 = vadd.f32 %v10392_v38, %v7511_v25  ;;  %11414 = vmatpush3.bf16.msra.mxu0 %v11413_v10  ;;  %v7875_v25 = vld [vmem:[%s13605_s16 + $0x8] sm:$0xff] }
0x2101   :  { %11415 = vmatprep.subr.bf16.mxu0 %v11630_v7 }
0x2117   :  { %v10425_v13 = vpop.f32.mrb[94].mxu1  ;;  %v10463_v14 = vpop.f32.mrb[100].mxu0 }
0x2118   :  { %v10426_v0 = vpop.f32.mrb[95].mxu1  ;;  %v10464_v52 = vpop.f32.mrb[101].mxu0 }
0x2119   :  { %v10427_v53 = vadd.f32 %v10426_v0, %v10425_v13  ;;  %v10465_v55 = vadd.f32 %v10464_v52, %v10463_v14 }
0x211b   :  { %v7656_v56 = vadd.f32 %v10427_v53, %v7581_v26  ;;  %v10428_v41 = vpop.f32.mrb[96].mxu1  ;;  %v10466_v39 = vpop.f32.mrb[102].mxu0  ;;  %v7954_v26 = vld [vmem:[%s13607_s18 + $0x10] sm:$0xff] }
0x211c   :  { %v10429_v16 = vpop.f32.mrb[97].mxu1  ;;  %v10467_v20 = vpop.f32.mrb[103].mxu0 }
0x211d   :  { %v7731_v24 = vadd.f32 %v10465_v55, %v7656_v56  ;;  %v10430_v5 = vadd.f32 %v10429_v16, %v10428_v41  ;;  %v10468_v35 = vadd.f32 %v10467_v20, %v10466_v39  ;;  %v7878_v55 = vld [vmem:[%s13606_s17] sm:$0x3] }
0x211e   :  { %v8476_v39 = vld [vmem:[%s13608_s19] ss:$0 sm:$0xff] }
0x211f   :  { %v7661_v63 = vadd.f32 %v10430_v5, %v7586_v32  ;;  %v7739_v44 = vadd.f32 %v8162_v1, %v7731_v24  ;;  %v7874_v32 = vld [vmem:[%s13605_s16] sm:$0xff]  ;;  %s11631_s16 = smov [#allocation2]  }
0x2120   :  { %s8044_s26 = sshll.u32 %s11631_s16, 4  ;;  %s8045_s26 = int_to_ptr.vmem [resolvable:$true] %s8044_s26 }
0x2121   :  { %v7736_v2 = vadd.f32 %v10468_v35, %v7661_v63  ;;  %v7741_v18 = vadd.f32 %v7739_v44, %v12904_v43  ;;  %s11593_s22 = scalar_lea.vmem %s8045_s26, 32  ;;  %p11598_p1 = scmp.lt.s32.totalorder %s8045_s26, %s8045_s26 }
0x2122   :  { %p11594_p0 = scmp.ne.s32.totalorder %s8045_s26, %s11593_s22  ;;  %p11599_p2 = scmp.lt.s32.totalorder %s11593_s22, %s11593_s22 }
0x2123   :  { %v7747_v45 = vsel %vm165_vm1, %v7741_v18, 0.0  ;;  %v7740_v54 = vadd.f32 %v8162_v1, %v7736_v2 }
0x2124   :  { %7748 = vadd.xlane.f32.xlu1 %v7747_v45  ;;  %p11600_p3 = por %p11599_p2, %p11598_p1 }
0x2125   :  { %v7742_v46 = vadd.f32 %v7740_v54, %v12922_v21  ;;  %v7789_v21 = vld [vmem:[%s13604_s15] sm:$0xff] }
0x2126   :  { %v11401_v51 = vpack.c.bf16 %v7790_v48, %v7789_v21  ;;  %p11601_p4 = pnand %p11600_p3, %p11594_p0 }
0x2127   :  { %v7750_v60 = vsel %vm165_vm1, %v7742_v46, 0.0 }
0x2128   :  { %7751 = vadd.xlane.f32.xlu0 %v7750_v60  ;;  %11402 = vmatprep.subr.bf16.mxu1 %v11401_v51 }
0x2129   :  { %11404 = vmatpush3.bf16.msra.mxu1 %v11401_v51 }
0x212a   :  { %11406 = vmatprep.subr.bf16.mxu1 %v11405_v22 }
0x212d   :  { %11408 = vmatpush3.bf16.msra.mxu1 %v11405_v22 }
0x212e   :  { %11409 = vmatprep.subr.bf16.mxu1 %v11630_v7 }
0x21b1   :  { %v7749_v61 = vpop.xlane.xlu1 %7748 }
0x21b2   :  { %v7753_v4 = vmul.f32 0.03125, %v7749_v61 }
0x21b4   :  { %v7755_v62 = vsub.f32 %v7741_v18, %v7753_v4 }
0x21b5   :  { %v7752_v58 = vpop.xlane.xlu0 %7751 }
0x21b6   :  { %v7754_v19 = vmul.f32 0.03125, %v7752_v58  ;;  %v7757_v23 = vmul.f32 %v7755_v62, %v7755_v62 }
0x21b8   :  { %v7756_v33 = vsub.f32 %v7742_v46, %v7754_v19  ;;  %v7759_v34 = vsel %vm165_vm1, %v7757_v23, 0.0 }
0x21b9   :  { %7760 = vadd.xlane.f32.xlu1 %v7759_v34 }
0x21ba   :  { %v7758_v43 = vmul.f32 %v7756_v33, %v7756_v33 }
0x21bc   :  { %v7762_v42 = vsel %vm165_vm1, %v7758_v43, 0.0 }
0x21bd   :  { %7763 = vadd.xlane.f32.xlu0 %v7762_v42 }
0x2246   :  { %v7761_v37 = vpop.xlane.xlu1 %7760 }
0x2247   :  { %v7765_v8 = vmul.f32 0.03125, %v7761_v37 }
0x2249   :  { %v7767_v40 = vadd.f32 1e-05, %v7765_v8 }
0x224a   :  { %v7764_v47 = vpop.xlane.xlu0 %7763 }
0x224b   :  { %11589 = vrsqrt.f32 %v7767_v40  ;;  %v7766_v6 = vmul.f32 0.03125, %v7764_v47 }
0x224d   :  { %v7768_v49 = vadd.f32 1e-05, %v7766_v6 }
0x224f   :  { %11591 = vrsqrt.f32 %v7768_v49 }
0x2255   :  { %v11590_v9 = vpop.eup %11589 }
0x2256   :  { %v7771_v57 = vmul.f32 %v11590_v9, %v7755_v62 }
0x2258   :  { %v7779_v36 = vmul.f32 %v8471_v50, %v7771_v57 }
0x2259   :  { %v11592_v59 = vpop.eup %11591 }
0x225a   :  { %v7772_v27 = vmul.f32 %v11592_v59, %v7756_v33  ;;  %v7787_v3 = vadd.f32 %v8472_v15, %v7779_v36 }
0x225c   :  { %v7780_v30 = vmul.f32 %v8471_v50, %v7772_v27  ;;  %10720 = vmatprep.mubr.msk.f32.mxu1 %vm165_vm1, %v7787_v3 }
0x225e   :  { %v7788_v12 = vadd.f32 %v8472_v15, %v7780_v30 }
0x2260   :  { %10721 = vmatmul.mubr.msk.f32.vlgmr.msra.gmra.mrb[98].mxu1 %vm165_vm1, %v7788_v12 }
0x2261   :  { %10727 = vmatprep.mubr.msk.f32.mxu1 %vm11618_vm2, %v11617_v17  ;;  %v7955_v17 = vld [vmem:[%s13607_s18 + $0x18] sm:$0xff] }
0x2262   :  { %v11416_v38 = vpack.c.bf16 %v7955_v17, %v7954_v26 }
0x2264   :  { %11417 = vmatpush3.bf16.msra.mxu0 %v11416_v38 }
0x2333   :  { %v10722_v13 = vpop.f32.mrb[98].mxu1 }
0x2334   :  { %v7877_v14 = vmul.f32 %v10722_v13, %v7875_v25  ;;  %v7865_v0 = vpop.f32.mrb[99].mxu1 }
0x2335   :  { %v7876_v52 = vmul.f32 %v7874_v32, %v7865_v0 }
0x2337   :  { %v11410_v53 = vpack.c.bf16 %v7877_v14, %v7876_v52 }
0x2339   :  { %11411 = vmatpush3.bf16.msra.mxu1 %v11410_v53 }
0x233c   :  { %10728 = vmatmul.mubr.msk.f32.vlgmr.msra.gmra.mrb[100].mxu1 %vm72_vm0, %v7878_v55 }
0x240f   :  { %v7948_v56 = vpop.f32.mrb[100].mxu1 }
0x2410   :  { %v10729_v41 = vpop.f32.mrb[101].mxu1  ;;  %10739 = vmatmul.mubr.msk.f32.vlgmr.msra.gmra.mrb[104].mxu0 %vm165_vm1, %v7948_v56 }
0x24e3   :  { %v8032_v16 = vpop.f32.mrb[104].mxu0 }
0x24e4   :  { %v8033_v20 = vadd.f32 %v8476_v39, %v8032_v16  ;;  %v10740_v1 = vpop.f32.mrb[105].mxu0 }
0x24e6   :  { %8037 = vst.msk [vmem:[#allocation2] sm:$0x3] %vm8036_vm4, %v8033_v20 }
0x24e7   :  { %11604 = shalt.err (!%p11601_p4)
}
0x24e8   :  { %s11605_s4 = scalar_lea.hbm %s13609_s20, 32 }
0x24e9   :  { %p11606_p5 = scmp.ne.s32.totalorder %s13609_s20, %s11605_s4  ;;  %p11609_p6 = scmp.lt.u32.totalorder %s11605_s4, %s13609_s20 }
0x24eb   :  { %p11611_p7 = pnand %p11609_p6, %p11606_p5 }
0x24ed   :  { %11614 = shalt.err (!%p11611_p7)
}
0x24ee   :  { %8047 = dma.vmem_to_hbm [thread:$0]  %s8045_s26, 32, %s13609_s20, [#allocation3]  }
0x24ef   :  { %11615 = dma.done.wait [#allocation3], 32  }
0x24f0   :  { %11616 = vsyncadd [#allocation3], 4294967264 }
0x24f1   :  { %8051 = vsyncpa [#allocation3], 1 }

</bundles_post_ra>
